<compile_context>
chip_gen: v6e
topology: v6e:2x2x1
jax: 0.10.0
libtpu: 0.0.40
codegen_flags: <defaults>
</compile_context>

<pallas_src>
import functools

import jax
import jax.numpy as jnp
from jax.experimental import pallas as pl
from jax.experimental.pallas import tpu as pltpu

TM = 512                      # voxel (lane) tile for the conv matmul grid
_VMEM_LIMIT = 64 * 1024 * 1024


def _round_up(x, m):
    return ((x + m - 1) // m) * m


# ---------------------------------------------------------------------------
# Pallas kernels
# ---------------------------------------------------------------------------
def _mm_bias_act_kernel(*refs, n_parts, negative_slope):
    """O(Cout, TM) = sum_p W_p(Cout, K_p) @ A_p(K_p, TM) + b, optional LeakyReLU.

    refs = [a_0, w_0, a_1, w_1, ..., bias, out].  Voxels (TM) sit on the lane
    axis of the output block -> lane-dense stores.  bf16 operands, f32 acc.
    """
    b_ref = refs[2 * n_parts]
    o_ref = refs[2 * n_parts + 1]
    acc = b_ref[...]                                    # (Cout, 1) f32
    for p in range(n_parts):
        a_ref = refs[2 * p]                             # (1, K_p, TM) bf16
        w_ref = refs[2 * p + 1]                         # (Cout, K_p) bf16
        acc = acc + jnp.dot(w_ref[...], a_ref[0],
                            preferred_element_type=jnp.float32)
    if negative_slope is not None:
        acc = jnp.where(acc >= 0.0, acc, negative_slope * acc)
    o_ref[0] = acc.astype(o_ref.dtype)


def matmul_bias_act(parts, b, out_dtype, negative_slope=None):
    """parts: list of (a, w); a: (N, K_p, M) bf16, w: (Cout, K_p) bf16.

    Returns (N, Cout, M) of out_dtype.  Output lane axis = voxels (lane-dense).
    """
    N, _, M = parts[0][0].shape
    Cout = parts[0][1].shape[0]
    tm = TM if M >= TM else _round_up(M, 128)
    Mp = _round_up(M, tm)

    in_arrays, in_specs = [], []
    for a, w in parts:
        K = a.shape[1]
        a_p = a if Mp == M else jnp.pad(a, ((0, 0), (0, 0), (0, Mp - M)))
        in_arrays += [a_p, w]
        in_specs += [
            pl.BlockSpec((1, K, tm), lambda n, i: (n, 0, i)),
            pl.BlockSpec((Cout, K), lambda n, i: (0, 0)),
        ]
    in_arrays.append(b.reshape(Cout, 1).astype(jnp.float32))
    in_specs.append(pl.BlockSpec((Cout, 1), lambda n, i: (0, 0)))

    kernel = functools.partial(
        _mm_bias_act_kernel, n_parts=len(parts), negative_slope=negative_slope)
    out = pl.pallas_call(
        kernel,
        out_shape=jax.ShapeDtypeStruct((N, Cout, Mp), out_dtype),
        grid_spec=pltpu.PrefetchScalarGridSpec(
            num_scalar_prefetch=0,
            grid=(N, Mp // tm),
            in_specs=in_specs,
            out_specs=pl.BlockSpec((1, Cout, tm), lambda n, i: (n, 0, i)),
        ),
        compiler_params=pltpu.CompilerParams(
            dimension_semantics=("parallel", "parallel"),
            vmem_limit_bytes=_VMEM_LIMIT,
        ),
    )(*in_arrays)
    return out[:, :, :M]


def _zpool_kernel(x_ref, o_ref):
    # x: (TR, 2, L) partial sums (x/y already pair-summed); mean over 8 voxels.
    s = x_ref[:, 0, :].astype(jnp.float32) + x_ref[:, 1, :].astype(jnp.float32)
    o_ref[...] = (s * 0.125).astype(o_ref.dtype)


def avg_pool3d_2x(x):
    """x: (N, C, D, H, W) -> (N, C, D//2, H//2, W//2) by 2x2x2 mean pooling.

    In-layout: x/y pair-sums are strided adds (no transpose through HBM); the
    z-pair mean runs in a tiled Pallas kernel.  Dtype is preserved.
    """
    N, C, D, H, W = x.shape
    s = x[..., 0::2] + x[..., 1::2]                  # (N, C, D, H,   W/2)
    s = s[..., 0::2, :] + s[..., 1::2, :]            # (N, C, D, H/2, W/2)
    L = (H // 2) * (W // 2)
    R = N * C * (D // 2)
    s = s.reshape(R, 2, L)                           # row-major: z-plane pairs

    TR = 128 if R >= 128 else R
    RP = _round_up(R, TR)
    if RP != R:
        s = jnp.pad(s, ((0, RP - R), (0, 0), (0, 0)))

    out = pl.pallas_call(
        _zpool_kernel,
        out_shape=jax.ShapeDtypeStruct((RP, L), x.dtype),
        grid_spec=pltpu.PrefetchScalarGridSpec(
            num_scalar_prefetch=0,
            grid=(RP // TR,),
            in_specs=[pl.BlockSpec((TR, 2, L), lambda i: (i, 0, 0))],
            out_specs=pl.BlockSpec((TR, L), lambda i: (i, 0)),
        ),
        compiler_params=pltpu.CompilerParams(
            dimension_semantics=("parallel",),
            vmem_limit_bytes=_VMEM_LIMIT,
        ),
    )(s)
    return out[:R].reshape(N, C, D // 2, H // 2, W // 2)


# ---------------------------------------------------------------------------
# Convolution wrappers (channel-first im2col glue + Pallas matmul)
# ---------------------------------------------------------------------------
def conv3d_3x3(inputs, weights, b, negative_slope=0.2, out_dtype=jnp.bfloat16):
    """3x3x3 conv, stride 1, padding 1, fused LeakyReLU.

    `inputs` / `weights` are parallel lists: the result equals
    conv(concat(inputs, axis=1), concat(weights, axis=1)) + b, but the channel
    concat is never materialized (split-K accumulation in the kernel).
    Channel-first (K, M) im2col layout -> no transposes around the matmul.
    """
    N, _, D, H, W = inputs[0].shape
    Cout = weights[0].shape[0]
    M = D * H * W
    parts = []
    for x, w in zip(inputs, weights):
        C = x.shape[1]
        xp = jnp.pad(x.astype(jnp.bfloat16),
                     ((0, 0), (0, 0), (1, 1), (1, 1), (1, 1)))
        taps = []
        for dz in range(3):
            for dy in range(3):
                for dx in range(3):
                    taps.append(xp[:, :, dz:dz + D, dy:dy + H, dx:dx + W])
        col = jnp.stack(taps, axis=2).reshape(N, C * 27, M)   # (N, K, M)
        wm = w.reshape(Cout, C * 27).astype(jnp.bfloat16)     # (Cout, K)
        parts.append((col, wm))
    out = matmul_bias_act(parts, b, out_dtype, negative_slope)
    return out.reshape(N, Cout, D, H, W)


def conv3d_1x1(x, w, b):
    """1x1x1 conv (logits head), no activation.  x: (N,C,D,H,W) -> f32 logits."""
    N, C, D, H, W = x.shape
    Cout = w.shape[0]
    col = x.astype(jnp.bfloat16).reshape(N, C, D * H * W)
    wm = w.reshape(Cout, C).astype(jnp.bfloat16)
    out = matmul_bias_act([(col, wm)], b, jnp.float32, negative_slope=None)
    return out.reshape(N, Cout, D, H, W)


def upsample_nearest_2x(x):
    # TODO(synk): the original UNet may use trilinear F.interpolate; nearest used here.
    x = jnp.repeat(x, 2, axis=2)
    x = jnp.repeat(x, 2, axis=3)
    return jnp.repeat(x, 2, axis=4)


# ---------------------------------------------------------------------------
# Parameters + forward
# ---------------------------------------------------------------------------
def _conv_param(key, cout, cin, k):
    kw, kb = jax.random.split(key)
    fan_in = cin * k * k * k
    std = (2.0 / fan_in) ** 0.5
    w = std * jax.random.normal(kw, (cout, cin, k, k, k), jnp.float32)
    b = 0.01 * jax.random.normal(kb, (cout,), jnp.float32)
    return w, b


def init_params(key, in_channels, classes, channels_list):
    c0, c1, c2 = channels_list
    keys = jax.random.split(key, 8)
    w_d1, b_d1 = _conv_param(keys[3], c1, c2 + c1, 3)   # decoder conv on [up, skip]
    w_d0, b_d0 = _conv_param(keys[4], c0, c1 + c0, 3)
    return {
        "enc0": _conv_param(keys[0], c0, in_channels, 3),
        "enc1": _conv_param(keys[1], c1, c0, 3),
        "enc2": _conv_param(keys[2], c2, c1, 3),
        # split along input channels so the concat never has to be materialized
        "dec1": (w_d1[:, :c2], w_d1[:, c2:], b_d1),
        "dec0": (w_d0[:, :c1], w_d0[:, c1:], b_d0),
        "head_low": _conv_param(keys[5], classes, c2, 1),
        "head_mid": _conv_param(keys[6], classes, c1, 1),
        "head_high": _conv_param(keys[7], classes, c0, 1),
    }


def unet_forward(params, x):
    x = x.astype(jnp.bfloat16)
    # Encoder
    e0 = conv3d_3x3([x], [params["enc0"][0]], params["enc0"][1])   # (n, c0, D,   H,   W)
    p0 = avg_pool3d_2x(e0)
    e1 = conv3d_3x3([p0], [params["enc1"][0]], params["enc1"][1])  # (n, c1, D/2, H/2, W/2)
    p1 = avg_pool3d_2x(e1)
    e2 = conv3d_3x3([p1], [params["enc2"][0]], params["enc2"][1])  # (n, c2, D/4, H/4, W/4)
    # Multi-scale logits (decoder convs consume [upsampled, skip] without concat)
    logits_low = conv3d_1x1(e2, *params["head_low"])
    u1 = upsample_nearest_2x(e2)
    w_up1, w_sk1, b_d1 = params["dec1"]
    d1 = conv3d_3x3([u1, e1], [w_up1, w_sk1], b_d1)
    logits_mid = conv3d_1x1(d1, *params["head_mid"])
    u0 = upsample_nearest_2x(d1)
    w_up0, w_sk0, b_d0 = params["dec0"]
    d0 = conv3d_3x3([u0, e0], [w_up0, w_sk0], b_d0)
    logits_high = conv3d_1x1(d0, *params["head_high"])
    return [logits_low, logits_mid, logits_high]


def segnet_forward(params, fixed_image, moving_image=None, moving_label=None):
    # Mirrors the PyTorch reference exactly (including its unsqueeze behaviour).
    input_image = fixed_image
    if moving_image is not None:
        input_image = jnp.expand_dims(
            jnp.concatenate((input_image, moving_image), axis=1), 0)
    if moving_label is not None:
        input_image = jnp.expand_dims(
            jnp.concatenate((input_image, moving_label), axis=1), 0)
    logits_list = unet_forward(params, input_image)
    return {
        "logits_low": logits_list[0],
        "logits_mid": logits_list[1],
        "logits_high": logits_list[2],
    }


if __name__ == "__main__":
    key = jax.random.PRNGKey(0)
    kp, kx = jax.random.split(key)

    in_channels, classes, depth = 1, 5, 3
    channels_list = [4, 8, 16]          # len == depth
    n, D, H, W = 1, 16, 16, 16          # small 3D patch

    params = init_params(kp, in_channels, classes, channels_list)
    fixed_image = jax.random.normal(kx, (n, in_channels, D, H, W), jnp.float32)

    fwd = jax.jit(lambda p, x: segnet_forward(p, x))
    res = fwd(params, fixed_image)
    res = jax.block_until_ready(res)

    assert res["logits_high"].shape == (n, classes, D, H, W)
    assert res["logits_mid"].shape == (n, classes, D // 2, H // 2, W // 2)
    assert res["logits_low"].shape == (n, classes, D // 4, H // 4, W // 4)
    assert all(bool(jnp.isfinite(v.astype(jnp.float32)).all()) for v in res.values())
    print("KERNEL_OK")
</pallas_src>

<mosaic_0001>
module attributes {stable_mosaic.version = 11 : i64} {
  func.func @_mm_bias_act_kernel(%arg0: i32, %arg1: i32, %arg2: memref<1x27x512xbf16, #tpu.memory_space<vmem>>, %arg3: memref<4x27xbf16, #tpu.memory_space<vmem>>, %arg4: memref<4x1xf32, #tpu.memory_space<vmem>>, %arg5: memref<1x4x512xbf16, #tpu.memory_space<vmem>>) attributes {dimension_semantics = [#tpu.dimension_semantics<parallel>, #tpu.dimension_semantics<parallel>], iteration_bounds = array<i64: 1, 8>, scalar_prefetch = 0 : i64, scratch_operands = 0 : i64, tpu.core_type = #tpu.core_type<tc>, window_params = [{transform_indices = @transform_0, window_bounds = array<i64: 1, 27, 512>}, {pipeline_mode = #tpu.pipeline_mode<synchronous>, transform_indices = @transform_1, window_bounds = array<i64: 4, 27>}, {pipeline_mode = #tpu.pipeline_mode<synchronous>, transform_indices = @transform_2, window_bounds = array<i64: 4, 1>}, {transform_indices = @transform_3, window_bounds = array<i64: 1, 4, 512>}]} {
    %c0 = arith.constant 0 : index
    %c0_0 = arith.constant 0 : index
    %0 = vector.load %arg4[%c0, %c0_0] : memref<4x1xf32, #tpu.memory_space<vmem>>, vector<4x1xf32>
    %c0_1 = arith.constant 0 : index
    %c0_2 = arith.constant 0 : index
    %1 = vector.load %arg3[%c0_1, %c0_2] : memref<4x27xbf16, #tpu.memory_space<vmem>>, vector<4x27xbf16>
    %c0_3 = arith.constant 0 : index
    %c0_4 = arith.constant 0 : index
    %c0_5 = arith.constant 0 : index
    %2 = vector.load %arg2[%c0_3, %c0_4, %c0_5] : memref<1x27x512xbf16, #tpu.memory_space<vmem>>, vector<1x27x512xbf16>
    %3 = vector.shape_cast %2 : vector<1x27x512xbf16> to vector<27x512xbf16>
    %cst = arith.constant dense<0.000000e+00> : vector<4x512xf32>
    %4 = tpu.matmul %1, %3, %cst {dimension_numbers = #tpu.dot_dimension_numbers<[1], [0], [0], [1], [0, 0, 1, 1], [], []>} : vector<4x27xbf16>, vector<27x512xbf16>, vector<4x512xf32> -> vector<4x512xf32>
    %5 = vector.broadcast %0 : vector<4x1xf32> to vector<4x512xf32>
    %6 = arith.addf %5, %4 : vector<4x512xf32>
    %cst_6 = arith.constant 0.000000e+00 : f32
    %7 = vector.broadcast %cst_6 : f32 to vector<4x512xf32>
    %8 = arith.cmpf oge, %6, %7 : vector<4x512xf32>
    %cst_7 = arith.constant 2.000000e-01 : f32
    %9 = vector.broadcast %cst_7 : f32 to vector<4x512xf32>
    %10 = arith.mulf %9, %6 : vector<4x512xf32>
    %11 = arith.select %8, %6, %10 : vector<4x512xi1>, vector<4x512xf32>
    %12 = arith.truncf %11 : vector<4x512xf32> to vector<4x512xbf16>
    %c0_8 = arith.constant 0 : index
    %c0_9 = arith.constant 0 : index
    %c0_10 = arith.constant 0 : index
    %13 = vector.load %arg5[%c0_8, %c0_9, %c0_10] : memref<1x4x512xbf16, #tpu.memory_space<vmem>>, vector<1x4x512xbf16>
    %14 = vector.shape_cast %13 : vector<1x4x512xbf16> to vector<4x512xbf16>
    %15 = vector.shape_cast %12 : vector<4x512xbf16> to vector<1x4x512xbf16>
    tpu.vector_store %arg5[%c0_8, %c0_9, %c0_10], %15 {strides = array<i32>} : memref<1x4x512xbf16, #tpu.memory_space<vmem>>, vector<1x4x512xbf16>,
    return
  }
  func.func @transform_0(%arg0: i32, %arg1: i32) -> (i32, i32, i32) {
    %c0_i32 = arith.constant 0 : i32
    %c0_i32_0 = arith.constant 0 : i32
    return %arg0, %c0_i32, %arg1 : i32, i32, i32
  }
  func.func @transform_1(%arg0: i32, %arg1: i32) -> (i32, i32) {
    %c0_i32 = arith.constant 0 : i32
    %c0_i32_0 = arith.constant 0 : i32
    %c0_i32_1 = arith.constant 0 : i32
    return %c0_i32, %c0_i32_0 : i32, i32
  }
  func.func @transform_2(%arg0: i32, %arg1: i32) -> (i32, i32) {
    %c0_i32 = arith.constant 0 : i32
    %c0_i32_0 = arith.constant 0 : i32
    %c0_i32_1 = arith.constant 0 : i32
    return %c0_i32, %c0_i32_0 : i32, i32
  }
  func.func @transform_3(%arg0: i32, %arg1: i32) -> (i32, i32, i32) {
    %c0_i32 = arith.constant 0 : i32
    %c0_i32_0 = arith.constant 0 : i32
    return %arg0, %c0_i32, %arg1 : i32, i32, i32
  }
}

module attributes {stable_mosaic.version = 11 : i64} {
  func.func @_zpool_kernel(%arg0: i32, %arg1: memref<32x2x64xbf16, #tpu.memory_space<vmem>>, %arg2: memref<32x64xbf16, #tpu.memory_space<vmem>>) attributes {dimension_semantics = [#tpu.dimension_semantics<parallel>], iteration_bounds = array<i64: 1>, scalar_prefetch = 0 : i64, scratch_operands = 0 : i64, tpu.core_type = #tpu.core_type<tc>, window_params = [{transform_indices = @transform_0, window_bounds = array<i64: 32, 2, 64>}, {transform_indices = @transform_1, window_bounds = array<i64: 32, 64>}]} {
    %c0 = arith.constant 0 : index
    %c0_0 = arith.constant 0 : index
    %c0_1 = arith.constant 0 : index
    %0 = vector.load %arg1[%c0, %c0_0, %c0_1] : memref<32x2x64xbf16, #tpu.memory_space<vmem>>, vector<32x1x64xbf16>
    %1 = vector.shape_cast %0 : vector<32x1x64xbf16> to vector<32x64xbf16>
    %2 = arith.extf %1 : vector<32x64xbf16> to vector<32x64xf32>
    %c0_2 = arith.constant 0 : index
    %c1 = arith.constant 1 : index
    %c0_3 = arith.constant 0 : index
    %3 = vector.load %arg1[%c0_2, %c1, %c0_3] : memref<32x2x64xbf16, #tpu.memory_space<vmem>>, vector<32x1x64xbf16>
    %4 = vector.shape_cast %3 : vector<32x1x64xbf16> to vector<32x64xbf16>
    %5 = arith.extf %4 : vector<32x64xbf16> to vector<32x64xf32>
    %6 = arith.addf %2, %5 : vector<32x64xf32>
    %cst = arith.constant 1.250000e-01 : f32
    %7 = vector.broadcast %cst : f32 to vector<32x64xf32>
    %8 = arith.mulf %6, %7 : vector<32x64xf32>
    %9 = arith.truncf %8 : vector<32x64xf32> to vector<32x64xbf16>
    %c0_4 = arith.constant 0 : index
    %c0_5 = arith.constant 0 : index
    %10 = vector.load %arg2[%c0_4, %c0_5] : memref<32x64xbf16, #tpu.memory_space<vmem>>, vector<32x64xbf16>
    tpu.vector_store %arg2[%c0_4, %c0_5], %9 {strides = array<i32>} : memref<32x64xbf16, #tpu.memory_space<vmem>>, vector<32x64xbf16>,
    return
  }
  func.func @transform_0(%arg0: i32) -> (i32, i32, i32) {
    %c0_i32 = arith.constant 0 : i32
    %c0_i32_0 = arith.constant 0 : i32
    %c0_i32_1 = arith.constant 0 : i32
    return %arg0, %c0_i32, %c0_i32_0 : i32, i32, i32
  }
  func.func @transform_1(%arg0: i32) -> (i32, i32) {
    %c0_i32 = arith.constant 0 : i32
    %c0_i32_0 = arith.constant 0 : i32
    return %arg0, %c0_i32 : i32, i32
  }
}

module attributes {stable_mosaic.version = 11 : i64} {
  func.func @_mm_bias_act_kernel(%arg0: i32, %arg1: i32, %arg2: memref<1x108x512xbf16, #tpu.memory_space<vmem>>, %arg3: memref<8x108xbf16, #tpu.memory_space<vmem>>, %arg4: memref<8x1xf32, #tpu.memory_space<vmem>>, %arg5: memref<1x8x512xbf16, #tpu.memory_space<vmem>>) attributes {dimension_semantics = [#tpu.dimension_semantics<parallel>, #tpu.dimension_semantics<parallel>], iteration_bounds = array<i64: 1, 1>, scalar_prefetch = 0 : i64, scratch_operands = 0 : i64, tpu.core_type = #tpu.core_type<tc>, window_params = [{transform_indices = @transform_0, window_bounds = array<i64: 1, 108, 512>}, {pipeline_mode = #tpu.pipeline_mode<synchronous>, transform_indices = @transform_1, window_bounds = array<i64: 8, 108>}, {pipeline_mode = #tpu.pipeline_mode<synchronous>, transform_indices = @transform_2, window_bounds = array<i64: 8, 1>}, {transform_indices = @transform_3, window_bounds = array<i64: 1, 8, 512>}]} {
    %c0 = arith.constant 0 : index
    %c0_0 = arith.constant 0 : index
    %0 = vector.load %arg4[%c0, %c0_0] : memref<8x1xf32, #tpu.memory_space<vmem>>, vector<8x1xf32>
    %c0_1 = arith.constant 0 : index
    %c0_2 = arith.constant 0 : index
    %1 = vector.load %arg3[%c0_1, %c0_2] : memref<8x108xbf16, #tpu.memory_space<vmem>>, vector<8x108xbf16>
    %c0_3 = arith.constant 0 : index
    %c0_4 = arith.constant 0 : index
    %c0_5 = arith.constant 0 : index
    %2 = vector.load %arg2[%c0_3, %c0_4, %c0_5] : memref<1x108x512xbf16, #tpu.memory_space<vmem>>, vector<1x108x512xbf16>
    %3 = vector.shape_cast %2 : vector<1x108x512xbf16> to vector<108x512xbf16>
    %cst = arith.constant dense<0.000000e+00> : vector<8x512xf32>
    %4 = tpu.matmul %1, %3, %cst {dimension_numbers = #tpu.dot_dimension_numbers<[1], [0], [0], [1], [0, 0, 1, 1], [], []>} : vector<8x108xbf16>, vector<108x512xbf16>, vector<8x512xf32> -> vector<8x512xf32>
    %5 = vector.broadcast %0 : vector<8x1xf32> to vector<8x512xf32>
    %6 = arith.addf %5, %4 : vector<8x512xf32>
    %cst_6 = arith.constant 0.000000e+00 : f32
    %7 = vector.broadcast %cst_6 : f32 to vector<8x512xf32>
    %8 = arith.cmpf oge, %6, %7 : vector<8x512xf32>
    %cst_7 = arith.constant 2.000000e-01 : f32
    %9 = vector.broadcast %cst_7 : f32 to vector<8x512xf32>
    %10 = arith.mulf %9, %6 : vector<8x512xf32>
    %11 = arith.select %8, %6, %10 : vector<8x512xi1>, vector<8x512xf32>
    %12 = arith.truncf %11 : vector<8x512xf32> to vector<8x512xbf16>
    %c0_8 = arith.constant 0 : index
    %c0_9 = arith.constant 0 : index
    %c0_10 = arith.constant 0 : index
    %13 = vector.load %arg5[%c0_8, %c0_9, %c0_10] : memref<1x8x512xbf16, #tpu.memory_space<vmem>>, vector<1x8x512xbf16>
    %14 = vector.shape_cast %13 : vector<1x8x512xbf16> to vector<8x512xbf16>
    %15 = vector.shape_cast %12 : vector<8x512xbf16> to vector<1x8x512xbf16>
    tpu.vector_store %arg5[%c0_8, %c0_9, %c0_10], %15 {strides = array<i32>} : memref<1x8x512xbf16, #tpu.memory_space<vmem>>, vector<1x8x512xbf16>,
    return
  }
  func.func @transform_0(%arg0: i32, %arg1: i32) -> (i32, i32, i32) {
    %c0_i32 = arith.constant 0 : i32
    %c0_i32_0 = arith.constant 0 : i32
    return %arg0, %c0_i32, %arg1 : i32, i32, i32
  }
  func.func @transform_1(%arg0: i32, %arg1: i32) -> (i32, i32) {
    %c0_i32 = arith.constant 0 : i32
    %c0_i32_0 = arith.constant 0 : i32
    %c0_i32_1 = arith.constant 0 : i32
    return %c0_i32, %c0_i32_0 : i32, i32
  }
  func.func @transform_2(%arg0: i32, %arg1: i32) -> (i32, i32) {
    %c0_i32 = arith.constant 0 : i32
    %c0_i32_0 = arith.constant 0 : i32
    %c0_i32_1 = arith.constant 0 : i32
    return %c0_i32, %c0_i32_0 : i32, i32
  }
  func.func @transform_3(%arg0: i32, %arg1: i32) -> (i32, i32, i32) {
    %c0_i32 = arith.constant 0 : i32
    %c0_i32_0 = arith.constant 0 : i32
    return %arg0, %c0_i32, %arg1 : i32, i32, i32
  }
}

module attributes {stable_mosaic.version = 11 : i64} {
  func.func @_zpool_kernel(%arg0: i32, %arg1: memref<32x2x16xbf16, #tpu.memory_space<vmem>>, %arg2: memref<32x16xbf16, #tpu.memory_space<vmem>>) attributes {dimension_semantics = [#tpu.dimension_semantics<parallel>], iteration_bounds = array<i64: 1>, scalar_prefetch = 0 : i64, scratch_operands = 0 : i64, tpu.core_type = #tpu.core_type<tc>, window_params = [{transform_indices = @transform_0, window_bounds = array<i64: 32, 2, 16>}, {transform_indices = @transform_1, window_bounds = array<i64: 32, 16>}]} {
    %c0 = arith.constant 0 : index
    %c0_0 = arith.constant 0 : index
    %c0_1 = arith.constant 0 : index
    %0 = vector.load %arg1[%c0, %c0_0, %c0_1] : memref<32x2x16xbf16, #tpu.memory_space<vmem>>, vector<32x1x16xbf16>
    %1 = vector.shape_cast %0 : vector<32x1x16xbf16> to vector<32x16xbf16>
    %2 = arith.extf %1 : vector<32x16xbf16> to vector<32x16xf32>
    %c0_2 = arith.constant 0 : index
    %c1 = arith.constant 1 : index
    %c0_3 = arith.constant 0 : index
    %3 = vector.load %arg1[%c0_2, %c1, %c0_3] : memref<32x2x16xbf16, #tpu.memory_space<vmem>>, vector<32x1x16xbf16>
    %4 = vector.shape_cast %3 : vector<32x1x16xbf16> to vector<32x16xbf16>
    %5 = arith.extf %4 : vector<32x16xbf16> to vector<32x16xf32>
    %6 = arith.addf %2, %5 : vector<32x16xf32>
    %cst = arith.constant 1.250000e-01 : f32
    %7 = vector.broadcast %cst : f32 to vector<32x16xf32>
    %8 = arith.mulf %6, %7 : vector<32x16xf32>
    %9 = arith.truncf %8 : vector<32x16xf32> to vector<32x16xbf16>
    %c0_4 = arith.constant 0 : index
    %c0_5 = arith.constant 0 : index
    %10 = vector.load %arg2[%c0_4, %c0_5] : memref<32x16xbf16, #tpu.memory_space<vmem>>, vector<32x16xbf16>
    tpu.vector_store %arg2[%c0_4, %c0_5], %9 {strides = array<i32>} : memref<32x16xbf16, #tpu.memory_space<vmem>>, vector<32x16xbf16>,
    return
  }
  func.func @transform_0(%arg0: i32) -> (i32, i32, i32) {
    %c0_i32 = arith.constant 0 : i32
    %c0_i32_0 = arith.constant 0 : i32
    %c0_i32_1 = arith.constant 0 : i32
    return %arg0, %c0_i32, %c0_i32_0 : i32, i32, i32
  }
  func.func @transform_1(%arg0: i32) -> (i32, i32) {
    %c0_i32 = arith.constant 0 : i32
    %c0_i32_0 = arith.constant 0 : i32
    return %arg0, %c0_i32 : i32, i32
  }
}

module attributes {stable_mosaic.version = 11 : i64} {
  func.func @_mm_bias_act_kernel(%arg0: i32, %arg1: i32, %arg2: memref<1x216x128xbf16, #tpu.memory_space<vmem>>, %arg3: memref<16x216xbf16, #tpu.memory_space<vmem>>, %arg4: memref<16x1xf32, #tpu.memory_space<vmem>>, %arg5: memref<1x16x128xbf16, #tpu.memory_space<vmem>>) attributes {dimension_semantics = [#tpu.dimension_semantics<parallel>, #tpu.dimension_semantics<parallel>], iteration_bounds = array<i64: 1, 1>, scalar_prefetch = 0 : i64, scratch_operands = 0 : i64, tpu.core_type = #tpu.core_type<tc>, window_params = [{transform_indices = @transform_0, window_bounds = array<i64: 1, 216, 128>}, {pipeline_mode = #tpu.pipeline_mode<synchronous>, transform_indices = @transform_1, window_bounds = array<i64: 16, 216>}, {pipeline_mode = #tpu.pipeline_mode<synchronous>, transform_indices = @transform_2, window_bounds = array<i64: 16, 1>}, {transform_indices = @transform_3, window_bounds = array<i64: 1, 16, 128>}]} {
    %c0 = arith.constant 0 : index
    %c0_0 = arith.constant 0 : index
    %0 = vector.load %arg4[%c0, %c0_0] : memref<16x1xf32, #tpu.memory_space<vmem>>, vector<16x1xf32>
    %c0_1 = arith.constant 0 : index
    %c0_2 = arith.constant 0 : index
    %1 = vector.load %arg3[%c0_1, %c0_2] : memref<16x216xbf16, #tpu.memory_space<vmem>>, vector<16x216xbf16>
    %c0_3 = arith.constant 0 : index
    %c0_4 = arith.constant 0 : index
    %c0_5 = arith.constant 0 : index
    %2 = vector.load %arg2[%c0_3, %c0_4, %c0_5] : memref<1x216x128xbf16, #tpu.memory_space<vmem>>, vector<1x216x128xbf16>
    %3 = vector.shape_cast %2 : vector<1x216x128xbf16> to vector<216x128xbf16>
    %cst = arith.constant dense<0.000000e+00> : vector<16x128xf32>
    %4 = tpu.matmul %1, %3, %cst {dimension_numbers = #tpu.dot_dimension_numbers<[1], [0], [0], [1], [0, 0, 1, 1], [], []>} : vector<16x216xbf16>, vector<216x128xbf16>, vector<16x128xf32> -> vector<16x128xf32>
    %5 = vector.broadcast %0 : vector<16x1xf32> to vector<16x128xf32>
    %6 = arith.addf %5, %4 : vector<16x128xf32>
    %cst_6 = arith.constant 0.000000e+00 : f32
    %7 = vector.broadcast %cst_6 : f32 to vector<16x128xf32>
    %8 = arith.cmpf oge, %6, %7 : vector<16x128xf32>
    %cst_7 = arith.constant 2.000000e-01 : f32
    %9 = vector.broadcast %cst_7 : f32 to vector<16x128xf32>
    %10 = arith.mulf %9, %6 : vector<16x128xf32>
    %11 = arith.select %8, %6, %10 : vector<16x128xi1>, vector<16x128xf32>
    %12 = arith.truncf %11 : vector<16x128xf32> to vector<16x128xbf16>
    %c0_8 = arith.constant 0 : index
    %c0_9 = arith.constant 0 : index
    %c0_10 = arith.constant 0 : index
    %13 = vector.load %arg5[%c0_8, %c0_9, %c0_10] : memref<1x16x128xbf16, #tpu.memory_space<vmem>>, vector<1x16x128xbf16>
    %14 = vector.shape_cast %13 : vector<1x16x128xbf16> to vector<16x128xbf16>
    %15 = vector.shape_cast %12 : vector<16x128xbf16> to vector<1x16x128xbf16>
    tpu.vector_store %arg5[%c0_8, %c0_9, %c0_10], %15 {strides = array<i32>} : memref<1x16x128xbf16, #tpu.memory_space<vmem>>, vector<1x16x128xbf16>,
    return
  }
  func.func @transform_0(%arg0: i32, %arg1: i32) -> (i32, i32, i32) {
    %c0_i32 = arith.constant 0 : i32
    %c0_i32_0 = arith.constant 0 : i32
    return %arg0, %c0_i32, %arg1 : i32, i32, i32
  }
  func.func @transform_1(%arg0: i32, %arg1: i32) -> (i32, i32) {
    %c0_i32 = arith.constant 0 : i32
    %c0_i32_0 = arith.constant 0 : i32
    %c0_i32_1 = arith.constant 0 : i32
    return %c0_i32, %c0_i32_0 : i32, i32
  }
  func.func @transform_2(%arg0: i32, %arg1: i32) -> (i32, i32) {
    %c0_i32 = arith.constant 0 : i32
    %c0_i32_0 = arith.constant 0 : i32
    %c0_i32_1 = arith.constant 0 : i32
    return %c0_i32, %c0_i32_0 : i32, i32
  }
  func.func @transform_3(%arg0: i32, %arg1: i32) -> (i32, i32, i32) {
    %c0_i32 = arith.constant 0 : i32
    %c0_i32_0 = arith.constant 0 : i32
    return %arg0, %c0_i32, %arg1 : i32, i32, i32
  }
}

module attributes {stable_mosaic.version = 11 : i64} {
  func.func @_mm_bias_act_kernel(%arg0: i32, %arg1: i32, %arg2: memref<1x432x512xbf16, #tpu.memory_space<vmem>>, %arg3: memref<8x432xbf16, #tpu.memory_space<vmem>>, %arg4: memref<1x216x512xbf16, #tpu.memory_space<vmem>>, %arg5: memref<8x216xbf16, #tpu.memory_space<vmem>>, %arg6: memref<8x1xf32, #tpu.memory_space<vmem>>, %arg7: memref<1x8x512xbf16, #tpu.memory_space<vmem>>) attributes {dimension_semantics = [#tpu.dimension_semantics<parallel>, #tpu.dimension_semantics<parallel>], iteration_bounds = array<i64: 1, 1>, scalar_prefetch = 0 : i64, scratch_operands = 0 : i64, tpu.core_type = #tpu.core_type<tc>, window_params = [{transform_indices = @transform_0, window_bounds = array<i64: 1, 432, 512>}, {pipeline_mode = #tpu.pipeline_mode<synchronous>, transform_indices = @transform_1, window_bounds = array<i64: 8, 432>}, {transform_indices = @transform_2, window_bounds = array<i64: 1, 216, 512>}, {pipeline_mode = #tpu.pipeline_mode<synchronous>, transform_indices = @transform_3, window_bounds = array<i64: 8, 216>}, {pipeline_mode = #tpu.pipeline_mode<synchronous>, transform_indices = @transform_4, window_bounds = array<i64: 8, 1>}, {transform_indices = @transform_5, window_bounds = array<i64: 1, 8, 512>}]} {
    %c0 = arith.constant 0 : index
    %c0_0 = arith.constant 0 : index
    %0 = vector.load %arg6[%c0, %c0_0] : memref<8x1xf32, #tpu.memory_space<vmem>>, vector<8x1xf32>
    %c0_1 = arith.constant 0 : index
    %c0_2 = arith.constant 0 : index
    %1 = vector.load %arg3[%c0_1, %c0_2] : memref<8x432xbf16, #tpu.memory_space<vmem>>, vector<8x432xbf16>
    %c0_3 = arith.constant 0 : index
    %c0_4 = arith.constant 0 : index
    %c0_5 = arith.constant 0 : index
    %2 = vector.load %arg2[%c0_3, %c0_4, %c0_5] : memref<1x432x512xbf16, #tpu.memory_space<vmem>>, vector<1x432x512xbf16>
    %3 = vector.shape_cast %2 : vector<1x432x512xbf16> to vector<432x512xbf16>
    %cst = arith.constant dense<0.000000e+00> : vector<8x512xf32>
    %4 = tpu.matmul %1, %3, %cst {dimension_numbers = #tpu.dot_dimension_numbers<[1], [0], [0], [1], [0, 0, 1, 1], [], []>} : vector<8x432xbf16>, vector<432x512xbf16>, vector<8x512xf32> -> vector<8x512xf32>
    %5 = vector.broadcast %0 : vector<8x1xf32> to vector<8x512xf32>
    %6 = arith.addf %5, %4 : vector<8x512xf32>
    %c0_6 = arith.constant 0 : index
    %c0_7 = arith.constant 0 : index
    %7 = vector.load %arg5[%c0_6, %c0_7] : memref<8x216xbf16, #tpu.memory_space<vmem>>, vector<8x216xbf16>
    %c0_8 = arith.constant 0 : index
    %c0_9 = arith.constant 0 : index
    %c0_10 = arith.constant 0 : index
    %8 = vector.load %arg4[%c0_8, %c0_9, %c0_10] : memref<1x216x512xbf16, #tpu.memory_space<vmem>>, vector<1x216x512xbf16>
    %9 = vector.shape_cast %8 : vector<1x216x512xbf16> to vector<216x512xbf16>
    %cst_11 = arith.constant dense<0.000000e+00> : vector<8x512xf32>
    %10 = tpu.matmul %7, %9, %cst_11 {dimension_numbers = #tpu.dot_dimension_numbers<[1], [0], [0], [1], [0, 0, 1, 1], [], []>} : vector<8x216xbf16>, vector<216x512xbf16>, vector<8x512xf32> -> vector<8x512xf32>
    %11 = arith.addf %6, %10 : vector<8x512xf32>
    %cst_12 = arith.constant 0.000000e+00 : f32
    %12 = vector.broadcast %cst_12 : f32 to vector<8x512xf32>
    %13 = arith.cmpf oge, %11, %12 : vector<8x512xf32>
    %cst_13 = arith.constant 2.000000e-01 : f32
    %14 = vector.broadcast %cst_13 : f32 to vector<8x512xf32>
    %15 = arith.mulf %14, %11 : vector<8x512xf32>
    %16 = arith.select %13, %11, %15 : vector<8x512xi1>, vector<8x512xf32>
    %17 = arith.truncf %16 : vector<8x512xf32> to vector<8x512xbf16>
    %c0_14 = arith.constant 0 : index
    %c0_15 = arith.constant 0 : index
    %c0_16 = arith.constant 0 : index
    %18 = vector.load %arg7[%c0_14, %c0_15, %c0_16] : memref<1x8x512xbf16, #tpu.memory_space<vmem>>, vector<1x8x512xbf16>
    %19 = vector.shape_cast %18 : vector<1x8x512xbf16> to vector<8x512xbf16>
    %20 = vector.shape_cast %17 : vector<8x512xbf16> to vector<1x8x512xbf16>
    tpu.vector_store %arg7[%c0_14, %c0_15, %c0_16], %20 {strides = array<i32>} : memref<1x8x512xbf16, #tpu.memory_space<vmem>>, vector<1x8x512xbf16>,
    return
  }
  func.func @transform_0(%arg0: i32, %arg1: i32) -> (i32, i32, i32) {
    %c0_i32 = arith.constant 0 : i32
    %c0_i32_0 = arith.constant 0 : i32
    return %arg0, %c0_i32, %arg1 : i32, i32, i32
  }
  func.func @transform_1(%arg0: i32, %arg1: i32) -> (i32, i32) {
    %c0_i32 = arith.constant 0 : i32
    %c0_i32_0 = arith.constant 0 : i32
    %c0_i32_1 = arith.constant 0 : i32
    return %c0_i32, %c0_i32_0 : i32, i32
  }
  func.func @transform_2(%arg0: i32, %arg1: i32) -> (i32, i32, i32) {
    %c0_i32 = arith.constant 0 : i32
    %c0_i32_0 = arith.constant 0 : i32
    return %arg0, %c0_i32, %arg1 : i32, i32, i32
  }
  func.func @transform_3(%arg0: i32, %arg1: i32) -> (i32, i32) {
    %c0_i32 = arith.constant 0 : i32
    %c0_i32_0 = arith.constant 0 : i32
    %c0_i32_1 = arith.constant 0 : i32
    return %c0_i32, %c0_i32_0 : i32, i32
  }
  func.func @transform_4(%arg0: i32, %arg1: i32) -> (i32, i32) {
    %c0_i32 = arith.constant 0 : i32
    %c0_i32_0 = arith.constant 0 : i32
    %c0_i32_1 = arith.constant 0 : i32
    return %c0_i32, %c0_i32_0 : i32, i32
  }
  func.func @transform_5(%arg0: i32, %arg1: i32) -> (i32, i32, i32) {
    %c0_i32 = arith.constant 0 : i32
    %c0_i32_0 = arith.constant 0 : i32
    return %arg0, %c0_i32, %arg1 : i32, i32, i32
  }
}

module attributes {stable_mosaic.version = 11 : i64} {
  func.func @_mm_bias_act_kernel(%arg0: i32, %arg1: i32, %arg2: memref<1x216x512xbf16, #tpu.memory_space<vmem>>, %arg3: memref<4x216xbf16, #tpu.memory_space<vmem>>, %arg4: memref<1x108x512xbf16, #tpu.memory_space<vmem>>, %arg5: memref<4x108xbf16, #tpu.memory_space<vmem>>, %arg6: memref<4x1xf32, #tpu.memory_space<vmem>>, %arg7: memref<1x4x512xbf16, #tpu.memory_space<vmem>>) attributes {dimension_semantics = [#tpu.dimension_semantics<parallel>, #tpu.dimension_semantics<parallel>], iteration_bounds = array<i64: 1, 8>, scalar_prefetch = 0 : i64, scratch_operands = 0 : i64, tpu.core_type = #tpu.core_type<tc>, window_params = [{transform_indices = @transform_0, window_bounds = array<i64: 1, 216, 512>}, {pipeline_mode = #tpu.pipeline_mode<synchronous>, transform_indices = @transform_1, window_bounds = array<i64: 4, 216>}, {transform_indices = @transform_2, window_bounds = array<i64: 1, 108, 512>}, {pipeline_mode = #tpu.pipeline_mode<synchronous>, transform_indices = @transform_3, window_bounds = array<i64: 4, 108>}, {pipeline_mode = #tpu.pipeline_mode<synchronous>, transform_indices = @transform_4, window_bounds = array<i64: 4, 1>}, {transform_indices = @transform_5, window_bounds = array<i64: 1, 4, 512>}]} {
    %c0 = arith.constant 0 : index
    %c0_0 = arith.constant 0 : index
    %0 = vector.load %arg6[%c0, %c0_0] : memref<4x1xf32, #tpu.memory_space<vmem>>, vector<4x1xf32>
    %c0_1 = arith.constant 0 : index
    %c0_2 = arith.constant 0 : index
    %1 = vector.load %arg3[%c0_1, %c0_2] : memref<4x216xbf16, #tpu.memory_space<vmem>>, vector<4x216xbf16>
    %c0_3 = arith.constant 0 : index
    %c0_4 = arith.constant 0 : index
    %c0_5 = arith.constant 0 : index
    %2 = vector.load %arg2[%c0_3, %c0_4, %c0_5] : memref<1x216x512xbf16, #tpu.memory_space<vmem>>, vector<1x216x512xbf16>
    %3 = vector.shape_cast %2 : vector<1x216x512xbf16> to vector<216x512xbf16>
    %cst = arith.constant dense<0.000000e+00> : vector<4x512xf32>
    %4 = tpu.matmul %1, %3, %cst {dimension_numbers = #tpu.dot_dimension_numbers<[1], [0], [0], [1], [0, 0, 1, 1], [], []>} : vector<4x216xbf16>, vector<216x512xbf16>, vector<4x512xf32> -> vector<4x512xf32>
    %5 = vector.broadcast %0 : vector<4x1xf32> to vector<4x512xf32>
    %6 = arith.addf %5, %4 : vector<4x512xf32>
    %c0_6 = arith.constant 0 : index
    %c0_7 = arith.constant 0 : index
    %7 = vector.load %arg5[%c0_6, %c0_7] : memref<4x108xbf16, #tpu.memory_space<vmem>>, vector<4x108xbf16>
    %c0_8 = arith.constant 0 : index
    %c0_9 = arith.constant 0 : index
    %c0_10 = arith.constant 0 : index
    %8 = vector.load %arg4[%c0_8, %c0_9, %c0_10] : memref<1x108x512xbf16, #tpu.memory_space<vmem>>, vector<1x108x512xbf16>
    %9 = vector.shape_cast %8 : vector<1x108x512xbf16> to vector<108x512xbf16>
    %cst_11 = arith.constant dense<0.000000e+00> : vector<4x512xf32>
    %10 = tpu.matmul %7, %9, %cst_11 {dimension_numbers = #tpu.dot_dimension_numbers<[1], [0], [0], [1], [0, 0, 1, 1], [], []>} : vector<4x108xbf16>, vector<108x512xbf16>, vector<4x512xf32> -> vector<4x512xf32>
    %11 = arith.addf %6, %10 : vector<4x512xf32>
    %cst_12 = arith.constant 0.000000e+00 : f32
    %12 = vector.broadcast %cst_12 : f32 to vector<4x512xf32>
    %13 = arith.cmpf oge, %11, %12 : vector<4x512xf32>
    %cst_13 = arith.constant 2.000000e-01 : f32
    %14 = vector.broadcast %cst_13 : f32 to vector<4x512xf32>
    %15 = arith.mulf %14, %11 : vector<4x512xf32>
    %16 = arith.select %13, %11, %15 : vector<4x512xi1>, vector<4x512xf32>
    %17 = arith.truncf %16 : vector<4x512xf32> to vector<4x512xbf16>
    %c0_14 = arith.constant 0 : index
    %c0_15 = arith.constant 0 : index
    %c0_16 = arith.constant 0 : index
    %18 = vector.load %arg7[%c0_14, %c0_15, %c0_16] : memref<1x4x512xbf16, #tpu.memory_space<vmem>>, vector<1x4x512xbf16>
    %19 = vector.shape_cast %18 : vector<1x4x512xbf16> to vector<4x512xbf16>
    %20 = vector.shape_cast %17 : vector<4x512xbf16> to vector<1x4x512xbf16>
    tpu.vector_store %arg7[%c0_14, %c0_15, %c0_16], %20 {strides = array<i32>} : memref<1x4x512xbf16, #tpu.memory_space<vmem>>, vector<1x4x512xbf16>,
    return
  }
  func.func @transform_0(%arg0: i32, %arg1: i32) -> (i32, i32, i32) {
    %c0_i32 = arith.constant 0 : i32
    %c0_i32_0 = arith.constant 0 : i32
    return %arg0, %c0_i32, %arg1 : i32, i32, i32
  }
  func.func @transform_1(%arg0: i32, %arg1: i32) -> (i32, i32) {
    %c0_i32 = arith.constant 0 : i32
    %c0_i32_0 = arith.constant 0 : i32
    %c0_i32_1 = arith.constant 0 : i32
    return %c0_i32, %c0_i32_0 : i32, i32
  }
  func.func @transform_2(%arg0: i32, %arg1: i32) -> (i32, i32, i32) {
    %c0_i32 = arith.constant 0 : i32
    %c0_i32_0 = arith.constant 0 : i32
    return %arg0, %c0_i32, %arg1 : i32, i32, i32
  }
  func.func @transform_3(%arg0: i32, %arg1: i32) -> (i32, i32) {
    %c0_i32 = arith.constant 0 : i32
    %c0_i32_0 = arith.constant 0 : i32
    %c0_i32_1 = arith.constant 0 : i32
    return %c0_i32, %c0_i32_0 : i32, i32
  }
  func.func @transform_4(%arg0: i32, %arg1: i32) -> (i32, i32) {
    %c0_i32 = arith.constant 0 : i32
    %c0_i32_0 = arith.constant 0 : i32
    %c0_i32_1 = arith.constant 0 : i32
    return %c0_i32, %c0_i32_0 : i32, i32
  }
  func.func @transform_5(%arg0: i32, %arg1: i32) -> (i32, i32, i32) {
    %c0_i32 = arith.constant 0 : i32
    %c0_i32_0 = arith.constant 0 : i32
    return %arg0, %c0_i32, %arg1 : i32, i32, i32
  }
}

module attributes {stable_mosaic.version = 11 : i64} {
  func.func @_mm_bias_act_kernel(%arg0: i32, %arg1: i32, %arg2: memref<1x4x512xbf16, #tpu.memory_space<vmem>>, %arg3: memref<5x4xbf16, #tpu.memory_space<vmem>>, %arg4: memref<5x1xf32, #tpu.memory_space<vmem>>, %arg5: memref<1x5x512xf32, #tpu.memory_space<vmem>>) attributes {dimension_semantics = [#tpu.dimension_semantics<parallel>, #tpu.dimension_semantics<parallel>], iteration_bounds = array<i64: 1, 8>, scalar_prefetch = 0 : i64, scratch_operands = 0 : i64, tpu.core_type = #tpu.core_type<tc>, window_params = [{transform_indices = @transform_0, window_bounds = array<i64: 1, 4, 512>}, {pipeline_mode = #tpu.pipeline_mode<synchronous>, transform_indices = @transform_1, window_bounds = array<i64: 5, 4>}, {pipeline_mode = #tpu.pipeline_mode<synchronous>, transform_indices = @transform_2, window_bounds = array<i64: 5, 1>}, {transform_indices = @transform_3, window_bounds = array<i64: 1, 5, 512>}]} {
    %c0 = arith.constant 0 : index
    %c0_0 = arith.constant 0 : index
    %0 = vector.load %arg4[%c0, %c0_0] : memref<5x1xf32, #tpu.memory_space<vmem>>, vector<5x1xf32>
    %c0_1 = arith.constant 0 : index
    %c0_2 = arith.constant 0 : index
    %1 = vector.load %arg3[%c0_1, %c0_2] : memref<5x4xbf16, #tpu.memory_space<vmem>>, vector<5x4xbf16>
    %c0_3 = arith.constant 0 : index
    %c0_4 = arith.constant 0 : index
    %c0_5 = arith.constant 0 : index
    %2 = vector.load %arg2[%c0_3, %c0_4, %c0_5] : memref<1x4x512xbf16, #tpu.memory_space<vmem>>, vector<1x4x512xbf16>
    %3 = vector.shape_cast %2 : vector<1x4x512xbf16> to vector<4x512xbf16>
    %cst = arith.constant dense<0.000000e+00> : vector<5x512xf32>
    %4 = tpu.matmul %1, %3, %cst {dimension_numbers = #tpu.dot_dimension_numbers<[1], [0], [0], [1], [0, 0, 1, 1], [], []>} : vector<5x4xbf16>, vector<4x512xbf16>, vector<5x512xf32> -> vector<5x512xf32>
    %5 = vector.broadcast %0 : vector<5x1xf32> to vector<5x512xf32>
    %6 = arith.addf %5, %4 : vector<5x512xf32>
    %c0_6 = arith.constant 0 : index
    %c0_7 = arith.constant 0 : index
    %c0_8 = arith.constant 0 : index
    %7 = vector.load %arg5[%c0_6, %c0_7, %c0_8] : memref<1x5x512xf32, #tpu.memory_space<vmem>>, vector<1x5x512xf32>
    %8 = vector.shape_cast %7 : vector<1x5x512xf32> to vector<5x512xf32>
    %9 = vector.shape_cast %6 : vector<5x512xf32> to vector<1x5x512xf32>
    tpu.vector_store %arg5[%c0_6, %c0_7, %c0_8], %9 {strides = array<i32>} : memref<1x5x512xf32, #tpu.memory_space<vmem>>, vector<1x5x512xf32>,
    return
  }
  func.func @transform_0(%arg0: i32, %arg1: i32) -> (i32, i32, i32) {
    %c0_i32 = arith.constant 0 : i32
    %c0_i32_0 = arith.constant 0 : i32
    return %arg0, %c0_i32, %arg1 : i32, i32, i32
  }
  func.func @transform_1(%arg0: i32, %arg1: i32) -> (i32, i32) {
    %c0_i32 = arith.constant 0 : i32
    %c0_i32_0 = arith.constant 0 : i32
    %c0_i32_1 = arith.constant 0 : i32
    return %c0_i32, %c0_i32_0 : i32, i32
  }
  func.func @transform_2(%arg0: i32, %arg1: i32) -> (i32, i32) {
    %c0_i32 = arith.constant 0 : i32
    %c0_i32_0 = arith.constant 0 : i32
    %c0_i32_1 = arith.constant 0 : i32
    return %c0_i32, %c0_i32_0 : i32, i32
  }
  func.func @transform_3(%arg0: i32, %arg1: i32) -> (i32, i32, i32) {
    %c0_i32 = arith.constant 0 : i32
    %c0_i32_0 = arith.constant 0 : i32
    return %arg0, %c0_i32, %arg1 : i32, i32, i32
  }
}

module attributes {stable_mosaic.version = 11 : i64} {
  func.func @_mm_bias_act_kernel(%arg0: i32, %arg1: i32, %arg2: memref<1x8x512xbf16, #tpu.memory_space<vmem>>, %arg3: memref<5x8xbf16, #tpu.memory_space<vmem>>, %arg4: memref<5x1xf32, #tpu.memory_space<vmem>>, %arg5: memref<1x5x512xf32, #tpu.memory_space<vmem>>) attributes {dimension_semantics = [#tpu.dimension_semantics<parallel>, #tpu.dimension_semantics<parallel>], iteration_bounds = array<i64: 1, 1>, scalar_prefetch = 0 : i64, scratch_operands = 0 : i64, tpu.core_type = #tpu.core_type<tc>, window_params = [{transform_indices = @transform_0, window_bounds = array<i64: 1, 8, 512>}, {pipeline_mode = #tpu.pipeline_mode<synchronous>, transform_indices = @transform_1, window_bounds = array<i64: 5, 8>}, {pipeline_mode = #tpu.pipeline_mode<synchronous>, transform_indices = @transform_2, window_bounds = array<i64: 5, 1>}, {transform_indices = @transform_3, window_bounds = array<i64: 1, 5, 512>}]} {
    %c0 = arith.constant 0 : index
    %c0_0 = arith.constant 0 : index
    %0 = vector.load %arg4[%c0, %c0_0] : memref<5x1xf32, #tpu.memory_space<vmem>>, vector<5x1xf32>
    %c0_1 = arith.constant 0 : index
    %c0_2 = arith.constant 0 : index
    %1 = vector.load %arg3[%c0_1, %c0_2] : memref<5x8xbf16, #tpu.memory_space<vmem>>, vector<5x8xbf16>
    %c0_3 = arith.constant 0 : index
    %c0_4 = arith.constant 0 : index
    %c0_5 = arith.constant 0 : index
    %2 = vector.load %arg2[%c0_3, %c0_4, %c0_5] : memref<1x8x512xbf16, #tpu.memory_space<vmem>>, vector<1x8x512xbf16>
    %3 = vector.shape_cast %2 : vector<1x8x512xbf16> to vector<8x512xbf16>
    %cst = arith.constant dense<0.000000e+00> : vector<5x512xf32>
    %4 = tpu.matmul %1, %3, %cst {dimension_numbers = #tpu.dot_dimension_numbers<[1], [0], [0], [1], [0, 0, 1, 1], [], []>} : vector<5x8xbf16>, vector<8x512xbf16>, vector<5x512xf32> -> vector<5x512xf32>
    %5 = vector.broadcast %0 : vector<5x1xf32> to vector<5x512xf32>
    %6 = arith.addf %5, %4 : vector<5x512xf32>
    %c0_6 = arith.constant 0 : index
    %c0_7 = arith.constant 0 : index
    %c0_8 = arith.constant 0 : index
    %7 = vector.load %arg5[%c0_6, %c0_7, %c0_8] : memref<1x5x512xf32, #tpu.memory_space<vmem>>, vector<1x5x512xf32>
    %8 = vector.shape_cast %7 : vector<1x5x512xf32> to vector<5x512xf32>
    %9 = vector.shape_cast %6 : vector<5x512xf32> to vector<1x5x512xf32>
    tpu.vector_store %arg5[%c0_6, %c0_7, %c0_8], %9 {strides = array<i32>} : memref<1x5x512xf32, #tpu.memory_space<vmem>>, vector<1x5x512xf32>,
    return
  }
  func.func @transform_0(%arg0: i32, %arg1: i32) -> (i32, i32, i32) {
    %c0_i32 = arith.constant 0 : i32
    %c0_i32_0 = arith.constant 0 : i32
    return %arg0, %c0_i32, %arg1 : i32, i32, i32
  }
  func.func @transform_1(%arg0: i32, %arg1: i32) -> (i32, i32) {
    %c0_i32 = arith.constant 0 : i32
    %c0_i32_0 = arith.constant 0 : i32
    %c0_i32_1 = arith.constant 0 : i32
    return %c0_i32, %c0_i32_0 : i32, i32
  }
  func.func @transform_2(%arg0: i32, %arg1: i32) -> (i32, i32) {
    %c0_i32 = arith.constant 0 : i32
    %c0_i32_0 = arith.constant 0 : i32
    %c0_i32_1 = arith.constant 0 : i32
    return %c0_i32, %c0_i32_0 : i32, i32
  }
  func.func @transform_3(%arg0: i32, %arg1: i32) -> (i32, i32, i32) {
    %c0_i32 = arith.constant 0 : i32
    %c0_i32_0 = arith.constant 0 : i32
    return %arg0, %c0_i32, %arg1 : i32, i32, i32
  }
}

module attributes {stable_mosaic.version = 11 : i64} {
  func.func @_mm_bias_act_kernel(%arg0: i32, %arg1: i32, %arg2: memref<1x16x128xbf16, #tpu.memory_space<vmem>>, %arg3: memref<5x16xbf16, #tpu.memory_space<vmem>>, %arg4: memref<5x1xf32, #tpu.memory_space<vmem>>, %arg5: memref<1x5x128xf32, #tpu.memory_space<vmem>>) attributes {dimension_semantics = [#tpu.dimension_semantics<parallel>, #tpu.dimension_semantics<parallel>], iteration_bounds = array<i64: 1, 1>, scalar_prefetch = 0 : i64, scratch_operands = 0 : i64, tpu.core_type = #tpu.core_type<tc>, window_params = [{transform_indices = @transform_0, window_bounds = array<i64: 1, 16, 128>}, {pipeline_mode = #tpu.pipeline_mode<synchronous>, transform_indices = @transform_1, window_bounds = array<i64: 5, 16>}, {pipeline_mode = #tpu.pipeline_mode<synchronous>, transform_indices = @transform_2, window_bounds = array<i64: 5, 1>}, {transform_indices = @transform_3, window_bounds = array<i64: 1, 5, 128>}]} {
    %c0 = arith.constant 0 : index
    %c0_0 = arith.constant 0 : index
    %0 = vector.load %arg4[%c0, %c0_0] : memref<5x1xf32, #tpu.memory_space<vmem>>, vector<5x1xf32>
    %c0_1 = arith.constant 0 : index
    %c0_2 = arith.constant 0 : index
    %1 = vector.load %arg3[%c0_1, %c0_2] : memref<5x16xbf16, #tpu.memory_space<vmem>>, vector<5x16xbf16>
    %c0_3 = arith.constant 0 : index
    %c0_4 = arith.constant 0 : index
    %c0_5 = arith.constant 0 : index
    %2 = vector.load %arg2[%c0_3, %c0_4, %c0_5] : memref<1x16x128xbf16, #tpu.memory_space<vmem>>, vector<1x16x128xbf16>
    %3 = vector.shape_cast %2 : vector<1x16x128xbf16> to vector<16x128xbf16>
    %cst = arith.constant dense<0.000000e+00> : vector<5x128xf32>
    %4 = tpu.matmul %1, %3, %cst {dimension_numbers = #tpu.dot_dimension_numbers<[1], [0], [0], [1], [0, 0, 1, 1], [], []>} : vector<5x16xbf16>, vector<16x128xbf16>, vector<5x128xf32> -> vector<5x128xf32>
    %5 = vector.broadcast %0 : vector<5x1xf32> to vector<5x128xf32>
    %6 = arith.addf %5, %4 : vector<5x128xf32>
    %c0_6 = arith.constant 0 : index
    %c0_7 = arith.constant 0 : index
    %c0_8 = arith.constant 0 : index
    %7 = vector.load %arg5[%c0_6, %c0_7, %c0_8] : memref<1x5x128xf32, #tpu.memory_space<vmem>>, vector<1x5x128xf32>
    %8 = vector.shape_cast %7 : vector<1x5x128xf32> to vector<5x128xf32>
    %9 = vector.shape_cast %6 : vector<5x128xf32> to vector<1x5x128xf32>
    tpu.vector_store %arg5[%c0_6, %c0_7, %c0_8], %9 {strides = array<i32>} : memref<1x5x128xf32, #tpu.memory_space<vmem>>, vector<1x5x128xf32>,
    return
  }
  func.func @transform_0(%arg0: i32, %arg1: i32) -> (i32, i32, i32) {
    %c0_i32 = arith.constant 0 : i32
    %c0_i32_0 = arith.constant 0 : i32
    return %arg0, %c0_i32, %arg1 : i32, i32, i32
  }
  func.func @transform_1(%arg0: i32, %arg1: i32) -> (i32, i32) {
    %c0_i32 = arith.constant 0 : i32
    %c0_i32_0 = arith.constant 0 : i32
    %c0_i32_1 = arith.constant 0 : i32
    return %c0_i32, %c0_i32_0 : i32, i32
  }
  func.func @transform_2(%arg0: i32, %arg1: i32) -> (i32, i32) {
    %c0_i32 = arith.constant 0 : i32
    %c0_i32_0 = arith.constant 0 : i32
    %c0_i32_1 = arith.constant 0 : i32
    return %c0_i32, %c0_i32_0 : i32, i32
  }
  func.func @transform_3(%arg0: i32, %arg1: i32) -> (i32, i32, i32) {
    %c0_i32 = arith.constant 0 : i32
    %c0_i32_0 = arith.constant 0 : i32
    return %arg0, %c0_i32, %arg1 : i32, i32, i32
  }
}

</mosaic_0001>

<bundles_post_ra>
// kernel: _lambda_.10
= control target key start
LH: loop header
LB: loop body
LE: loop exit
PB: predicated region body
PF: predicated region fallthrough
CT: control target
= control target key end

     0   :  { %s665_s12 = smov 0   ;;  %s667_s13 = smov 0   ;;  %s736_s0 = inlined_call_operand.vmem [shape: bf16[1,27,4096], index: 0, kind: input, shape index: {}]   ;;  %s737_s1 = inlined_call_operand.vmem [shape: bf16[4,27], index: 1, kind: input, shape index: {}]   ;;  %s738_s2 = inlined_call_operand.vmem [shape: f32[4,1], index: 2, kind: input, shape index: {}]   ;;  %s739_s3 = inlined_call_operand.vmem [shape: bf16[1,4,4096], index: 3, kind: output, shape index: {}]  }
   0x1   :  { %s669_s14 = smov 0   ;;  %s671_s15 = smov 0  }
   0x2   :  { %s673_s16 = smov 0  }
   0x3 LB: > { %s22_s17 = sadd.s32 1, %s636_s15  ;;  %p41_p1 = scmp.ne.s32.totalorder %s628_s13, %s624_s12  ;;  %s640_s16 = sphi %s673_s16, %s13_s16   ;;  %s636_s15 = sphi %s671_s15, %s743_s15   ;;  %s632_s14 = sphi %s669_s14, %s742_s14   ;;  %s628_s13 = sphi %s667_s13, %s741_s13   ;;  %s624_s12 = sphi %s665_s12, %s740_s12  }
   0x4   : > { %p23_p0 = scmp.ge.s32.totalorder %s22_s17, 8  ;;  %p42_p2 = scmp.eq.s32.totalorder %s640_s16, 0 }
   0x5   : > { %s34_s19 = sadd.s32 1, %s628_s13  ;;  %p523_p5 = scmp.ge.s32.totalorder %s640_s16, 8 }
   0x6   : > { %s745_s17 = smov (%p23_p0, %s22_s17), 0  ;;  %p43_p3 = por %p42_p2, %p41_p1 }
   0x7   : > { %s30_s18 = ssub.s32 %s636_s15, %s745_s17  ;;  %143 = sbr.rel (%p523_p5) target bundleno = 20 (0x14), region = 24 }
   0x8   : > { %p32_p4 = scmp.eq.s32.totalorder %s30_s18, 0 }
   0xa   : > { %s700_s20 = scalar_select %p32_p4, %s628_s13, %s34_s19  }
   0xc   : > { %146 = sbr.rel (!%p43_p3) target bundleno = 20 (0x14), region = 28  ;;  %s148_s21 = sand.u32 (%p43_p3), 1, %s628_s13  }
   0xd   : > { %s545_s22 = sshll.u32 (%p43_p3), %s636_s15, 4  ;;  %s524_s23 = sshll.u32 (%p43_p3), %s148_s21, 6 }
   0xe   : > { %s155_s26 = scalar_lea.vmem (%p43_p3), %s736_s0, %s545_s22  ;;  %s150_s27 = scalar_lea.vmem (%p43_p3), [#allocation2], %s524_s23 }
   0xf   : > { %v168_v0 = vld [vmem:[%s155_s26] sm:$0xff] (%p43_p3)  ;;  %v170_v1 = vld [vmem:[%s155_s26 + $0x8] sm:$0xff] (%p43_p3) }
  0x10   : > { %v172_v2 = vld [vmem:[%s155_s26 + $0x80] sm:$0xff] (%p43_p3)  ;;  %169 = vst [vmem:[%s150_s27] sm:$0xff] (%p43_p3), %v168_v0  ;;  %171 = vst [vmem:[%s150_s27 + $0x8] sm:$0xff] (%p43_p3), %v170_v1  ;;  %v174_v3 = vld [vmem:[%s155_s26 + $0x88] sm:$0xff] (%p43_p3) }
  0x11   : > { %173 = vst [vmem:[%s150_s27 + $0x10] sm:$0xff] %v172_v2  ;;  %v176_v4 = vld [vmem:[%s155_s26 + $0x100] sm:$0xff]  ;;  %v178_v5 = vld [vmem:[%s155_s26 + $0x108] sm:$0xff]  ;;  %175 = vst [vmem:[%s150_s27 + $0x18] sm:$0xff] %v174_v3 }
  0x12   : > { %177 = vst [vmem:[%s150_s27 + $0x20] sm:$0xff] %v176_v4  ;;  %179 = vst [vmem:[%s150_s27 + $0x28] sm:$0xff] %v178_v5  ;;  %v180_v6 = vld [vmem:[%s155_s26 + $0x180] sm:$0xff]  ;;  %v182_v7 = vld [vmem:[%s155_s26 + $0x188] sm:$0xff] }
  0x13   : > { %181 = vst [vmem:[%s150_s27 + $0x30] sm:$0xff] %v180_v6  ;;  %183 = vst [vmem:[%s150_s27 + $0x38] sm:$0xff] %v182_v7 }
  0x14 PF: > { %p527_p6 = scmp.ge.s32.totalorder %s640_s16, 1  ;;  %p188_p7 = scmp.lt.s32.totalorder %s640_s16, 9 }
  0x16   : > { %p189_p8 = pnand %p527_p6, %p188_p7 }
  0x17   : > { %s195_s28 = sand.u32 (!%p189_p8), 1, %s624_s12   ;;  %s529_s8 = sshll.u32 (!%p189_p8), %s632_s14, 2 }
  0x18   : > { %192 = sbr.rel (%p189_p8) target bundleno = 249 (0xf9), region = 51  ;;  %s528_s29 = sshll.u32 (!%p189_p8), %s195_s28, 6 }
  0x19   : > { %s197_s5 = scalar_lea.vmem (!%p189_p8), [#allocation2], %s528_s29  ;;  %p226_p9 = scmp.lt.s32.totalorder (!%p189_p8), %s529_s8, 31 }
  0x1d   : > { %vm284_vm0 = vcmask 1044480   ;;  %vm285_vm1 = vcmask 1045504   ;;  %v642_v8 = vmov 65535   ;;  %v643_v10 = vmov 0   ;;  %v234_v12 = vld [vmem:[%s738_s2] sm:$0xf] }
  0x1e   : > { %v286_v9 = vsel %vm284_vm0, 4294967295, %v642_v8  ;;  %332 = vmatprep.mubr.bf16.mxu0 %v643_v10  ;;  %373 = vmatprep.mubr.bf16.mxu1 %v643_v10  ;;  %v590_v13 = vld [vmem:[%s197_s5 + $0x24] ss:$16 sps:$4 sm:$0x3f]   ;;  %v598_v22 = vld [vmem:[%s197_s5 + $0xc] ss:$16 sps:$4 sm:$0xff]   ;;  %v416_v29 = vlaneseq }
  0x1f   : > { %v287_v11 = vsel %vm285_vm1, %v286_v9, 0  ;;  %589 = vset.pattern.permute.xlu0 %v643_v10  ;;  %v592_v14 = vld [vmem:[%s197_s5 + $0x2c] ss:$16 sps:$4 sm:$0x3f]   ;;  %v596_v19 = vld [vmem:[%s197_s5 + $0x4] ss:$16 sps:$4 sm:$0xff]  }
  0x20   : > { %384 = vperm.xlu0 %589, %v234_v12   ;;  %v292_v15 = vand.u32 %v590_v13, %v287_v11  ;;  %v594_v16 = vld [vmem:[%s197_s5 + $0x20] ss:$16 sps:$4 sm:$0x3f]   ;;  %v595_v17 = vld [vmem:[%s197_s5 + $0x28] ss:$16 sps:$4 sm:$0x3f]   ;;  %v298_v18 = vand.u32 %v592_v14, %v287_v11 }
  0x21   : > { %v289_v20 = vand.u32 %v594_v16, %v287_v11  ;;  %v295_v21 = vand.u32 %v595_v17, %v287_v11  ;;  %v600_v23 = vld [vmem:[%s197_s5] ss:$16 sps:$4 sm:$0xff]   ;;  %v601_v24 = vld [vmem:[%s197_s5 + $0x8] ss:$16 sps:$4 sm:$0xff]   ;;  %vm280_vm2 = vcmask 220160   ;;  %v417_v37 = vshrl.u32 %v416_v29, 7 }
  0x22   : > { %312 = vmatprep.subr.bf16.mxu0 %v292_v15  ;;  %353 = vmatprep.subr.bf16.mxu1 %v298_v18  ;;  %v235_v25 = vld [vmem:[%s737_s1] sm:$0x3]  ;;  %v644_v27 = vmov 1983009808   ;;  %s747_s8 = smov (!%p226_p9, %s529_s8), 31 }
  0x23   : > { %313 = vmatpush1.bf16.msra.mxu0 %v289_v20  ;;  %354 = vmatpush1.bf16.msra.mxu1 %v295_v21  ;;  %v414_v28 = vunpack.c.l.s4 %v644_v27  ;;  %s530_s9 = sshll.u32 %s747_s8, 1 }
  0x24   : > { %314 = vmatprep.subr.bf16.mxu0 %v596_v19  ;;  %355 = vmatprep.subr.bf16.mxu1 %v598_v22  ;;  %s231_s12 = scalar_lea.vmem %s739_s3, %s530_s9 }
  0x25   : > { %v415_v36 = vunpack.c.0.s8 %v414_v28 }
  0x27   : > { %315 = vmatpush1.bf16.msra.mxu0 %v600_v23  ;;  %356 = vmatpush1.bf16.msra.mxu1 %v601_v24  ;;  %v418_v48 = vsub.s32 %v415_v36, %v417_v37 }
  0x2a   : > { %539 = vmatmul.mubr.msk.bf16.vlgmr.msra.gmra.mxu0 %vm280_vm2, %v235_v25  ;;  %540 = vmatmul.mubr.msk.bf16.vlgmr.msra.gmra.mxu1 %vm280_vm2, %v235_v25 }
  0x9b   : > { %v385_v26 = vpop.permute.xlu0 %384 }
  0xea   : > { %v334_v30 = vpop.f32.mrf.mxu0  ;;  %v375_v31 = vpop.f32.mrf.mxu1 }
  0xeb   : > { %v387_v32 = vadd.f32 %v385_v26, %v334_v30  ;;  %v389_v33 = vadd.f32 %v385_v26, %v375_v31 }
  0xec   : > { %v336_v34 = vpop.f32.mrf.mxu0  ;;  %v377_v35 = vpop.f32.mrf.mxu1 }
  0xed   : > { %v395_v38 = vmul.f32 0.2, %v387_v32  ;;  %v397_v39 = vmul.f32 0.2, %v389_v33  ;;  %v388_v40 = vadd.f32 %v385_v26, %v336_v34  ;;  %v390_v41 = vadd.f32 %v385_v26, %v377_v35 }
  0xee   : > { %v338_v42 = vpop.f32.mrf.mxu0  ;;  %v379_v43 = vpop.f32.mrf.mxu1  ;;  %vm391_vm3 = vcmp.ge.f32.partialorder %v387_v32, 0.0  ;;  %vm393_vm4 = vcmp.ge.f32.partialorder %v389_v33, 0.0 }
  0xef   : > { %vm392_vm5 = vcmp.ge.f32.partialorder %v388_v40, 0.0  ;;  %v396_v44 = vmul.f32 0.2, %v388_v40  ;;  %vm394_vm6 = vcmp.ge.f32.partialorder %v390_v41, 0.0  ;;  %v398_v45 = vmul.f32 0.2, %v390_v41 }
  0xf0   : > { %v339_v46 = vpop.f32.mrf.mxu0  ;;  %v380_v47 = vpop.f32.mrf.mxu1  ;;  %v399_v49 = vsel %vm391_vm3, %v387_v32, %v395_v38  ;;  %v401_v50 = vsel %vm393_vm4, %v389_v33, %v397_v39 }
  0xf1   : > { %v400_v51 = vsel %vm392_vm5, %v388_v40, %v396_v44  ;;  %v402_v52 = vsel %vm394_vm6, %v390_v41, %v398_v45 }
  0xf2   : > { %v541_v53 = vpack.c.bf16 %v400_v51, %v399_v49  ;;  %v542_v54 = vpack.c.bf16 %v402_v52, %v401_v50 }
  0xf4   : > { %v419_v55 = vrot.slane %v541_v53, %v418_v48  ;;  %v426_v56 = vrot.slane %v542_v54, %v418_v48 }
  0xf6   : > { %v427_v57 = vcombine.low %v419_v55, %v426_v56 }
  0xf8   : > { %429 = vst [vmem:[%s231_s12] sm:$0xff] %v427_v57 }
  0xf9 PF: > { %s13_s16 = sadd.s32 1, %s640_s16   ;;  %s740_s12 = smov %s628_s13 }
  0xfa   : > { %p10_p10 = scmp.ge.s32.totalorder %s13_s16, 10   ;;  %s741_s13 = smov %s700_s20 }
  0xfb   : > { %s742_s14 = smov %s636_s15  ;;  %s743_s15 = smov %s745_s17 }
  0xfc   :  { %12 = sbr.rel (!%p10_p10) target bundleno = 3 (0x3), region = 90 }

// kernel: _lambda_.11
= control target key start
LH: loop header
LB: loop body
LE: loop exit
PB: predicated region body
PF: predicated region fallthrough
CT: control target
= control target key end

     0   :  { %vm425_vm0 = vcmask 1041409   ;;  %vm428_vm1 = vcmask 1042434   ;;  %vm431_vm2 = vcmask 1043459   ;;  %vm434_vm3 = vcmask 1044484   ;;  %s1116_s0 = inlined_call_operand.vmem [shape: bf16[32,2,64], index: 0, kind: input, shape index: {}]   ;;  %s1117_s1 = inlined_call_operand.vmem [shape: bf16[32,64], index: 1, kind: output, shape index: {}]  }
   0x1   :  { %v613_v0 = vld [vmem:[%s1116_s0] sm:$0x1]  ;;  %v618_v1 = vld [vmem:[%s1116_s0 + $0x1] sm:$0x1]  ;;  %v623_v2 = vld [vmem:[%s1116_s0 + $0x2] sm:$0x1] }
   0x2   :  { %v628_v3 = vld [vmem:[%s1116_s0 + $0x3] sm:$0x1]  ;;  %v633_v4 = vld [vmem:[%s1116_s0 + $0x4] sm:$0x1]  ;;  %v638_v5 = vld [vmem:[%s1116_s0 + $0x5] sm:$0x1]  ;;  %v1118_v12 = vunpack.c.l.bf16 %v613_v0  ;;  %v1119_v13 = vunpack.c.l.bf16 %v618_v1  ;;  %v1120_v14 = vunpack.c.l.bf16 %v623_v2 }
   0x3   :  { %v643_v6 = vld [vmem:[%s1116_s0 + $0x6] sm:$0x1]  ;;  %v648_v7 = vld [vmem:[%s1116_s0 + $0x7] sm:$0x1]  ;;  %v653_v8 = vld [vmem:[%s1116_s0 + $0x8] sm:$0x1]  ;;  %v1121_v18 = vunpack.c.l.bf16 %v628_v3  ;;  %v1122_v19 = vunpack.c.l.bf16 %v633_v4  ;;  %v1123_v20 = vunpack.c.l.bf16 %v638_v5 }
   0x4   :  { %v658_v9 = vld [vmem:[%s1116_s0 + $0x9] sm:$0x1]  ;;  %v663_v10 = vld [vmem:[%s1116_s0 + $0xa] sm:$0x1]  ;;  %v668_v11 = vld [vmem:[%s1116_s0 + $0xb] sm:$0x1]  ;;  %v1124_v21 = vunpack.c.l.bf16 %v643_v6  ;;  %v1125_v25 = vunpack.c.l.bf16 %v648_v7  ;;  %v1126_v26 = vunpack.c.l.bf16 %v653_v8 }
   0x5   :  { %v676_v15 = vld [vmem:[%s1116_s0 + $0xc] sm:$0x1]  ;;  %v681_v16 = vld [vmem:[%s1116_s0 + $0xd] sm:$0x1]  ;;  %v686_v17 = vld [vmem:[%s1116_s0 + $0xe] sm:$0x1]  ;;  %v1127_v27 = vunpack.c.l.bf16 %v658_v9  ;;  %v1128_v28 = vunpack.c.l.bf16 %v663_v10  ;;  %v1129_v32 = vunpack.c.l.bf16 %v668_v11 }
   0x6   :  { %v695_v22 = vld [vmem:[%s1116_s0 + $0xf] sm:$0x1]  ;;  %v700_v23 = vld [vmem:[%s1116_s0 + $0x10] sm:$0x1]  ;;  %v705_v24 = vld [vmem:[%s1116_s0 + $0x11] sm:$0x1]  ;;  %v1130_v33 = vunpack.c.l.bf16 %v676_v15  ;;  %v1131_v34 = vunpack.c.l.bf16 %v681_v16  ;;  %v1132_v35 = vunpack.c.l.bf16 %v686_v17 }
   0x7   :  { %v714_v29 = vld [vmem:[%s1116_s0 + $0x12] sm:$0x1]  ;;  %v719_v30 = vld [vmem:[%s1116_s0 + $0x13] sm:$0x1]  ;;  %v724_v31 = vld [vmem:[%s1116_s0 + $0x14] sm:$0x1]  ;;  %v1133_v39 = vunpack.c.l.bf16 %v695_v22  ;;  %v1134_v40 = vunpack.c.l.bf16 %v700_v23  ;;  %v1135_v41 = vunpack.c.l.bf16 %v705_v24 }
   0x8   :  { %1156 = vst [vmem:[#allocation2_spill] sm:$0xff] %v714_v29  ;;  %1157 = vst [vmem:[#allocation3_spill] sm:$0xff] %v719_v30  ;;  %v733_v36 = vld [vmem:[%s1116_s0 + $0x15] sm:$0x1]  ;;  %v738_v37 = vld [vmem:[%s1116_s0 + $0x16] sm:$0x1]  ;;  %v1136_v42 = vunpack.c.l.bf16 %v714_v29  ;;  %v1138_v46 = vunpack.c.l.bf16 %v719_v30  ;;  %v1140_v47 = vunpack.c.l.bf16 %v724_v31 }
   0x9   :  { %1158 = vst [vmem:[#allocation4_spill] sm:$0xff] %v724_v31  ;;  %1159 = vst [vmem:[#allocation5_spill] sm:$0xff] %v733_v36  ;;  %v743_v38 = vld [vmem:[%s1116_s0 + $0x17] sm:$0x1]  ;;  %v752_v43 = vld [vmem:[%s1116_s0 + $0x18] sm:$0x1]  ;;  %v1142_v48 = vunpack.c.l.bf16 %v733_v36  ;;  %v1144_v49 = vunpack.c.l.bf16 %v738_v37 }
   0xa   :  { %1160 = vst [vmem:[#allocation6_spill] sm:$0xff] %v738_v37  ;;  %1161 = vst [vmem:[#allocation7_spill] sm:$0xff] %v743_v38  ;;  %v757_v44 = vld [vmem:[%s1116_s0 + $0x19] sm:$0x1]  ;;  %v762_v45 = vld [vmem:[%s1116_s0 + $0x1a] sm:$0x1]  ;;  %v1146_v53 = vunpack.c.l.bf16 %v743_v38 }
   0xb   :  { %1162 = vst [vmem:[#allocation8_spill] sm:$0xff] %v752_v43  ;;  %1163 = vst [vmem:[#allocation9_spill] sm:$0xff] %v757_v44  ;;  %v771_v50 = vld [vmem:[%s1116_s0 + $0x1b] sm:$0x1]  ;;  %v776_v51 = vld [vmem:[%s1116_s0 + $0x1c] sm:$0x1] }
   0xc   :  { %1164 = vst [vmem:[#allocation10_spill] sm:$0xff] %v762_v45  ;;  %1165 = vst [vmem:[#allocation11_spill] sm:$0xff] %v771_v50  ;;  %v781_v52 = vld [vmem:[%s1116_s0 + $0x1d] sm:$0x1]  ;;  %v790_v57 = vld [vmem:[%s1116_s0 + $0x1e] sm:$0x1] }
   0xd   :  { %1166 = vst [vmem:[#allocation12_spill] sm:$0xff] %v776_v51  ;;  %1167 = vst [vmem:[#allocation13_spill] sm:$0xff] %v781_v52  ;;  %v795_v58 = vld [vmem:[%s1116_s0 + $0x1f] sm:$0x1]  ;;  %v504_v62 = vrot.slane %v1118_v12, 9  ;;  %v505_v55 = vrot.slane %v1119_v13, 9 }
   0xe   :  { %1168 = vst [vmem:[#allocation14_spill] sm:$0xff] %v790_v57  ;;  %1169 = vst [vmem:[#allocation15_spill] sm:$0xff] %v795_v58  ;;  %v506_v54 = vrot.slane %v1120_v14, 9  ;;  %v507_v59 = vrot.slane %v1121_v18, 9  ;;  %v508_v60 = vrot.slane %v1122_v19, 9  ;;  %v509_v61 = vrot.slane %v1123_v20, 9 }
   0xf   :  { %v510_v12 = vrot.slane %v1124_v21, 9  ;;  %v511_v56 = vrot.slane %v1125_v25, 9  ;;  %v512_v13 = vrot.slane %v1126_v26, 9  ;;  %v513_v14 = vrot.slane %v1127_v27, 9 }
  0x10   :  { %v514_v18 = vrot.slane %v1128_v28, 9  ;;  %v515_v19 = vrot.slane %v1129_v32, 9  ;;  %v516_v20 = vrot.slane %v1130_v33, 9  ;;  %v517_v21 = vrot.slane %v1131_v34, 9 }
  0x11   :  { %v518_v25 = vrot.slane %v1132_v35, 9  ;;  %v519_v26 = vrot.slane %v1133_v39, 9  ;;  %v520_v27 = vrot.slane %v1134_v40, 9  ;;  %v521_v28 = vrot.slane %v1135_v41, 9 }
  0x12   :  { %v522_v32 = vrot.slane %v1136_v42, 9  ;;  %v523_v33 = vrot.slane %v1138_v46, 9  ;;  %v524_v34 = vrot.slane %v1140_v47, 9  ;;  %v525_v35 = vrot.slane %v1142_v48, 9 }
  0x13   :  { %v526_v39 = vrot.slane %v1144_v49, 9  ;;  %v527_v40 = vrot.slane %v1146_v53, 9  ;;  %v1170_v41 = vunpack.c.l.bf16 %v752_v43  ;;  %v1171_v42 = vunpack.c.l.bf16 %v757_v44 }
  0x14   :  { %v1172_v46 = vunpack.c.l.bf16 %v762_v45  ;;  %v1173_v47 = vunpack.c.l.bf16 %v771_v50  ;;  %v1174_v48 = vunpack.c.l.bf16 %v776_v51  ;;  %v1175_v49 = vunpack.c.l.bf16 %v781_v52 }
  0x15   :  { %v528_v63 = vrot.slane %v1170_v41, 9  ;;  %v529_v29 = vrot.slane %v1171_v42, 9  ;;  %v1176_v53 = vunpack.c.l.bf16 %v790_v57  ;;  %v1177_v41 = vunpack.c.l.bf16 %v795_v58 }
  0x16   :  { %v530_v30 = vrot.slane %v1172_v46, 9  ;;  %v531_v31 = vrot.slane %v1173_v47, 9  ;;  %v532_v36 = vrot.slane %v1174_v48, 9  ;;  %v533_v37 = vrot.slane %v1175_v49, 9 }
  0x17   :  { %v534_v38 = vrot.slane %v1176_v53, 9  ;;  %v535_v43 = vrot.slane %v1177_v41, 9  ;;  %v1178_v42 = vunpack.c.l.bf16 %v613_v0  ;;  %v1179_v46 = vunpack.c.l.bf16 %v618_v1 }
  0x18   :  { %v1180_v47 = vunpack.c.l.bf16 %v623_v2  ;;  %v1181_v48 = vunpack.c.l.bf16 %v628_v3  ;;  %v1182_v49 = vunpack.c.l.bf16 %v633_v4  ;;  %v1183_v53 = vunpack.c.l.bf16 %v638_v5 }
  0x19   :  { %v200_v44 = vadd.f32 %v504_v62, %v1178_v42  ;;  %v201_v45 = vadd.f32 %v505_v55, %v1179_v46  ;;  %v1184_v41 = vunpack.c.l.bf16 %v643_v6  ;;  %v1185_v0 = vunpack.c.l.bf16 %v648_v7 }
  0x1a   :  { %v202_v50 = vadd.f32 %v506_v54, %v1180_v47  ;;  %v203_v51 = vadd.f32 %v507_v59, %v1181_v48  ;;  %v204_v52 = vadd.f32 %v508_v60, %v1182_v49  ;;  %v205_v57 = vadd.f32 %v509_v61, %v1183_v53 }
  0x1b   :  { %v206_v58 = vadd.f32 %v510_v12, %v1184_v41  ;;  %v207_v62 = vadd.f32 %v511_v56, %v1185_v0  ;;  %v1186_v1 = vunpack.c.l.bf16 %v653_v8  ;;  %v1187_v2 = vunpack.c.l.bf16 %v658_v9  ;;  %v1210_v0 = vld [vmem:[#allocation9_spill] sm:$0xff] }
  0x1c   :  { %v1188_v3 = vunpack.c.l.bf16 %v663_v10  ;;  %v1189_v4 = vunpack.c.l.bf16 %v668_v11  ;;  %v1190_v5 = vunpack.c.l.bf16 %v676_v15  ;;  %v1191_v6 = vunpack.c.l.bf16 %v681_v16  ;;  %v1196_v11 = vld [vmem:[#allocation2_spill] sm:$0xff]  ;;  %v1198_v15 = vld [vmem:[#allocation3_spill] sm:$0xff]  ;;  %v1200_v16 = vld [vmem:[#allocation4_spill] sm:$0xff] }
  0x1d   :  { %v208_v55 = vadd.f32 %v512_v13, %v1186_v1  ;;  %v209_v54 = vadd.f32 %v513_v14, %v1187_v2  ;;  %v1192_v7 = vunpack.c.l.bf16 %v686_v17  ;;  %v1193_v8 = vunpack.c.l.bf16 %v695_v22  ;;  %v1202_v17 = vld [vmem:[#allocation5_spill] sm:$0xff]  ;;  %v1204_v22 = vld [vmem:[#allocation6_spill] sm:$0xff] }
  0x1e   :  { %v210_v59 = vadd.f32 %v514_v18, %v1188_v3  ;;  %v211_v60 = vadd.f32 %v515_v19, %v1189_v4  ;;  %v212_v61 = vadd.f32 %v516_v20, %v1190_v5  ;;  %v213_v12 = vadd.f32 %v517_v21, %v1191_v6  ;;  %v1212_v2 = vld [vmem:[#allocation10_spill] sm:$0xff]  ;;  %v1214_v4 = vld [vmem:[#allocation11_spill] sm:$0xff]  ;;  %v1216_v6 = vld [vmem:[#allocation12_spill] sm:$0xff] }
  0x1f   :  { %v214_v56 = vadd.f32 %v518_v25, %v1192_v7  ;;  %v215_v13 = vadd.f32 %v519_v26, %v1193_v8  ;;  %v1194_v9 = vunpack.c.l.bf16 %v700_v23  ;;  %v1195_v10 = vunpack.c.l.bf16 %v705_v24  ;;  %v1206_v23 = vld [vmem:[#allocation7_spill] sm:$0xff]  ;;  %v1208_v24 = vld [vmem:[#allocation8_spill] sm:$0xff]  ;;  %v1218_v8 = vld [vmem:[#allocation13_spill] sm:$0xff] }
  0x20   :  { %v1197_v19 = vunpack.c.l.bf16 %v1196_v11  ;;  %v1199_v20 = vunpack.c.l.bf16 %v1198_v15  ;;  %v1201_v21 = vunpack.c.l.bf16 %v1200_v16  ;;  %v1203_v25 = vunpack.c.l.bf16 %v1202_v17 }
  0x21   :  { %v216_v14 = vadd.f32 %v520_v27, %v1194_v9  ;;  %v217_v18 = vadd.f32 %v521_v28, %v1195_v10  ;;  %v1205_v26 = vunpack.c.l.bf16 %v1204_v22  ;;  %v1207_v27 = vunpack.c.l.bf16 %v1206_v23  ;;  %v1220_v10 = vld [vmem:[#allocation14_spill] sm:$0xff] }
  0x22   :  { %v218_v42 = vadd.f32 %v522_v32, %v1197_v19  ;;  %v219_v46 = vadd.f32 %v523_v33, %v1199_v20  ;;  %v220_v47 = vadd.f32 %v524_v34, %v1201_v21  ;;  %v221_v48 = vadd.f32 %v525_v35, %v1203_v25  ;;  %v1222_v19 = vld [vmem:[#allocation15_spill] sm:$0xff] }
  0x23   :  { %v222_v49 = vadd.f32 %v526_v39, %v1205_v26  ;;  %v223_v53 = vadd.f32 %v527_v40, %v1207_v27  ;;  %v1209_v28 = vunpack.c.l.bf16 %v1208_v24  ;;  %v1211_v32 = vunpack.c.l.bf16 %v1210_v0 }
  0x24   :  { %v1213_v33 = vunpack.c.l.bf16 %v1212_v2  ;;  %v1215_v34 = vunpack.c.l.bf16 %v1214_v4  ;;  %v1217_v35 = vunpack.c.l.bf16 %v1216_v6  ;;  %v1219_v39 = vunpack.c.l.bf16 %v1218_v8 }
  0x25   :  { %v224_v41 = vadd.f32 %v528_v63, %v1209_v28  ;;  %v225_v1 = vadd.f32 %v529_v29, %v1211_v32  ;;  %v1221_v40 = vunpack.c.l.bf16 %v1220_v10  ;;  %v1223_v63 = vunpack.c.l.bf16 %v1222_v19 }
  0x26   :  { %v226_v3 = vadd.f32 %v530_v30, %v1213_v33  ;;  %v227_v5 = vadd.f32 %v531_v31, %v1215_v34  ;;  %v228_v7 = vadd.f32 %v532_v36, %v1217_v35  ;;  %v229_v9 = vadd.f32 %v533_v37, %v1219_v39 }
  0x27   :  { %v230_v11 = vadd.f32 %v534_v38, %v1221_v40  ;;  %v231_v15 = vadd.f32 %v535_v43, %v1223_v63  ;;  %v930_v20 = vmul.f32 0.125, %v200_v44  ;;  %v932_v29 = vmul.f32 0.125, %v201_v45 }
  0x28   :  { %v934_v30 = vmul.f32 0.125, %v202_v50  ;;  %v936_v16 = vmul.f32 0.125, %v203_v51  ;;  %v938_v31 = vmul.f32 0.125, %v204_v52  ;;  %v940_v36 = vmul.f32 0.125, %v205_v57 }
  0x29   :  { %v942_v21 = vmul.f32 0.125, %v206_v58  ;;  %v944_v37 = vmul.f32 0.125, %v207_v62  ;;  %v946_v38 = vmul.f32 0.125, %v208_v55  ;;  %v948_v17 = vmul.f32 0.125, %v209_v54 }
  0x2a   :  { %v950_v43 = vmul.f32 0.125, %v210_v59  ;;  %v952_v44 = vmul.f32 0.125, %v211_v60  ;;  %v954_v45 = vmul.f32 0.125, %v212_v61  ;;  %v956_v50 = vmul.f32 0.125, %v213_v12 }
  0x2b   :  { %v958_v51 = vmul.f32 0.125, %v214_v56  ;;  %v960_v52 = vmul.f32 0.125, %v215_v13  ;;  %v962_v57 = vmul.f32 0.125, %v216_v14  ;;  %v964_v58 = vmul.f32 0.125, %v217_v18 }
  0x2c   :  { %v966_v62 = vmul.f32 0.125, %v218_v42  ;;  %v968_v55 = vmul.f32 0.125, %v219_v46  ;;  %v970_v54 = vmul.f32 0.125, %v220_v47  ;;  %v972_v59 = vmul.f32 0.125, %v221_v48 }
  0x2d   :  { %v974_v60 = vmul.f32 0.125, %v222_v49  ;;  %v976_v61 = vmul.f32 0.125, %v223_v53  ;;  %v978_v12 = vmul.f32 0.125, %v224_v41  ;;  %v980_v56 = vmul.f32 0.125, %v225_v1 }
  0x2e   :  { %v982_v13 = vmul.f32 0.125, %v226_v3  ;;  %v984_v14 = vmul.f32 0.125, %v227_v5  ;;  %v986_v18 = vmul.f32 0.125, %v228_v7  ;;  %v988_v42 = vmul.f32 0.125, %v229_v9 }
  0x2f   :  { %v990_v46 = vmul.f32 0.125, %v230_v11  ;;  %v992_v47 = vmul.f32 0.125, %v231_v15  ;;  %v568_v25 = vpack.c.bf16 %v930_v20, %v930_v20  ;;  %v569_v48 = vpack.c.bf16 %v932_v29, %v932_v29 }
  0x30   :  { %v570_v22 = vpack.c.bf16 %v934_v30, %v934_v30  ;;  %v571_v26 = vpack.c.bf16 %v936_v16, %v936_v16  ;;  %v572_v49 = vpack.c.bf16 %v938_v31, %v938_v31  ;;  %v573_v23 = vpack.c.bf16 %v940_v36, %v940_v36 }
  0x31   :  { %v574_v27 = vpack.c.bf16 %v942_v21, %v942_v21  ;;  %v575_v53 = vpack.c.bf16 %v944_v37, %v944_v37  ;;  %v576_v24 = vpack.c.bf16 %v946_v38, %v946_v38  ;;  %v577_v28 = vpack.c.bf16 %v948_v17, %v948_v17 }
  0x32   :  { %v578_v41 = vpack.c.bf16 %v950_v43, %v950_v43  ;;  %v579_v0 = vpack.c.bf16 %v952_v44, %v952_v44  ;;  %v580_v32 = vpack.c.bf16 %v954_v45, %v954_v45  ;;  %v581_v1 = vpack.c.bf16 %v956_v50, %v956_v50 }
  0x33   :  { %v582_v2 = vpack.c.bf16 %v958_v51, %v958_v51  ;;  %v583_v33 = vpack.c.bf16 %v960_v52, %v960_v52  ;;  %v584_v3 = vpack.c.bf16 %v962_v57, %v962_v57  ;;  %v585_v4 = vpack.c.bf16 %v964_v58, %v964_v58 }
  0x34   :  { %v586_v34 = vpack.c.bf16 %v966_v62, %v966_v62  ;;  %v587_v5 = vpack.c.bf16 %v968_v55, %v968_v55  ;;  %v588_v6 = vpack.c.bf16 %v970_v54, %v970_v54  ;;  %v589_v35 = vpack.c.bf16 %v972_v59, %v972_v59 }
  0x35   :  { %v590_v7 = vpack.c.bf16 %v974_v60, %v974_v60  ;;  %v591_v8 = vpack.c.bf16 %v976_v61, %v976_v61  ;;  %v592_v39 = vpack.c.bf16 %v978_v12, %v978_v12  ;;  %v593_v9 = vpack.c.bf16 %v980_v56, %v980_v56 }
  0x36   :  { %v594_v10 = vpack.c.bf16 %v982_v13, %v982_v13  ;;  %v595_v40 = vpack.c.bf16 %v984_v14, %v984_v14  ;;  %v596_v11 = vpack.c.bf16 %v986_v18, %v986_v18  ;;  %v597_v19 = vpack.c.bf16 %v988_v42, %v988_v42 }
  0x37   :  { %v598_v63 = vpack.c.bf16 %v990_v46, %v990_v46  ;;  %v599_v15 = vpack.c.bf16 %v992_v47, %v992_v47  ;;  %v392_v20 = vunpack.c.l.b16 %v568_v25  ;;  %v393_v29 = vunpack.c.l.b16 %v569_v48 }
  0x38   :  { %v394_v30 = vunpack.c.l.b16 %v570_v22  ;;  %v395_v16 = vunpack.c.l.b16 %v571_v26  ;;  %v396_v31 = vunpack.c.l.b16 %v572_v49  ;;  %v397_v36 = vunpack.c.l.b16 %v573_v23 }
  0x39   :  { %v398_v21 = vunpack.c.l.b16 %v574_v27  ;;  %v399_v37 = vunpack.c.l.b16 %v575_v53  ;;  %v400_v38 = vunpack.c.l.b16 %v576_v24  ;;  %v401_v17 = vunpack.c.l.b16 %v577_v28 }
  0x3a   :  { %v402_v43 = vunpack.c.l.b16 %v578_v41  ;;  %v403_v44 = vunpack.c.l.b16 %v579_v0  ;;  %v404_v45 = vunpack.c.l.b16 %v580_v32  ;;  %v405_v50 = vunpack.c.l.b16 %v581_v1 }
  0x3b   :  { %v406_v51 = vunpack.c.l.b16 %v582_v2  ;;  %v407_v52 = vunpack.c.l.b16 %v583_v33  ;;  %v408_v57 = vunpack.c.l.b16 %v584_v3  ;;  %v409_v58 = vunpack.c.l.b16 %v585_v4 }
  0x3c   :  { %v410_v62 = vunpack.c.l.b16 %v586_v34  ;;  %v411_v55 = vunpack.c.l.b16 %v587_v5  ;;  %v412_v54 = vunpack.c.l.b16 %v588_v6  ;;  %v413_v59 = vunpack.c.l.b16 %v589_v35 }
  0x3d   :  { %v414_v60 = vunpack.c.l.b16 %v590_v7  ;;  %v1058_v61 = vunpack.c.l.b16 %v591_v8  ;;  %v416_v12 = vunpack.c.l.b16 %v592_v39  ;;  %v417_v56 = vunpack.c.l.b16 %v593_v9 }
  0x3e   :  { %v418_v13 = vunpack.c.l.b16 %v594_v10  ;;  %v1060_v14 = vunpack.c.l.b16 %v595_v40  ;;  %v1062_v18 = vunpack.c.l.b16 %v596_v11  ;;  %v1064_v42 = vunpack.c.l.b16 %v597_v19 }
  0x3f   :  { %v1066_v46 = vunpack.c.l.b16 %v598_v63  ;;  %v1068_v47 = vunpack.c.l.b16 %v599_v15  ;;  %v424_v25 = vrot.slane %v393_v29, 7  ;;  %v427_v48 = vrot.slane %v394_v30, 6 }
  0x40   :  { %v430_v22 = vrot.slane %v395_v16, 5  ;;  %v433_v26 = vrot.slane %v396_v31, 4  ;;  %v436_v49 = vrot.slane %v397_v36, 3  ;;  %vm437_vm4 = vcmask 1045509  }
  0x41   :  { %v439_v23 = vrot.slane %v398_v21, 2  ;;  %v426_v27 = vsel %vm425_vm0, %v424_v25, %v392_v20  ;;  %vm440_vm5 = vcmask 1046534   ;;  %v442_v53 = vrot.slane %v399_v37, 1 }
  0x42   :  { %vm443_vm6 = vcmask 1047559   ;;  %v429_v24 = vsel %vm428_vm1, %v427_v48, %v426_v27  ;;  %v445_v28 = vrot.slane %v401_v17, 7  ;;  %v447_v41 = vrot.slane %v402_v43, 6 }
  0x43   :  { %v449_v0 = vrot.slane %v403_v44, 5  ;;  %v432_v32 = vsel %vm431_vm2, %v430_v22, %v429_v24  ;;  %v451_v1 = vrot.slane %v404_v45, 4  ;;  %v453_v2 = vrot.slane %v405_v50, 3 }
  0x44   :  { %v455_v33 = vrot.slane %v406_v51, 2  ;;  %v435_v3 = vsel %vm434_vm3, %v433_v26, %v432_v32  ;;  %v446_v4 = vsel %vm425_vm0, %v445_v28, %v400_v38  ;;  %v457_v34 = vrot.slane %v407_v52, 1 }
  0x45   :  { %v459_v5 = vrot.slane %v409_v58, 7  ;;  %v438_v6 = vsel %vm437_vm4, %v436_v49, %v435_v3  ;;  %v448_v35 = vsel %vm428_vm1, %v447_v41, %v446_v4  ;;  %v461_v7 = vrot.slane %v410_v62, 6 }
  0x46   :  { %v463_v8 = vrot.slane %v411_v55, 5  ;;  %v441_v39 = vsel %vm440_vm5, %v439_v23, %v438_v6  ;;  %v450_v9 = vsel %vm431_vm2, %v449_v0, %v448_v35  ;;  %v465_v40 = vrot.slane %v412_v54, 4 }
  0x47   :  { %v460_v10 = vsel %vm425_vm0, %v459_v5, %v408_v57  ;;  %v444_v11 = vsel %vm443_vm6, %v442_v53, %v441_v39  ;;  %v452_v19 = vsel %vm434_vm3, %v451_v1, %v450_v9  ;;  %v467_v15 = vrot.slane %v413_v59, 3 }
  0x48   :  { %v462_v63 = vsel %vm428_vm1, %v461_v7, %v460_v10  ;;  %v454_v20 = vsel %vm437_vm4, %v453_v2, %v452_v19  ;;  %v469_v30 = vrot.slane %v414_v60, 2  ;;  %v471_v16 = vrot.slane %v1058_v61, 1 }
  0x49   :  { %v464_v29 = vsel %vm431_vm2, %v463_v8, %v462_v63  ;;  %v456_v31 = vsel %vm440_vm5, %v455_v33, %v454_v20  ;;  %v473_v21 = vrot.slane %v417_v56, 7  ;;  %v475_v37 = vrot.slane %v418_v13, 6 }
  0x4a   :  { %v466_v36 = vsel %vm434_vm3, %v465_v40, %v464_v29  ;;  %v458_v38 = vsel %vm443_vm6, %v457_v34, %v456_v31  ;;  %v477_v43 = vrot.slane %v1060_v14, 5  ;;  %v479_v44 = vrot.slane %v1062_v18, 4 }
  0x4b   :  { %v468_v17 = vsel %vm437_vm4, %v467_v15, %v466_v36  ;;  %v474_v50 = vsel %vm425_vm0, %v473_v21, %v416_v12  ;;  %v481_v51 = vrot.slane %v1064_v42, 3  ;;  %v483_v52 = vrot.slane %v1066_v46, 2 }
  0x4c   :  { %v470_v45 = vsel %vm440_vm5, %v469_v30, %v468_v17  ;;  %v476_v58 = vsel %vm428_vm1, %v475_v37, %v474_v50  ;;  %v485_v62 = vrot.slane %v1068_v47, 1  ;;  %v487_v55 = vpack.c.b16 %v444_v11, %v444_v11 }
  0x4d   :  { %v472_v57 = vsel %vm443_vm6, %v471_v16, %v470_v45  ;;  %v478_v54 = vsel %vm431_vm2, %v477_v43, %v476_v58  ;;  %v488_v59 = vpack.c.b16 %v458_v38, %v458_v38  ;;  %vm495_vm7 = vcmask 519168  }
  0x4e   :  { %v489_v60 = vpack.c.b16 %v472_v57, %v472_v57  ;;  %v480_v61 = vsel %vm434_vm3, %v479_v44, %v478_v54  ;;  %496 = vst.msk [vmem:[%s1117_s1] sm:$0xf] %vm495_vm7, %v487_v55 }
  0x4f   :  { %v482_v12 = vsel %vm437_vm4, %v481_v51, %v480_v61  ;;  %497 = vst.msk [vmem:[%s1117_s1 + $0x4] sm:$0xf] %vm495_vm7, %v488_v59 }
  0x50   :  { %498 = vst.msk [vmem:[%s1117_s1 + $0x8] sm:$0xf] %vm495_vm7, %v489_v60  ;;  %v484_v56 = vsel %vm440_vm5, %v483_v52, %v482_v12 }
  0x51   :  { %v486_v13 = vsel %vm443_vm6, %v485_v62, %v484_v56 }
  0x52   :  { %v490_v14 = vpack.c.b16 %v486_v13, %v486_v13 }
  0x54   :  { %499 = vst.msk [vmem:[%s1117_s1 + $0xc] sm:$0xf] %vm495_vm7, %v490_v14 }

// kernel: _lambda_.12
= control target key start
LH: loop header
LB: loop body
LE: loop exit
PB: predicated region body
PF: predicated region fallthrough
CT: control target
= control target key end

     0   :  { %vm185_vm0 = vcmask 1045504   ;;  %v403_v1 = vmov 0   ;;  %vm181_vm1 = vcmask 883712   ;;  %s520_s0 = inlined_call_operand.vmem [shape: bf16[1,108,512], index: 0, kind: input, shape index: {}]   ;;  %s521_s2 = inlined_call_operand.vmem [shape: f32[8,1], index: 2, kind: input, shape index: {}]   ;;  %s522_s1 = inlined_call_operand.vmem [shape: bf16[8,108], index: 1, kind: input, shape index: {}]   ;;  %s523_s3 = inlined_call_operand.vmem [shape: bf16[1,8,512], index: 3, kind: output, shape index: {}]  }
   0x1   :  { %v361_v0 = vld [vmem:[%s520_s0 + $0xc4] ss:$16 sps:$4 sm:$0x3f]   ;;  %230 = vmatprep.mubr.bf16.mxu0 %v403_v1  ;;  %271 = vmatprep.mubr.bf16.mxu1 %v403_v1  ;;  %v363_v2 = vld [vmem:[%s520_s0 + $0xcc] ss:$16 sps:$4 sm:$0x3f]  }
   0x2   :  { %360 = vset.pattern.permute.xlu0 %v403_v1  ;;  %351 = vmatprep.subr.msk.bf16.mxu0 %vm185_vm0, %v361_v0  ;;  %v365_v3 = vld [vmem:[%s520_s0 + $0xc0] ss:$16 sps:$4 sm:$0x3f]   ;;  %v366_v4 = vld [vmem:[%s520_s0 + $0xc8] ss:$16 sps:$4 sm:$0x3f]  }
   0x3   :  { %353 = vmatprep.subr.msk.bf16.mxu1 %vm185_vm0, %v363_v2  ;;  %v367_v5 = vld [vmem:[%s520_s0 + $0xa4] ss:$16 sps:$4 sm:$0xff]   ;;  %v187_v6 = vsel %vm185_vm0, %v365_v3, 0  ;;  %v193_v7 = vsel %vm185_vm0, %v366_v4, 0  ;;  %v369_v8 = vld [vmem:[%s520_s0 + $0xac] ss:$16 sps:$4 sm:$0xff]  }
   0x4   :  { %201 = vmatpush1.bf16.msra.mxu0 %v187_v6  ;;  %242 = vmatpush1.bf16.msra.mxu1 %v193_v7  ;;  %v371_v9 = vld [vmem:[%s520_s0 + $0xa0] ss:$16 sps:$4 sm:$0xff]   ;;  %v372_v10 = vld [vmem:[%s520_s0 + $0xa8] ss:$16 sps:$4 sm:$0xff]   ;;  %v373_v11 = vld [vmem:[%s520_s0 + $0x84] ss:$16 sps:$4 sm:$0xff]  }
   0x5   :  { %202 = vmatprep.subr.bf16.mxu0 %v367_v5  ;;  %243 = vmatprep.subr.bf16.mxu1 %v369_v8  ;;  %v375_v12 = vld [vmem:[%s520_s0 + $0x8c] ss:$16 sps:$4 sm:$0xff]   ;;  %v377_v13 = vld [vmem:[%s520_s0 + $0x80] ss:$16 sps:$4 sm:$0xff]   ;;  %v378_v14 = vld [vmem:[%s520_s0 + $0x88] ss:$16 sps:$4 sm:$0xff]  }
   0x6   :  { %v379_v15 = vld [vmem:[%s520_s0 + $0x64] ss:$16 sps:$4 sm:$0xff]   ;;  %v381_v16 = vld [vmem:[%s520_s0 + $0x6c] ss:$16 sps:$4 sm:$0xff]   ;;  %v383_v17 = vld [vmem:[%s520_s0 + $0x60] ss:$16 sps:$4 sm:$0xff]  }
   0x7   :  { %v384_v18 = vld [vmem:[%s520_s0 + $0x68] ss:$16 sps:$4 sm:$0xff]   ;;  %v385_v19 = vld [vmem:[%s520_s0 + $0x44] ss:$16 sps:$4 sm:$0xff]   ;;  %v387_v20 = vld [vmem:[%s520_s0 + $0x4c] ss:$16 sps:$4 sm:$0xff]  }
   0x8   :  { %203 = vmatpush1.bf16.msra.mxu0 %v371_v9  ;;  %244 = vmatpush1.bf16.msra.mxu1 %v372_v10  ;;  %v389_v21 = vld [vmem:[%s520_s0 + $0x40] ss:$16 sps:$4 sm:$0xff]   ;;  %v390_v22 = vld [vmem:[%s520_s0 + $0x48] ss:$16 sps:$4 sm:$0xff]   ;;  %v391_v23 = vld [vmem:[%s520_s0 + $0x24] ss:$16 sps:$4 sm:$0xff]  }
   0x9   :  { %204 = vmatprep.subr.bf16.mxu0 %v373_v11  ;;  %245 = vmatprep.subr.bf16.mxu1 %v375_v12  ;;  %v393_v24 = vld [vmem:[%s520_s0 + $0x2c] ss:$16 sps:$4 sm:$0xff]   ;;  %v15_v25 = vld [vmem:[%s521_s2] sm:$0xff]  ;;  %v396_v27 = vld [vmem:[%s520_s0 + $0x28] ss:$16 sps:$4 sm:$0xff]  }
   0xa   :  { %282 = vperm.xlu0 %360, %v15_v25   ;;  %v395_v26 = vld [vmem:[%s520_s0 + $0x20] ss:$16 sps:$4 sm:$0xff]   ;;  %v397_v28 = vld [vmem:[%s520_s0 + $0x4] ss:$16 sps:$4 sm:$0xff]   ;;  %v399_v29 = vld [vmem:[%s520_s0 + $0xc] ss:$16 sps:$4 sm:$0xff]  }
   0xb   :  { %v401_v30 = vld [vmem:[%s520_s0] ss:$16 sps:$4 sm:$0xff]   ;;  %v402_v31 = vld [vmem:[%s520_s0 + $0x8] ss:$16 sps:$4 sm:$0xff]  }
   0xc   :  { %205 = vmatpush1.bf16.msra.mxu0 %v377_v13  ;;  %246 = vmatpush1.bf16.msra.mxu1 %v378_v14  ;;  %v16_v32 = vld [vmem:[%s522_s1] sm:$0xf] }
   0xd   :  { %206 = vmatprep.subr.bf16.mxu0 %v379_v15  ;;  %247 = vmatprep.subr.bf16.mxu1 %v381_v16 }
  0x10   :  { %207 = vmatpush1.bf16.msra.mxu0 %v383_v17  ;;  %248 = vmatpush1.bf16.msra.mxu1 %v384_v18 }
  0x11   :  { %208 = vmatprep.subr.bf16.mxu0 %v385_v19  ;;  %249 = vmatprep.subr.bf16.mxu1 %v387_v20 }
  0x14   :  { %209 = vmatpush1.bf16.msra.mxu0 %v389_v21  ;;  %250 = vmatpush1.bf16.msra.mxu1 %v390_v22 }
  0x15   :  { %210 = vmatprep.subr.bf16.mxu0 %v391_v23  ;;  %251 = vmatprep.subr.bf16.mxu1 %v393_v24 }
  0x18   :  { %211 = vmatpush1.bf16.msra.mxu0 %v395_v26  ;;  %252 = vmatpush1.bf16.msra.mxu1 %v396_v27 }
  0x19   :  { %212 = vmatprep.subr.bf16.mxu0 %v397_v28  ;;  %253 = vmatprep.subr.bf16.mxu1 %v399_v29 }
  0x1c   :  { %213 = vmatpush1.bf16.msra.mxu0 %v401_v30  ;;  %254 = vmatpush1.bf16.msra.mxu1 %v402_v31 }
  0x1f   :  { %352 = vmatmul.mubr.msk.bf16.vlgmr.msra.gmra.mxu0 %vm181_vm1, %v16_v32  ;;  %354 = vmatmul.mubr.msk.bf16.vlgmr.msra.gmra.mxu1 %vm181_vm1, %v16_v32 }
  0x85   :  { %v283_v33 = vpop.permute.xlu0 %282 }
  0xdf   :  { %v232_v34 = vpop.f32.mrf.mxu0  ;;  %v273_v35 = vpop.f32.mrf.mxu1 }
  0xe0   :  { %v285_v36 = vadd.f32 %v283_v33, %v232_v34  ;;  %v287_v37 = vadd.f32 %v283_v33, %v273_v35 }
  0xe1   :  { %v234_v38 = vpop.f32.mrf.mxu0  ;;  %v275_v39 = vpop.f32.mrf.mxu1 }
  0xe2   :  { %v293_v40 = vmul.f32 0.2, %v285_v36  ;;  %v295_v41 = vmul.f32 0.2, %v287_v37  ;;  %v286_v42 = vadd.f32 %v283_v33, %v234_v38  ;;  %v288_v43 = vadd.f32 %v283_v33, %v275_v39 }
  0xe3   :  { %v236_v44 = vpop.f32.mrf.mxu0  ;;  %v277_v45 = vpop.f32.mrf.mxu1  ;;  %vm289_vm2 = vcmp.ge.f32.partialorder %v285_v36, 0.0  ;;  %vm291_vm3 = vcmp.ge.f32.partialorder %v287_v37, 0.0 }
  0xe4   :  { %vm290_vm4 = vcmp.ge.f32.partialorder %v286_v42, 0.0  ;;  %v294_v46 = vmul.f32 0.2, %v286_v42  ;;  %vm292_vm5 = vcmp.ge.f32.partialorder %v288_v43, 0.0  ;;  %v296_v47 = vmul.f32 0.2, %v288_v43 }
  0xe5   :  { %v237_v48 = vpop.f32.mrf.mxu0  ;;  %v278_v49 = vpop.f32.mrf.mxu1  ;;  %v297_v50 = vsel %vm289_vm2, %v285_v36, %v293_v40  ;;  %v299_v51 = vsel %vm291_vm3, %v287_v37, %v295_v41 }
  0xe6   :  { %v298_v52 = vsel %vm290_vm4, %v286_v42, %v294_v46  ;;  %v300_v53 = vsel %vm292_vm5, %v288_v43, %v296_v47 }
  0xe7   :  { %v357_v54 = vpack.c.bf16 %v298_v52, %v297_v50  ;;  %v358_v55 = vpack.c.bf16 %v300_v53, %v299_v51 }
  0xe9   :  { %317 = vst [vmem:[%s523_s3] sm:$0xff] %v357_v54  ;;  %318 = vst [vmem:[%s523_s3 + $0x8] sm:$0xff] %v358_v55 }

// kernel: _lambda_.13
= control target key start
LH: loop header
LB: loop body
LE: loop exit
PB: predicated region body
PF: predicated region fallthrough
CT: control target
= control target key end

     0   :  { %vm425_vm0 = vcmask 1041409   ;;  %vm428_vm1 = vcmask 1042434   ;;  %vm431_vm2 = vcmask 1043459   ;;  %vm434_vm3 = vcmask 1044484   ;;  %s1116_s0 = inlined_call_operand.vmem [shape: bf16[32,2,16], index: 0, kind: input, shape index: {}]   ;;  %s1117_s1 = inlined_call_operand.vmem [shape: bf16[32,16], index: 1, kind: output, shape index: {}]  }
   0x1   :  { %v613_v0 = vld [vmem:[%s1116_s0] sm:$0x1]  ;;  %v618_v1 = vld [vmem:[%s1116_s0 + $0x1] sm:$0x1]  ;;  %v623_v2 = vld [vmem:[%s1116_s0 + $0x2] sm:$0x1] }
   0x2   :  { %v628_v3 = vld [vmem:[%s1116_s0 + $0x3] sm:$0x1]  ;;  %v633_v4 = vld [vmem:[%s1116_s0 + $0x4] sm:$0x1]  ;;  %v638_v5 = vld [vmem:[%s1116_s0 + $0x5] sm:$0x1]  ;;  %v1118_v12 = vunpack.c.l.bf16 %v613_v0  ;;  %v1119_v13 = vunpack.c.l.bf16 %v618_v1  ;;  %v1120_v14 = vunpack.c.l.bf16 %v623_v2 }
   0x3   :  { %v643_v6 = vld [vmem:[%s1116_s0 + $0x6] sm:$0x1]  ;;  %v648_v7 = vld [vmem:[%s1116_s0 + $0x7] sm:$0x1]  ;;  %v653_v8 = vld [vmem:[%s1116_s0 + $0x8] sm:$0x1]  ;;  %v1121_v18 = vunpack.c.l.bf16 %v628_v3  ;;  %v1122_v19 = vunpack.c.l.bf16 %v633_v4  ;;  %v1123_v20 = vunpack.c.l.bf16 %v638_v5 }
   0x4   :  { %v658_v9 = vld [vmem:[%s1116_s0 + $0x9] sm:$0x1]  ;;  %v663_v10 = vld [vmem:[%s1116_s0 + $0xa] sm:$0x1]  ;;  %v668_v11 = vld [vmem:[%s1116_s0 + $0xb] sm:$0x1]  ;;  %v1124_v21 = vunpack.c.l.bf16 %v643_v6  ;;  %v1125_v25 = vunpack.c.l.bf16 %v648_v7  ;;  %v1126_v26 = vunpack.c.l.bf16 %v653_v8 }
   0x5   :  { %v676_v15 = vld [vmem:[%s1116_s0 + $0xc] sm:$0x1]  ;;  %v681_v16 = vld [vmem:[%s1116_s0 + $0xd] sm:$0x1]  ;;  %v686_v17 = vld [vmem:[%s1116_s0 + $0xe] sm:$0x1]  ;;  %v1127_v27 = vunpack.c.l.bf16 %v658_v9  ;;  %v1128_v28 = vunpack.c.l.bf16 %v663_v10  ;;  %v1129_v32 = vunpack.c.l.bf16 %v668_v11 }
   0x6   :  { %v695_v22 = vld [vmem:[%s1116_s0 + $0xf] sm:$0x1]  ;;  %v700_v23 = vld [vmem:[%s1116_s0 + $0x10] sm:$0x1]  ;;  %v705_v24 = vld [vmem:[%s1116_s0 + $0x11] sm:$0x1]  ;;  %v1130_v33 = vunpack.c.l.bf16 %v676_v15  ;;  %v1131_v34 = vunpack.c.l.bf16 %v681_v16  ;;  %v1132_v35 = vunpack.c.l.bf16 %v686_v17 }
   0x7   :  { %v714_v29 = vld [vmem:[%s1116_s0 + $0x12] sm:$0x1]  ;;  %v719_v30 = vld [vmem:[%s1116_s0 + $0x13] sm:$0x1]  ;;  %v724_v31 = vld [vmem:[%s1116_s0 + $0x14] sm:$0x1]  ;;  %v1133_v39 = vunpack.c.l.bf16 %v695_v22  ;;  %v1134_v40 = vunpack.c.l.bf16 %v700_v23  ;;  %v1135_v41 = vunpack.c.l.bf16 %v705_v24 }
   0x8   :  { %1156 = vst [vmem:[#allocation2_spill] sm:$0xff] %v714_v29  ;;  %1157 = vst [vmem:[#allocation3_spill] sm:$0xff] %v719_v30  ;;  %v733_v36 = vld [vmem:[%s1116_s0 + $0x15] sm:$0x1]  ;;  %v738_v37 = vld [vmem:[%s1116_s0 + $0x16] sm:$0x1]  ;;  %v1136_v42 = vunpack.c.l.bf16 %v714_v29  ;;  %v1138_v46 = vunpack.c.l.bf16 %v719_v30  ;;  %v1140_v47 = vunpack.c.l.bf16 %v724_v31 }
   0x9   :  { %1158 = vst [vmem:[#allocation4_spill] sm:$0xff] %v724_v31  ;;  %1159 = vst [vmem:[#allocation5_spill] sm:$0xff] %v733_v36  ;;  %v743_v38 = vld [vmem:[%s1116_s0 + $0x17] sm:$0x1]  ;;  %v752_v43 = vld [vmem:[%s1116_s0 + $0x18] sm:$0x1]  ;;  %v1142_v48 = vunpack.c.l.bf16 %v733_v36  ;;  %v1144_v49 = vunpack.c.l.bf16 %v738_v37 }
   0xa   :  { %1160 = vst [vmem:[#allocation6_spill] sm:$0xff] %v738_v37  ;;  %1161 = vst [vmem:[#allocation7_spill] sm:$0xff] %v743_v38  ;;  %v757_v44 = vld [vmem:[%s1116_s0 + $0x19] sm:$0x1]  ;;  %v762_v45 = vld [vmem:[%s1116_s0 + $0x1a] sm:$0x1]  ;;  %v1146_v53 = vunpack.c.l.bf16 %v743_v38 }
   0xb   :  { %1162 = vst [vmem:[#allocation8_spill] sm:$0xff] %v752_v43  ;;  %1163 = vst [vmem:[#allocation9_spill] sm:$0xff] %v757_v44  ;;  %v771_v50 = vld [vmem:[%s1116_s0 + $0x1b] sm:$0x1]  ;;  %v776_v51 = vld [vmem:[%s1116_s0 + $0x1c] sm:$0x1] }
   0xc   :  { %1164 = vst [vmem:[#allocation10_spill] sm:$0xff] %v762_v45  ;;  %1165 = vst [vmem:[#allocation11_spill] sm:$0xff] %v771_v50  ;;  %v781_v52 = vld [vmem:[%s1116_s0 + $0x1d] sm:$0x1]  ;;  %v790_v57 = vld [vmem:[%s1116_s0 + $0x1e] sm:$0x1] }
   0xd   :  { %1166 = vst [vmem:[#allocation12_spill] sm:$0xff] %v776_v51  ;;  %1167 = vst [vmem:[#allocation13_spill] sm:$0xff] %v781_v52  ;;  %v795_v58 = vld [vmem:[%s1116_s0 + $0x1f] sm:$0x1]  ;;  %v504_v62 = vrot.slane %v1118_v12, 9  ;;  %v505_v55 = vrot.slane %v1119_v13, 9 }
   0xe   :  { %1168 = vst [vmem:[#allocation14_spill] sm:$0xff] %v790_v57  ;;  %1169 = vst [vmem:[#allocation15_spill] sm:$0xff] %v795_v58  ;;  %v506_v54 = vrot.slane %v1120_v14, 9  ;;  %v507_v59 = vrot.slane %v1121_v18, 9  ;;  %v508_v60 = vrot.slane %v1122_v19, 9  ;;  %v509_v61 = vrot.slane %v1123_v20, 9 }
   0xf   :  { %v510_v12 = vrot.slane %v1124_v21, 9  ;;  %v511_v56 = vrot.slane %v1125_v25, 9  ;;  %v512_v13 = vrot.slane %v1126_v26, 9  ;;  %v513_v14 = vrot.slane %v1127_v27, 9 }
  0x10   :  { %v514_v18 = vrot.slane %v1128_v28, 9  ;;  %v515_v19 = vrot.slane %v1129_v32, 9  ;;  %v516_v20 = vrot.slane %v1130_v33, 9  ;;  %v517_v21 = vrot.slane %v1131_v34, 9 }
  0x11   :  { %v518_v25 = vrot.slane %v1132_v35, 9  ;;  %v519_v26 = vrot.slane %v1133_v39, 9  ;;  %v520_v27 = vrot.slane %v1134_v40, 9  ;;  %v521_v28 = vrot.slane %v1135_v41, 9 }
  0x12   :  { %v522_v32 = vrot.slane %v1136_v42, 9  ;;  %v523_v33 = vrot.slane %v1138_v46, 9  ;;  %v524_v34 = vrot.slane %v1140_v47, 9  ;;  %v525_v35 = vrot.slane %v1142_v48, 9 }
  0x13   :  { %v526_v39 = vrot.slane %v1144_v49, 9  ;;  %v527_v40 = vrot.slane %v1146_v53, 9  ;;  %v1170_v41 = vunpack.c.l.bf16 %v752_v43  ;;  %v1171_v42 = vunpack.c.l.bf16 %v757_v44 }
  0x14   :  { %v1172_v46 = vunpack.c.l.bf16 %v762_v45  ;;  %v1173_v47 = vunpack.c.l.bf16 %v771_v50  ;;  %v1174_v48 = vunpack.c.l.bf16 %v776_v51  ;;  %v1175_v49 = vunpack.c.l.bf16 %v781_v52 }
  0x15   :  { %v528_v63 = vrot.slane %v1170_v41, 9  ;;  %v529_v29 = vrot.slane %v1171_v42, 9  ;;  %v1176_v53 = vunpack.c.l.bf16 %v790_v57  ;;  %v1177_v41 = vunpack.c.l.bf16 %v795_v58 }
  0x16   :  { %v530_v30 = vrot.slane %v1172_v46, 9  ;;  %v531_v31 = vrot.slane %v1173_v47, 9  ;;  %v532_v36 = vrot.slane %v1174_v48, 9  ;;  %v533_v37 = vrot.slane %v1175_v49, 9 }
  0x17   :  { %v534_v38 = vrot.slane %v1176_v53, 9  ;;  %v535_v43 = vrot.slane %v1177_v41, 9  ;;  %v1178_v42 = vunpack.c.l.bf16 %v613_v0  ;;  %v1179_v46 = vunpack.c.l.bf16 %v618_v1 }
  0x18   :  { %v1180_v47 = vunpack.c.l.bf16 %v623_v2  ;;  %v1181_v48 = vunpack.c.l.bf16 %v628_v3  ;;  %v1182_v49 = vunpack.c.l.bf16 %v633_v4  ;;  %v1183_v53 = vunpack.c.l.bf16 %v638_v5 }
  0x19   :  { %v200_v44 = vadd.f32 %v504_v62, %v1178_v42  ;;  %v201_v45 = vadd.f32 %v505_v55, %v1179_v46  ;;  %v1184_v41 = vunpack.c.l.bf16 %v643_v6  ;;  %v1185_v0 = vunpack.c.l.bf16 %v648_v7 }
  0x1a   :  { %v202_v50 = vadd.f32 %v506_v54, %v1180_v47  ;;  %v203_v51 = vadd.f32 %v507_v59, %v1181_v48  ;;  %v204_v52 = vadd.f32 %v508_v60, %v1182_v49  ;;  %v205_v57 = vadd.f32 %v509_v61, %v1183_v53 }
  0x1b   :  { %v206_v58 = vadd.f32 %v510_v12, %v1184_v41  ;;  %v207_v62 = vadd.f32 %v511_v56, %v1185_v0  ;;  %v1186_v1 = vunpack.c.l.bf16 %v653_v8  ;;  %v1187_v2 = vunpack.c.l.bf16 %v658_v9  ;;  %v1210_v0 = vld [vmem:[#allocation9_spill] sm:$0xff] }
  0x1c   :  { %v1188_v3 = vunpack.c.l.bf16 %v663_v10  ;;  %v1189_v4 = vunpack.c.l.bf16 %v668_v11  ;;  %v1190_v5 = vunpack.c.l.bf16 %v676_v15  ;;  %v1191_v6 = vunpack.c.l.bf16 %v681_v16  ;;  %v1196_v11 = vld [vmem:[#allocation2_spill] sm:$0xff]  ;;  %v1198_v15 = vld [vmem:[#allocation3_spill] sm:$0xff]  ;;  %v1200_v16 = vld [vmem:[#allocation4_spill] sm:$0xff] }
  0x1d   :  { %v208_v55 = vadd.f32 %v512_v13, %v1186_v1  ;;  %v209_v54 = vadd.f32 %v513_v14, %v1187_v2  ;;  %v1192_v7 = vunpack.c.l.bf16 %v686_v17  ;;  %v1193_v8 = vunpack.c.l.bf16 %v695_v22  ;;  %v1202_v17 = vld [vmem:[#allocation5_spill] sm:$0xff]  ;;  %v1204_v22 = vld [vmem:[#allocation6_spill] sm:$0xff] }
  0x1e   :  { %v210_v59 = vadd.f32 %v514_v18, %v1188_v3  ;;  %v211_v60 = vadd.f32 %v515_v19, %v1189_v4  ;;  %v212_v61 = vadd.f32 %v516_v20, %v1190_v5  ;;  %v213_v12 = vadd.f32 %v517_v21, %v1191_v6  ;;  %v1212_v2 = vld [vmem:[#allocation10_spill] sm:$0xff]  ;;  %v1214_v4 = vld [vmem:[#allocation11_spill] sm:$0xff]  ;;  %v1216_v6 = vld [vmem:[#allocation12_spill] sm:$0xff] }
  0x1f   :  { %v214_v56 = vadd.f32 %v518_v25, %v1192_v7  ;;  %v215_v13 = vadd.f32 %v519_v26, %v1193_v8  ;;  %v1194_v9 = vunpack.c.l.bf16 %v700_v23  ;;  %v1195_v10 = vunpack.c.l.bf16 %v705_v24  ;;  %v1206_v23 = vld [vmem:[#allocation7_spill] sm:$0xff]  ;;  %v1208_v24 = vld [vmem:[#allocation8_spill] sm:$0xff]  ;;  %v1218_v8 = vld [vmem:[#allocation13_spill] sm:$0xff] }
  0x20   :  { %v1197_v19 = vunpack.c.l.bf16 %v1196_v11  ;;  %v1199_v20 = vunpack.c.l.bf16 %v1198_v15  ;;  %v1201_v21 = vunpack.c.l.bf16 %v1200_v16  ;;  %v1203_v25 = vunpack.c.l.bf16 %v1202_v17 }
  0x21   :  { %v216_v14 = vadd.f32 %v520_v27, %v1194_v9  ;;  %v217_v18 = vadd.f32 %v521_v28, %v1195_v10  ;;  %v1205_v26 = vunpack.c.l.bf16 %v1204_v22  ;;  %v1207_v27 = vunpack.c.l.bf16 %v1206_v23  ;;  %v1220_v10 = vld [vmem:[#allocation14_spill] sm:$0xff] }
  0x22   :  { %v218_v42 = vadd.f32 %v522_v32, %v1197_v19  ;;  %v219_v46 = vadd.f32 %v523_v33, %v1199_v20  ;;  %v220_v47 = vadd.f32 %v524_v34, %v1201_v21  ;;  %v221_v48 = vadd.f32 %v525_v35, %v1203_v25  ;;  %v1222_v19 = vld [vmem:[#allocation15_spill] sm:$0xff] }
  0x23   :  { %v222_v49 = vadd.f32 %v526_v39, %v1205_v26  ;;  %v223_v53 = vadd.f32 %v527_v40, %v1207_v27  ;;  %v1209_v28 = vunpack.c.l.bf16 %v1208_v24  ;;  %v1211_v32 = vunpack.c.l.bf16 %v1210_v0 }
  0x24   :  { %v1213_v33 = vunpack.c.l.bf16 %v1212_v2  ;;  %v1215_v34 = vunpack.c.l.bf16 %v1214_v4  ;;  %v1217_v35 = vunpack.c.l.bf16 %v1216_v6  ;;  %v1219_v39 = vunpack.c.l.bf16 %v1218_v8 }
  0x25   :  { %v224_v41 = vadd.f32 %v528_v63, %v1209_v28  ;;  %v225_v1 = vadd.f32 %v529_v29, %v1211_v32  ;;  %v1221_v40 = vunpack.c.l.bf16 %v1220_v10  ;;  %v1223_v63 = vunpack.c.l.bf16 %v1222_v19 }
  0x26   :  { %v226_v3 = vadd.f32 %v530_v30, %v1213_v33  ;;  %v227_v5 = vadd.f32 %v531_v31, %v1215_v34  ;;  %v228_v7 = vadd.f32 %v532_v36, %v1217_v35  ;;  %v229_v9 = vadd.f32 %v533_v37, %v1219_v39 }
  0x27   :  { %v230_v11 = vadd.f32 %v534_v38, %v1221_v40  ;;  %v231_v15 = vadd.f32 %v535_v43, %v1223_v63  ;;  %v930_v20 = vmul.f32 0.125, %v200_v44  ;;  %v932_v29 = vmul.f32 0.125, %v201_v45 }
  0x28   :  { %v934_v30 = vmul.f32 0.125, %v202_v50  ;;  %v936_v16 = vmul.f32 0.125, %v203_v51  ;;  %v938_v31 = vmul.f32 0.125, %v204_v52  ;;  %v940_v36 = vmul.f32 0.125, %v205_v57 }
  0x29   :  { %v942_v21 = vmul.f32 0.125, %v206_v58  ;;  %v944_v37 = vmul.f32 0.125, %v207_v62  ;;  %v946_v38 = vmul.f32 0.125, %v208_v55  ;;  %v948_v17 = vmul.f32 0.125, %v209_v54 }
  0x2a   :  { %v950_v43 = vmul.f32 0.125, %v210_v59  ;;  %v952_v44 = vmul.f32 0.125, %v211_v60  ;;  %v954_v45 = vmul.f32 0.125, %v212_v61  ;;  %v956_v50 = vmul.f32 0.125, %v213_v12 }
  0x2b   :  { %v958_v51 = vmul.f32 0.125, %v214_v56  ;;  %v960_v52 = vmul.f32 0.125, %v215_v13  ;;  %v962_v57 = vmul.f32 0.125, %v216_v14  ;;  %v964_v58 = vmul.f32 0.125, %v217_v18 }
  0x2c   :  { %v966_v62 = vmul.f32 0.125, %v218_v42  ;;  %v968_v55 = vmul.f32 0.125, %v219_v46  ;;  %v970_v54 = vmul.f32 0.125, %v220_v47  ;;  %v972_v59 = vmul.f32 0.125, %v221_v48 }
  0x2d   :  { %v974_v60 = vmul.f32 0.125, %v222_v49  ;;  %v976_v61 = vmul.f32 0.125, %v223_v53  ;;  %v978_v12 = vmul.f32 0.125, %v224_v41  ;;  %v980_v56 = vmul.f32 0.125, %v225_v1 }
  0x2e   :  { %v982_v13 = vmul.f32 0.125, %v226_v3  ;;  %v984_v14 = vmul.f32 0.125, %v227_v5  ;;  %v986_v18 = vmul.f32 0.125, %v228_v7  ;;  %v988_v42 = vmul.f32 0.125, %v229_v9 }
  0x2f   :  { %v990_v46 = vmul.f32 0.125, %v230_v11  ;;  %v992_v47 = vmul.f32 0.125, %v231_v15  ;;  %v568_v25 = vpack.c.bf16 %v930_v20, %v930_v20  ;;  %v569_v48 = vpack.c.bf16 %v932_v29, %v932_v29 }
  0x30   :  { %v570_v22 = vpack.c.bf16 %v934_v30, %v934_v30  ;;  %v571_v26 = vpack.c.bf16 %v936_v16, %v936_v16  ;;  %v572_v49 = vpack.c.bf16 %v938_v31, %v938_v31  ;;  %v573_v23 = vpack.c.bf16 %v940_v36, %v940_v36 }
  0x31   :  { %v574_v27 = vpack.c.bf16 %v942_v21, %v942_v21  ;;  %v575_v53 = vpack.c.bf16 %v944_v37, %v944_v37  ;;  %v576_v24 = vpack.c.bf16 %v946_v38, %v946_v38  ;;  %v577_v28 = vpack.c.bf16 %v948_v17, %v948_v17 }
  0x32   :  { %v578_v41 = vpack.c.bf16 %v950_v43, %v950_v43  ;;  %v579_v0 = vpack.c.bf16 %v952_v44, %v952_v44  ;;  %v580_v32 = vpack.c.bf16 %v954_v45, %v954_v45  ;;  %v581_v1 = vpack.c.bf16 %v956_v50, %v956_v50 }
  0x33   :  { %v582_v2 = vpack.c.bf16 %v958_v51, %v958_v51  ;;  %v583_v33 = vpack.c.bf16 %v960_v52, %v960_v52  ;;  %v584_v3 = vpack.c.bf16 %v962_v57, %v962_v57  ;;  %v585_v4 = vpack.c.bf16 %v964_v58, %v964_v58 }
  0x34   :  { %v586_v34 = vpack.c.bf16 %v966_v62, %v966_v62  ;;  %v587_v5 = vpack.c.bf16 %v968_v55, %v968_v55  ;;  %v588_v6 = vpack.c.bf16 %v970_v54, %v970_v54  ;;  %v589_v35 = vpack.c.bf16 %v972_v59, %v972_v59 }
  0x35   :  { %v590_v7 = vpack.c.bf16 %v974_v60, %v974_v60  ;;  %v591_v8 = vpack.c.bf16 %v976_v61, %v976_v61  ;;  %v592_v39 = vpack.c.bf16 %v978_v12, %v978_v12  ;;  %v593_v9 = vpack.c.bf16 %v980_v56, %v980_v56 }
  0x36   :  { %v594_v10 = vpack.c.bf16 %v982_v13, %v982_v13  ;;  %v595_v40 = vpack.c.bf16 %v984_v14, %v984_v14  ;;  %v596_v11 = vpack.c.bf16 %v986_v18, %v986_v18  ;;  %v597_v19 = vpack.c.bf16 %v988_v42, %v988_v42 }
  0x37   :  { %v598_v63 = vpack.c.bf16 %v990_v46, %v990_v46  ;;  %v599_v15 = vpack.c.bf16 %v992_v47, %v992_v47  ;;  %v392_v20 = vunpack.c.l.b16 %v568_v25  ;;  %v393_v29 = vunpack.c.l.b16 %v569_v48 }
  0x38   :  { %v394_v30 = vunpack.c.l.b16 %v570_v22  ;;  %v395_v16 = vunpack.c.l.b16 %v571_v26  ;;  %v396_v31 = vunpack.c.l.b16 %v572_v49  ;;  %v397_v36 = vunpack.c.l.b16 %v573_v23 }
  0x39   :  { %v398_v21 = vunpack.c.l.b16 %v574_v27  ;;  %v399_v37 = vunpack.c.l.b16 %v575_v53  ;;  %v400_v38 = vunpack.c.l.b16 %v576_v24  ;;  %v401_v17 = vunpack.c.l.b16 %v577_v28 }
  0x3a   :  { %v402_v43 = vunpack.c.l.b16 %v578_v41  ;;  %v403_v44 = vunpack.c.l.b16 %v579_v0  ;;  %v404_v45 = vunpack.c.l.b16 %v580_v32  ;;  %v405_v50 = vunpack.c.l.b16 %v581_v1 }
  0x3b   :  { %v406_v51 = vunpack.c.l.b16 %v582_v2  ;;  %v407_v52 = vunpack.c.l.b16 %v583_v33  ;;  %v408_v57 = vunpack.c.l.b16 %v584_v3  ;;  %v409_v58 = vunpack.c.l.b16 %v585_v4 }
  0x3c   :  { %v410_v62 = vunpack.c.l.b16 %v586_v34  ;;  %v411_v55 = vunpack.c.l.b16 %v587_v5  ;;  %v412_v54 = vunpack.c.l.b16 %v588_v6  ;;  %v413_v59 = vunpack.c.l.b16 %v589_v35 }
  0x3d   :  { %v414_v60 = vunpack.c.l.b16 %v590_v7  ;;  %v1058_v61 = vunpack.c.l.b16 %v591_v8  ;;  %v416_v12 = vunpack.c.l.b16 %v592_v39  ;;  %v417_v56 = vunpack.c.l.b16 %v593_v9 }
  0x3e   :  { %v418_v13 = vunpack.c.l.b16 %v594_v10  ;;  %v1060_v14 = vunpack.c.l.b16 %v595_v40  ;;  %v1062_v18 = vunpack.c.l.b16 %v596_v11  ;;  %v1064_v42 = vunpack.c.l.b16 %v597_v19 }
  0x3f   :  { %v1066_v46 = vunpack.c.l.b16 %v598_v63  ;;  %v1068_v47 = vunpack.c.l.b16 %v599_v15  ;;  %v424_v25 = vrot.slane %v393_v29, 7  ;;  %v427_v48 = vrot.slane %v394_v30, 6 }
  0x40   :  { %v430_v22 = vrot.slane %v395_v16, 5  ;;  %v433_v26 = vrot.slane %v396_v31, 4  ;;  %v436_v49 = vrot.slane %v397_v36, 3  ;;  %vm437_vm4 = vcmask 1045509  }
  0x41   :  { %v439_v23 = vrot.slane %v398_v21, 2  ;;  %v426_v27 = vsel %vm425_vm0, %v424_v25, %v392_v20  ;;  %vm440_vm5 = vcmask 1046534   ;;  %v442_v53 = vrot.slane %v399_v37, 1 }
  0x42   :  { %vm443_vm6 = vcmask 1047559   ;;  %v429_v24 = vsel %vm428_vm1, %v427_v48, %v426_v27  ;;  %v445_v28 = vrot.slane %v401_v17, 7  ;;  %v447_v41 = vrot.slane %v402_v43, 6 }
  0x43   :  { %v449_v0 = vrot.slane %v403_v44, 5  ;;  %v432_v32 = vsel %vm431_vm2, %v430_v22, %v429_v24  ;;  %v451_v1 = vrot.slane %v404_v45, 4  ;;  %v453_v2 = vrot.slane %v405_v50, 3 }
  0x44   :  { %v455_v33 = vrot.slane %v406_v51, 2  ;;  %v435_v3 = vsel %vm434_vm3, %v433_v26, %v432_v32  ;;  %v446_v4 = vsel %vm425_vm0, %v445_v28, %v400_v38  ;;  %v457_v34 = vrot.slane %v407_v52, 1 }
  0x45   :  { %v459_v5 = vrot.slane %v409_v58, 7  ;;  %v438_v6 = vsel %vm437_vm4, %v436_v49, %v435_v3  ;;  %v448_v35 = vsel %vm428_vm1, %v447_v41, %v446_v4  ;;  %v461_v7 = vrot.slane %v410_v62, 6 }
  0x46   :  { %v463_v8 = vrot.slane %v411_v55, 5  ;;  %v441_v39 = vsel %vm440_vm5, %v439_v23, %v438_v6  ;;  %v450_v9 = vsel %vm431_vm2, %v449_v0, %v448_v35  ;;  %v465_v40 = vrot.slane %v412_v54, 4 }
  0x47   :  { %v460_v10 = vsel %vm425_vm0, %v459_v5, %v408_v57  ;;  %v444_v11 = vsel %vm443_vm6, %v442_v53, %v441_v39  ;;  %v452_v19 = vsel %vm434_vm3, %v451_v1, %v450_v9  ;;  %v467_v15 = vrot.slane %v413_v59, 3 }
  0x48   :  { %v462_v63 = vsel %vm428_vm1, %v461_v7, %v460_v10  ;;  %v454_v20 = vsel %vm437_vm4, %v453_v2, %v452_v19  ;;  %v469_v30 = vrot.slane %v414_v60, 2  ;;  %v471_v16 = vrot.slane %v1058_v61, 1 }
  0x49   :  { %v464_v29 = vsel %vm431_vm2, %v463_v8, %v462_v63  ;;  %v456_v31 = vsel %vm440_vm5, %v455_v33, %v454_v20  ;;  %v473_v21 = vrot.slane %v417_v56, 7  ;;  %v475_v37 = vrot.slane %v418_v13, 6 }
  0x4a   :  { %v466_v36 = vsel %vm434_vm3, %v465_v40, %v464_v29  ;;  %v458_v38 = vsel %vm443_vm6, %v457_v34, %v456_v31  ;;  %v477_v43 = vrot.slane %v1060_v14, 5  ;;  %v479_v44 = vrot.slane %v1062_v18, 4 }
  0x4b   :  { %v468_v17 = vsel %vm437_vm4, %v467_v15, %v466_v36  ;;  %v474_v50 = vsel %vm425_vm0, %v473_v21, %v416_v12  ;;  %v481_v51 = vrot.slane %v1064_v42, 3  ;;  %v483_v52 = vrot.slane %v1066_v46, 2 }
  0x4c   :  { %v470_v45 = vsel %vm440_vm5, %v469_v30, %v468_v17  ;;  %v476_v58 = vsel %vm428_vm1, %v475_v37, %v474_v50  ;;  %v485_v62 = vrot.slane %v1068_v47, 1  ;;  %v487_v55 = vpack.c.b16 %v444_v11, %v444_v11 }
  0x4d   :  { %v472_v57 = vsel %vm443_vm6, %v471_v16, %v470_v45  ;;  %v478_v54 = vsel %vm431_vm2, %v477_v43, %v476_v58  ;;  %v488_v59 = vpack.c.b16 %v458_v38, %v458_v38  ;;  %vm495_vm7 = vcmask 125952  }
  0x4e   :  { %v489_v60 = vpack.c.b16 %v472_v57, %v472_v57  ;;  %v480_v61 = vsel %vm434_vm3, %v479_v44, %v478_v54  ;;  %496 = vst.msk [vmem:[%s1117_s1] sm:$0xf] %vm495_vm7, %v487_v55 }
  0x4f   :  { %v482_v12 = vsel %vm437_vm4, %v481_v51, %v480_v61  ;;  %497 = vst.msk [vmem:[%s1117_s1 + $0x4] sm:$0xf] %vm495_vm7, %v488_v59 }
  0x50   :  { %498 = vst.msk [vmem:[%s1117_s1 + $0x8] sm:$0xf] %vm495_vm7, %v489_v60  ;;  %v484_v56 = vsel %vm440_vm5, %v483_v52, %v482_v12 }
  0x51   :  { %v486_v13 = vsel %vm443_vm6, %v485_v62, %v484_v56 }
  0x52   :  { %v490_v14 = vpack.c.b16 %v486_v13, %v486_v13 }
  0x54   :  { %499 = vst.msk [vmem:[%s1117_s1 + $0xc] sm:$0xf] %vm495_vm7, %v490_v14 }

// kernel: _lambda_.14
= control target key start
LH: loop header
LB: loop body
LE: loop exit
PB: predicated region body
PF: predicated region fallthrough
CT: control target
= control target key end

     0   :  { %v262_v0 = vmov 0   ;;  %vm136_vm0 = vcmask 719872   ;;  %vm140_vm1 = vcmask 1043456   ;;  %s340_s0 = inlined_call_operand.vmem [shape: bf16[1,216,128], index: 0, kind: input, shape index: {}]   ;;  %s341_s1 = inlined_call_operand.vmem [shape: bf16[16,216], index: 1, kind: input, shape index: {}]   ;;  %s342_s2 = inlined_call_operand.vmem [shape: f32[16,1], index: 2, kind: input, shape index: {}]   ;;  %s343_s3 = inlined_call_operand.vmem [shape: bf16[1,16,128], index: 3, kind: output, shape index: {}]  }
   0x1   :  { %144 = vmatprep.subr.bf16.mxu0 %v262_v0  ;;  %v245_v1 = vld [vmem:[%s340_s0 + $0x38] sm:$0xff]   ;;  %244 = vset.pattern.permute.xlu0 %v262_v0  ;;  %v246_v2 = vld [vmem:[%s340_s0 + $0x30] sm:$0xff]   ;;  %v247_v3 = vld [vmem:[%s340_s0 + $0x28] sm:$0xff]  }
   0x2   :  { %145 = vmatpush1.bf16.msra.mxu0 %v245_v1  ;;  %v248_v4 = vld [vmem:[%s340_s0 + $0x20] sm:$0xff]   ;;  %v249_v5 = vld [vmem:[%s340_s0 + $0x18] sm:$0xff]   ;;  %v16_v8 = vld [vmem:[%s342_s2 + $0x8] sm:$0xff] }
   0x3   :  { %146 = vmatprep.subr.bf16.mxu0 %v262_v0  ;;  %v261_v6 = vld [vmem:[%s341_s1 + $0x4] ss:$8 sps:$4 sm:$0xff]   ;;  %v250_v9 = vld [vmem:[%s340_s0 + $0x10] sm:$0xff]   ;;  %v253_v12 = vld [vmem:[%s340_s0 + $0x68] ss:$0 sps:$4 sm:$0xff]  }
   0x4   :  { %v15_v7 = vld [vmem:[%s342_s2] sm:$0xff]  ;;  %233 = vmatprep.mubr.msk.bf16.mxu0 %vm136_vm0, %v261_v6  ;;  %v251_v10 = vld [vmem:[%s340_s0 + $0x8] sm:$0xff]   ;;  %v142_v13 = vsel %vm140_vm1, %v253_v12, 0  ;;  %v255_v15 = vld [vmem:[%s340_s0 + $0x58] sm:$0xff]  }
   0x5   :  { %187 = vperm.xlu0 %244, %v15_v7   ;;  %v252_v11 = vld [vmem:[%s340_s0] sm:$0xff]   ;;  %v256_v16 = vld [vmem:[%s340_s0 + $0x50] sm:$0xff]   ;;  %v257_v17 = vld [vmem:[%s340_s0 + $0x48] sm:$0xff]  }
   0x6   :  { %147 = vmatpush1.bf16.msra.mxu0 %v246_v2  ;;  %v254_v14 = vld [vmem:[%s340_s0 + $0x60] sm:$0xff]  }
   0x7   :  { %148 = vmatprep.subr.bf16.mxu0 %v262_v0  ;;  %v258_v18 = vld [vmem:[%s340_s0 + $0x40] sm:$0xff]  }
   0x8   :  { %v259_v19 = vld [vmem:[%s341_s1] ss:$8 sps:$4 sm:$0xff]  }
   0x9   :  { %192 = vperm.xlu0 %244, %v16_v8  }
   0xa   :  { %149 = vmatpush1.bf16.msra.mxu0 %v247_v3 }
   0xb   :  { %150 = vmatprep.subr.bf16.mxu0 %v262_v0 }
   0xe   :  { %151 = vmatpush1.bf16.msra.mxu0 %v248_v4 }
   0xf   :  { %152 = vmatprep.subr.bf16.mxu0 %v262_v0 }
  0x12   :  { %153 = vmatpush1.bf16.msra.mxu0 %v249_v5 }
  0x13   :  { %154 = vmatprep.subr.bf16.mxu0 %v262_v0 }
  0x16   :  { %155 = vmatpush1.bf16.msra.mxu0 %v250_v9 }
  0x17   :  { %156 = vmatprep.subr.bf16.mxu0 %v262_v0 }
  0x1a   :  { %157 = vmatpush1.bf16.msra.mxu0 %v251_v10 }
  0x1b   :  { %158 = vmatprep.subr.bf16.mxu0 %v262_v0 }
  0x1e   :  { %159 = vmatpush1.bf16.msra.mxu0 %v252_v11 }
  0x1f   :  { %164 = vmatprep.subr.bf16.mxu0 %v262_v0 }
  0x22   :  { %165 = vmatpush2.bf16.msra.mxu0 %v142_v13 }
  0x23   :  { %166 = vmatprep.subr.bf16.mxu0 %v262_v0 }
  0x26   :  { %167 = vmatpush2.bf16.msra.mxu0 %v254_v14 }
  0x27   :  { %168 = vmatprep.subr.bf16.mxu0 %v262_v0 }
  0x2a   :  { %169 = vmatpush2.bf16.msra.mxu0 %v255_v15 }
  0x2b   :  { %170 = vmatprep.subr.bf16.mxu0 %v262_v0 }
  0x2e   :  { %171 = vmatpush2.bf16.msra.mxu0 %v256_v16 }
  0x2f   :  { %172 = vmatprep.subr.bf16.mxu0 %v262_v0 }
  0x32   :  { %173 = vmatpush2.bf16.msra.mxu0 %v257_v17 }
  0x33   :  { %174 = vmatprep.subr.bf16.mxu0 %v262_v0 }
  0x36   :  { %175 = vmatpush2.bf16.msra.mxu0 %v258_v18 }
  0x39   :  { %177 = vmatmul.mubr.bf16.vlgmr.msra.gmra.mxu0 %v259_v19 }
  0x80   :  { %v188_v20 = vpop.permute.xlu0 %187 }
  0x84   :  { %v193_v24 = vpop.permute.xlu0 %192 }
  0xf9   :  { %v178_v21 = vpop.f32.mrf.mxu0 }
  0xfa   :  { %v195_v22 = vadd.f32 %v188_v20, %v178_v21 }
  0xfb   :  { %v180_v23 = vpop.f32.mrf.mxu0 }
  0xfc   :  { %v199_v26 = vmul.f32 0.2, %v195_v22  ;;  %vm197_vm2 = vcmp.ge.f32.partialorder %v195_v22, 0.0 }
  0xfd   :  { %v181_v25 = vpop.f32.mrf.mxu0 }
  0xfe   :  { %v196_v27 = vadd.f32 %v193_v24, %v181_v25  ;;  %v201_v30 = vsel %vm197_vm2, %v195_v22, %v199_v26 }
  0xff   :  { %v183_v28 = vpop.f32.mrf.mxu0 }
 0x100   :  { %vm198_vm3 = vcmp.ge.f32.partialorder %v196_v27, 0.0  ;;  %v200_v29 = vmul.f32 0.2, %v196_v27 }
 0x102   :  { %v202_v31 = vsel %vm198_vm3, %v196_v27, %v200_v29 }
 0x103   :  { %v241_v32 = vpack.c.bf16 %v202_v31, %v201_v30 }
 0x105   :  { %242 = vst [vmem:[%s343_s3] sm:$0xff] %v241_v32  }

// kernel: _lambda_.16
= control target key start
LH: loop header
LB: loop body
LE: loop exit
PB: predicated region body
PF: predicated region fallthrough
CT: control target
= control target key end

     0   :  { %v1762_v14 = vmov 0   ;;  %vm685_vm0 = vcmask 392192   ;;  %vm1193_vm1 = vcmask 719872   ;;  %vm1197_vm2 = vcmask 1043456   ;;  %s2317_s0 = inlined_call_operand.vmem [shape: bf16[1,432,512], index: 0, kind: input, shape index: {}]   ;;  %s2318_s1 = inlined_call_operand.vmem [shape: bf16[8,432], index: 1, kind: input, shape index: {}]   ;;  %s2319_s2 = inlined_call_operand.vmem [shape: bf16[1,216,512], index: 2, kind: input, shape index: {}]   ;;  %s2320_s4 = inlined_call_operand.vmem [shape: f32[8,1], index: 4, kind: input, shape index: {}]   ;;  %s2321_s3 = inlined_call_operand.vmem [shape: bf16[8,216], index: 3, kind: input, shape index: {}]   ;;  %s2322_s5 = inlined_call_operand.vmem [shape: bf16[1,8,512], index: 5, kind: output, shape index: {}]  }
   0x1   :  { %v1512_v0 = vld [vmem:[%s2317_s0 + $0xe4] ss:$16 sps:$4 sm:$0xff]   ;;  %v1516_v2 = vld [vmem:[%s2317_s0 + $0xe0] ss:$16 sps:$4 sm:$0xff]   ;;  %1511 = vset.pattern.permute.xlu0 %v1762_v14  ;;  %v23_v35 = vld [vmem:[%s2318_s1 + $0x8] sm:$0xff] }
   0x2   :  { %v1514_v1 = vld [vmem:[%s2317_s0 + $0x2e4] ss:$16 sps:$4 sm:$0xff]   ;;  %689 = vmatprep.subr.bf16.mxu0 %v1512_v0  ;;  %v1517_v3 = vld [vmem:[%s2317_s0 + $0x2e0] ss:$16 sps:$4 sm:$0xff]   ;;  %v1898_v36 = vcombine.high %v23_v35, %v23_v35  ;;  %v1584_v48 = vld [vmem:[%s2317_s0 + $0xec] ss:$16 sps:$4 sm:$0xff]   ;;  %v1938_v49 = vcombine.low %v23_v35, %v23_v35 }
   0x3   :  { %730 = vmatprep.subr.bf16.mxu1 %v1514_v1  ;;  %v1518_v4 = vld [vmem:[%s2317_s0 + $0xc4] ss:$16 sps:$4 sm:$0xff]   ;;  %690 = vmatpush1.bf16.msra.mxu0 %v1516_v2  ;;  %v1522_v6 = vld [vmem:[%s2317_s0 + $0xc0] ss:$16 sps:$4 sm:$0xff]   ;;  %v1582_v51 = vld [vmem:[%s2317_s0 + $0xe8] ss:$16 sps:$4 sm:$0xff]  }
   0x4   :  { %731 = vmatpush1.bf16.msra.mxu1 %v1517_v3  ;;  %v1520_v5 = vld [vmem:[%s2317_s0 + $0x2c4] ss:$16 sps:$4 sm:$0xff]   ;;  %691 = vmatprep.subr.bf16.mxu0 %v1518_v4  ;;  %v1523_v7 = vld [vmem:[%s2317_s0 + $0x2c0] ss:$16 sps:$4 sm:$0xff]   ;;  %v1590_v55 = vld [vmem:[%s2317_s0 + $0xcc] ss:$16 sps:$4 sm:$0xff]  }
   0x5   :  { %732 = vmatprep.subr.bf16.mxu1 %v1520_v5  ;;  %v1524_v8 = vld [vmem:[%s2317_s0 + $0xa4] ss:$16 sps:$4 sm:$0xff]   ;;  %v1528_v10 = vld [vmem:[%s2317_s0 + $0xa0] ss:$16 sps:$4 sm:$0xff]   ;;  %1442 = vmatprep.mubr.msk.bf16.mxu1 %vm685_vm0, %v1898_v36  ;;  %v1588_v56 = vld [vmem:[%s2317_s0 + $0xc8] ss:$16 sps:$4 sm:$0xff]  }
   0x6   :  { %v1526_v9 = vld [vmem:[%s2317_s0 + $0x2a4] ss:$16 sps:$4 sm:$0xff]   ;;  %v1529_v11 = vld [vmem:[%s2317_s0 + $0x2a0] ss:$16 sps:$4 sm:$0xff]   ;;  %v1596_v59 = vld [vmem:[%s2317_s0 + $0xac] ss:$16 sps:$4 sm:$0xff]  }
   0x7   :  { %692 = vmatpush1.bf16.msra.mxu0 %v1522_v6  ;;  %v1530_v12 = vld [vmem:[%s2317_s0 + $0x84] ss:$16 sps:$4 sm:$0xff]   ;;  %v1534_v15 = vld [vmem:[%s2317_s0 + $0x80] ss:$16 sps:$4 sm:$0xff]   ;;  %v1594_v60 = vld [vmem:[%s2317_s0 + $0xa8] ss:$16 sps:$4 sm:$0xff]  }
   0x8   :  { %733 = vmatpush1.bf16.msra.mxu1 %v1523_v7  ;;  %693 = vmatprep.subr.bf16.mxu0 %v1524_v8  ;;  %v1532_v13 = vld [vmem:[%s2317_s0 + $0x284] ss:$16 sps:$4 sm:$0xff]   ;;  %v1535_v16 = vld [vmem:[%s2317_s0 + $0x280] ss:$16 sps:$4 sm:$0xff]   ;;  %v1602_v63 = vld [vmem:[%s2317_s0 + $0x8c] ss:$16 sps:$4 sm:$0xff]  }
   0x9   :  { %734 = vmatprep.subr.bf16.mxu1 %v1526_v9  ;;  %v1536_v17 = vld [vmem:[%s2317_s0 + $0x64] ss:$16 sps:$4 sm:$0xff]   ;;  %v1540_v19 = vld [vmem:[%s2317_s0 + $0x60] ss:$16 sps:$4 sm:$0xff]   ;;  %v1600_v0 = vld [vmem:[%s2317_s0 + $0x88] ss:$16 sps:$4 sm:$0xff]  }
   0xa   :  { %v1538_v18 = vld [vmem:[%s2317_s0 + $0x264] ss:$16 sps:$4 sm:$0xff]   ;;  %v1541_v20 = vld [vmem:[%s2317_s0 + $0x260] ss:$16 sps:$4 sm:$0xff]   ;;  %v1608_v3 = vld [vmem:[%s2317_s0 + $0x6c] ss:$16 sps:$4 sm:$0xff]  }
   0xb   :  { %694 = vmatpush1.bf16.msra.mxu0 %v1528_v10  ;;  %v1542_v21 = vld [vmem:[%s2317_s0 + $0x44] ss:$16 sps:$4 sm:$0xff]   ;;  %v1546_v23 = vld [vmem:[%s2317_s0 + $0x40] ss:$16 sps:$4 sm:$0xff]   ;;  %v1606_v4 = vld [vmem:[%s2317_s0 + $0x68] ss:$16 sps:$4 sm:$0xff]  }
   0xc   :  { %735 = vmatpush1.bf16.msra.mxu1 %v1529_v11  ;;  %695 = vmatprep.subr.bf16.mxu0 %v1530_v12  ;;  %v1544_v22 = vld [vmem:[%s2317_s0 + $0x244] ss:$16 sps:$4 sm:$0xff]   ;;  %v1547_v24 = vld [vmem:[%s2317_s0 + $0x240] ss:$16 sps:$4 sm:$0xff]   ;;  %v1614_v6 = vld [vmem:[%s2317_s0 + $0x4c] ss:$16 sps:$4 sm:$0xff]  }
   0xd   :  { %736 = vmatprep.subr.bf16.mxu1 %v1532_v13  ;;  %v1548_v25 = vld [vmem:[%s2317_s0 + $0x24] ss:$16 sps:$4 sm:$0xff]   ;;  %v1552_v27 = vld [vmem:[%s2317_s0 + $0x20] ss:$16 sps:$4 sm:$0xff]   ;;  %v1617_v7 = vld [vmem:[%s2317_s0 + $0x2ec] ss:$16 sps:$4 sm:$0xff]  }
   0xe   :  { %v1550_v26 = vld [vmem:[%s2317_s0 + $0x224] ss:$16 sps:$4 sm:$0xff]   ;;  %v1553_v28 = vld [vmem:[%s2317_s0 + $0x220] ss:$16 sps:$4 sm:$0xff]   ;;  %v1612_v9 = vld [vmem:[%s2317_s0 + $0x48] ss:$16 sps:$4 sm:$0xff]  }
   0xf   :  { %696 = vmatpush1.bf16.msra.mxu0 %v1534_v15  ;;  %v1554_v29 = vld [vmem:[%s2317_s0 + $0x4] ss:$16 sps:$4 sm:$0xff]   ;;  %v1558_v31 = vld [vmem:[%s2317_s0] ss:$16 sps:$4 sm:$0xff]   ;;  %v1615_v10 = vld [vmem:[%s2317_s0 + $0x2e8] ss:$16 sps:$4 sm:$0xff]  }
  0x10   :  { %737 = vmatpush1.bf16.msra.mxu1 %v1535_v16  ;;  %697 = vmatprep.subr.bf16.mxu0 %v1536_v17  ;;  %v1556_v30 = vld [vmem:[%s2317_s0 + $0x204] ss:$16 sps:$4 sm:$0xff]   ;;  %v1559_v32 = vld [vmem:[%s2317_s0 + $0x200] ss:$16 sps:$4 sm:$0xff]   ;;  %v1620_v11 = vld [vmem:[%s2317_s0 + $0x2c] ss:$16 sps:$4 sm:$0xff]  }
  0x11   :  { %738 = vmatprep.subr.bf16.mxu1 %v1538_v18  ;;  %v1560_v33 = vld [vmem:[%s2317_s0 + $0x1e4] ss:$16 sps:$4 sm:$0xff]   ;;  %v1564_v37 = vld [vmem:[%s2317_s0 + $0x1e0] ss:$16 sps:$4 sm:$0xff]   ;;  %v1623_v12 = vld [vmem:[%s2317_s0 + $0x2cc] ss:$16 sps:$4 sm:$0xff]  }
  0x12   :  { %v1562_v34 = vld [vmem:[%s2317_s0 + $0x344] ss:$16 sps:$4 sm:$0xff]   ;;  %v1565_v38 = vld [vmem:[%s2317_s0 + $0x340] ss:$16 sps:$4 sm:$0xff]   ;;  %v1618_v13 = vld [vmem:[%s2317_s0 + $0x28] ss:$16 sps:$4 sm:$0xff]  }
  0x13   :  { %698 = vmatpush1.bf16.msra.mxu0 %v1540_v19  ;;  %v1566_v39 = vld [vmem:[%s2317_s0 + $0x1c4] ss:$16 sps:$4 sm:$0xff]   ;;  %v1570_v41 = vld [vmem:[%s2317_s0 + $0x1c0] ss:$16 sps:$4 sm:$0xff]   ;;  %v1621_v14 = vld [vmem:[%s2317_s0 + $0x2c8] ss:$16 sps:$4 sm:$0xff]  }
  0x14   :  { %739 = vmatpush1.bf16.msra.mxu1 %v1541_v20  ;;  %699 = vmatprep.subr.bf16.mxu0 %v1542_v21  ;;  %v1568_v40 = vld [vmem:[%s2317_s0 + $0x324] ss:$16 sps:$4 sm:$0xff]   ;;  %v1571_v42 = vld [vmem:[%s2317_s0 + $0x320] ss:$16 sps:$4 sm:$0xff]   ;;  %v1626_v15 = vld [vmem:[%s2317_s0 + $0xc] ss:$16 sps:$4 sm:$0xff]  }
  0x15   :  { %740 = vmatprep.subr.bf16.mxu1 %v1544_v22  ;;  %v1572_v43 = vld [vmem:[%s2317_s0 + $0x1a4] ss:$16 sps:$4 sm:$0xff]   ;;  %v1576_v45 = vld [vmem:[%s2317_s0 + $0x1a0] ss:$16 sps:$4 sm:$0xff]   ;;  %v1629_v16 = vld [vmem:[%s2317_s0 + $0x2ac] ss:$16 sps:$4 sm:$0xff]  }
  0x16   :  { %v1574_v44 = vld [vmem:[%s2317_s0 + $0x304] ss:$16 sps:$4 sm:$0xff]   ;;  %v1577_v46 = vld [vmem:[%s2317_s0 + $0x300] ss:$16 sps:$4 sm:$0xff]   ;;  %v1624_v17 = vld [vmem:[%s2317_s0 + $0x8] ss:$16 sps:$4 sm:$0xff]  }
  0x17   :  { %700 = vmatpush1.bf16.msra.mxu0 %v1546_v23  ;;  %v1580_v47 = vld [vmem:[%s2317_s0 + $0x184] ss:$16 sps:$4 sm:$0xff]   ;;  %v1585_v52 = vld [vmem:[%s2317_s0 + $0x180] ss:$16 sps:$4 sm:$0xff]   ;;  %v1627_v18 = vld [vmem:[%s2317_s0 + $0x2a8] ss:$16 sps:$4 sm:$0xff]  }
  0x18   :  { %741 = vmatpush1.bf16.msra.mxu1 %v1547_v24  ;;  %701 = vmatprep.subr.bf16.mxu0 %v1548_v25  ;;  %v22_v50 = vld [vmem:[%s2318_s1] sm:$0xff]  ;;  %v1632_v19 = vld [vmem:[%s2317_s0 + $0x1ec] ss:$16 sps:$4 sm:$0xff]   ;;  %v1630_v21 = vld [vmem:[%s2317_s0 + $0x1e8] ss:$16 sps:$4 sm:$0xff]  }
  0x19   :  { %742 = vmatprep.subr.bf16.mxu1 %v1550_v26  ;;  %v1331_v53 = vcombine.high %v22_v50, %v22_v50  ;;  %v1586_v54 = vld [vmem:[%s2317_s0 + $0x164] ss:$16 sps:$4 sm:$0xff]   ;;  %v1591_v57 = vld [vmem:[%s2317_s0 + $0x160] ss:$16 sps:$4 sm:$0xff]   ;;  %v2004_v8 = vcombine.low %v22_v50, %v22_v50  ;;  %v1635_v20 = vld [vmem:[%s2317_s0 + $0x28c] ss:$16 sps:$4 sm:$0xff]  }
  0x1a   :  { %v1592_v58 = vld [vmem:[%s2317_s0 + $0x144] ss:$16 sps:$4 sm:$0xff]   ;;  %v1597_v61 = vld [vmem:[%s2317_s0 + $0x140] ss:$16 sps:$4 sm:$0xff]   ;;  %v1633_v22 = vld [vmem:[%s2317_s0 + $0x288] ss:$16 sps:$4 sm:$0xff]  }
  0x1b   :  { %702 = vmatpush1.bf16.msra.mxu0 %v1552_v27  ;;  %721 = vmatprep.mubr.bf16.mxu0 %v1331_v53  ;;  %v1598_v62 = vld [vmem:[%s2317_s0 + $0x124] ss:$16 sps:$4 sm:$0xff]   ;;  %v1603_v1 = vld [vmem:[%s2317_s0 + $0x120] ss:$16 sps:$4 sm:$0xff]   ;;  %v1638_v23 = vld [vmem:[%s2317_s0 + $0x1cc] ss:$16 sps:$4 sm:$0xff]  }
  0x1c   :  { %743 = vmatpush1.bf16.msra.mxu1 %v1553_v28  ;;  %703 = vmatprep.subr.bf16.mxu0 %v1554_v29  ;;  %v1604_v2 = vld [vmem:[%s2317_s0 + $0x104] ss:$16 sps:$4 sm:$0xff]   ;;  %v1609_v5 = vld [vmem:[%s2317_s0 + $0x100] ss:$16 sps:$4 sm:$0xff]   ;;  %v1641_v24 = vld [vmem:[%s2317_s0 + $0x26c] ss:$16 sps:$4 sm:$0xff]  }
  0x1d   :  { %744 = vmatprep.subr.bf16.mxu1 %v1556_v30  ;;  %v1636_v25 = vld [vmem:[%s2317_s0 + $0x1c8] ss:$16 sps:$4 sm:$0xff]   ;;  %v1644_v27 = vld [vmem:[%s2317_s0 + $0x1ac] ss:$16 sps:$4 sm:$0xff]  }
  0x1e   :  { %v1639_v26 = vld [vmem:[%s2317_s0 + $0x268] ss:$16 sps:$4 sm:$0xff]   ;;  %v1647_v28 = vld [vmem:[%s2317_s0 + $0x24c] ss:$16 sps:$4 sm:$0xff]  }
  0x1f   :  { %704 = vmatpush1.bf16.msra.mxu0 %v1558_v31  ;;  %v1642_v29 = vld [vmem:[%s2317_s0 + $0x1a8] ss:$16 sps:$4 sm:$0xff]   ;;  %v1650_v31 = vld [vmem:[%s2317_s0 + $0x18c] ss:$16 sps:$4 sm:$0xff]  }
  0x20   :  { %745 = vmatpush1.bf16.msra.mxu1 %v1559_v32  ;;  %705 = vmatprep.subr.bf16.mxu0 %v1560_v33  ;;  %v1645_v30 = vld [vmem:[%s2317_s0 + $0x248] ss:$16 sps:$4 sm:$0xff]   ;;  %v1653_v32 = vld [vmem:[%s2317_s0 + $0x22c] ss:$16 sps:$4 sm:$0xff]  }
  0x21   :  { %756 = vmatprep.subr.bf16.mxu1 %v1562_v34  ;;  %v1648_v33 = vld [vmem:[%s2317_s0 + $0x188] ss:$16 sps:$4 sm:$0xff]   ;;  %v1656_v35 = vld [vmem:[%s2317_s0 + $0x16c] ss:$16 sps:$4 sm:$0xff]  }
  0x22   :  { %v1651_v34 = vld [vmem:[%s2317_s0 + $0x228] ss:$16 sps:$4 sm:$0xff]   ;;  %v1677_v50 = vld [vmem:[%s2317_s0 + $0x30c] ss:$16 sps:$4 sm:$0xff]  }
  0x23   :  { %706 = vmatpush2.bf16.msra.mxu0 %v1564_v37  ;;  %v1654_v37 = vld [vmem:[%s2317_s0 + $0x168] ss:$16 sps:$4 sm:$0xff]  }
  0x24   :  { %757 = vmatpush2.bf16.msra.mxu1 %v1565_v38  ;;  %707 = vmatprep.subr.bf16.mxu0 %v1566_v39  ;;  %v21_v38 = vld [vmem:[%s2320_s4] sm:$0xff]  ;;  %v1657_v39 = vld [vmem:[%s2317_s0 + $0x208] ss:$16 sps:$4 sm:$0xff]  }
  0x25   :  { %758 = vmatprep.subr.bf16.mxu1 %v1568_v40  ;;  %v1662_v40 = vld [vmem:[%s2317_s0 + $0x14c] ss:$16 sps:$4 sm:$0xff]   ;;  %855 = vperm.xlu0 %1511, %v21_v38   ;;  %v1744_v38 = vld [vmem:[%s2319_s2 + $0x144] ss:$16 sps:$4 sm:$0xff]  }
  0x27   :  { %708 = vmatpush2.bf16.msra.mxu0 %v1570_v41  ;;  %v1665_v41 = vld [vmem:[%s2317_s0 + $0x34c] ss:$16 sps:$4 sm:$0xff]  }
  0x28   :  { %759 = vmatpush2.bf16.msra.mxu1 %v1571_v42  ;;  %709 = vmatprep.subr.bf16.mxu0 %v1572_v43  ;;  %v1660_v42 = vld [vmem:[%s2317_s0 + $0x148] ss:$16 sps:$4 sm:$0xff]  }
  0x29   :  { %760 = vmatprep.subr.bf16.mxu1 %v1574_v44  ;;  %v1663_v43 = vld [vmem:[%s2317_s0 + $0x348] ss:$16 sps:$4 sm:$0xff]   ;;  %v1668_v44 = vld [vmem:[%s2317_s0 + $0x12c] ss:$16 sps:$4 sm:$0xff]  }
  0x2b   :  { %710 = vmatpush2.bf16.msra.mxu0 %v1576_v45  ;;  %v1671_v45 = vld [vmem:[%s2317_s0 + $0x32c] ss:$16 sps:$4 sm:$0xff]  }
  0x2c   :  { %761 = vmatpush2.bf16.msra.mxu1 %v1577_v46  ;;  %711 = vmatprep.subr.bf16.mxu0 %v1580_v47  ;;  %v1666_v46 = vld [vmem:[%s2317_s0 + $0x128] ss:$16 sps:$4 sm:$0xff]  }
  0x2d   :  { %771 = vmatprep.subr.bf16.mxu1 %v1584_v48  ;;  %v1669_v47 = vld [vmem:[%s2317_s0 + $0x328] ss:$16 sps:$4 sm:$0xff]   ;;  %v1674_v48 = vld [vmem:[%s2317_s0 + $0x10c] ss:$16 sps:$4 sm:$0xff]  }
  0x2f   :  { %763 = vmatmul.mubr.bf16.vlgmr.msra.gmra.mxu1 %v1938_v49  ;;  %712 = vmatpush2.bf16.msra.mxu0 %v1585_v52  ;;  %v1675_v52 = vld [vmem:[%s2317_s0 + $0x308] ss:$16 sps:$4 sm:$0xff]  }
  0x30   :  { %772 = vmatpush1.bf16.msra.mxu1 %v1582_v51  ;;  %713 = vmatprep.subr.bf16.mxu0 %v1586_v54  ;;  %v1672_v51 = vld [vmem:[%s2317_s0 + $0x108] ss:$16 sps:$4 sm:$0xff]   ;;  %v1683_v54 = vld [vmem:[%s2319_s2 + $0xec] ss:$16 sps:$4 sm:$0xff]  }
  0x31   :  { %773 = vmatprep.subr.bf16.mxu1 %v1590_v55  ;;  %803 = vmatprep.mubr.bf16.mxu1 %v1331_v53  ;;  %v1680_v53 = vld [vmem:[%s2319_s2 + $0xe4] ss:$16 sps:$4 sm:$0xff]   ;;  %v1678_v55 = vld [vmem:[%s2319_s2 + $0xe0] ss:$16 sps:$4 sm:$0xff]  }
  0x33   :  { %714 = vmatpush2.bf16.msra.mxu0 %v1591_v57  ;;  %v2153_v57 = vld [vmem:[%s2321_s3] sm:$0xff] }
  0x34   :  { %774 = vmatpush1.bf16.msra.mxu1 %v1588_v56  ;;  %715 = vmatprep.subr.bf16.mxu0 %v1592_v58  ;;  %v1681_v56 = vld [vmem:[%s2319_s2 + $0xe8] ss:$16 sps:$4 sm:$0xff]   ;;  %v1686_v58 = vld [vmem:[%s2319_s2 + $0xc4] ss:$16 sps:$4 sm:$0xff]  }
  0x35   :  { %775 = vmatprep.subr.bf16.mxu1 %v1596_v59  ;;  %v1689_v59 = vld [vmem:[%s2319_s2 + $0xcc] ss:$16 sps:$4 sm:$0xff]  }
  0x37   :  { %716 = vmatpush2.bf16.msra.mxu0 %v1597_v61  ;;  %v1684_v61 = vld [vmem:[%s2319_s2 + $0xc0] ss:$16 sps:$4 sm:$0xff]  }
  0x38   :  { %776 = vmatpush1.bf16.msra.mxu1 %v1594_v60  ;;  %717 = vmatprep.subr.bf16.mxu0 %v1598_v62  ;;  %v1445_v60 = vcombine.high %v2153_v57, %v2153_v57  ;;  %v1687_v62 = vld [vmem:[%s2319_s2 + $0xc8] ss:$16 sps:$4 sm:$0xff]  }
  0x39   :  { %777 = vmatprep.subr.bf16.mxu1 %v1602_v63  ;;  %v1692_v63 = vld [vmem:[%s2319_s2 + $0xa4] ss:$16 sps:$4 sm:$0xff]  }
  0x3b   :  { %718 = vmatpush2.bf16.msra.mxu0 %v1603_v1  ;;  %v1693_v1 = vld [vmem:[%s2319_s2 + $0xa8] ss:$16 sps:$4 sm:$0xff]  }
  0x3c   :  { %778 = vmatpush1.bf16.msra.mxu1 %v1600_v0  ;;  %719 = vmatprep.subr.bf16.mxu0 %v1604_v2  ;;  %v1690_v0 = vld [vmem:[%s2319_s2 + $0xa0] ss:$16 sps:$4 sm:$0xff]   ;;  %v1698_v2 = vld [vmem:[%s2319_s2 + $0x84] ss:$16 sps:$4 sm:$0xff]  }
  0x3d   :  { %779 = vmatprep.subr.bf16.mxu1 %v1608_v3  ;;  %v1701_v3 = vld [vmem:[%s2319_s2 + $0x8c] ss:$16 sps:$4 sm:$0xff]  }
  0x3f   :  { %720 = vmatpush2.bf16.msra.mxu0 %v1609_v5  ;;  %v1699_v5 = vld [vmem:[%s2319_s2 + $0x88] ss:$16 sps:$4 sm:$0xff]  }
  0x40   :  { %780 = vmatpush1.bf16.msra.mxu1 %v1606_v4  ;;  %812 = vmatprep.subr.bf16.mxu0 %v1617_v7  ;;  %v1696_v4 = vld [vmem:[%s2319_s2 + $0x80] ss:$16 sps:$4 sm:$0xff]   ;;  %v1707_v7 = vld [vmem:[%s2319_s2 + $0x6c] ss:$16 sps:$4 sm:$0xff]  }
  0x41   :  { %781 = vmatprep.subr.bf16.mxu1 %v1614_v6  ;;  %v1704_v6 = vld [vmem:[%s2319_s2 + $0x64] ss:$16 sps:$4 sm:$0xff]  }
  0x42   :  { %722 = vmatmul.mubr.bf16.vlgmr.msra.gmra.mxu0 %v2004_v8 }
  0x43   :  { %813 = vmatpush1.bf16.msra.mxu0 %v1615_v10  ;;  %1443 = vmatprep.mubr.msk.bf16.mxu0 %vm685_vm0, %v1898_v36  ;;  %v1659_v36 = vld [vmem:[%s2317_s0 + $0x20c] ss:$16 sps:$4 sm:$0xff]   ;;  %v1710_v10 = vld [vmem:[%s2319_s2 + $0x44] ss:$16 sps:$4 sm:$0xff]  }
  0x44   :  { %782 = vmatpush1.bf16.msra.mxu1 %v1612_v9  ;;  %814 = vmatprep.subr.bf16.mxu0 %v1623_v12  ;;  %v1705_v9 = vld [vmem:[%s2319_s2 + $0x68] ss:$16 sps:$4 sm:$0xff]   ;;  %v1708_v12 = vld [vmem:[%s2319_s2 + $0x40] ss:$16 sps:$4 sm:$0xff]  }
  0x45   :  { %783 = vmatprep.subr.bf16.mxu1 %v1620_v11  ;;  %v1713_v11 = vld [vmem:[%s2319_s2 + $0x4c] ss:$16 sps:$4 sm:$0xff]  }
  0x47   :  { %815 = vmatpush1.bf16.msra.mxu0 %v1621_v14  ;;  %v1716_v14 = vld [vmem:[%s2319_s2 + $0x24] ss:$16 sps:$4 sm:$0xff]  }
  0x48   :  { %784 = vmatpush1.bf16.msra.mxu1 %v1618_v13  ;;  %816 = vmatprep.subr.bf16.mxu0 %v1629_v16  ;;  %v1711_v13 = vld [vmem:[%s2319_s2 + $0x48] ss:$16 sps:$4 sm:$0xff]   ;;  %v1714_v16 = vld [vmem:[%s2319_s2 + $0x20] ss:$16 sps:$4 sm:$0xff]  }
  0x49   :  { %785 = vmatprep.subr.bf16.mxu1 %v1626_v15  ;;  %v1719_v15 = vld [vmem:[%s2319_s2 + $0x2c] ss:$16 sps:$4 sm:$0xff]  }
  0x4b   :  { %817 = vmatpush1.bf16.msra.mxu0 %v1627_v18  ;;  %v1722_v18 = vld [vmem:[%s2319_s2 + $0x4] ss:$16 sps:$4 sm:$0xff]  }
  0x4c   :  { %786 = vmatpush1.bf16.msra.mxu1 %v1624_v17  ;;  %818 = vmatprep.subr.bf16.mxu0 %v1635_v20  ;;  %v1717_v17 = vld [vmem:[%s2319_s2 + $0x28] ss:$16 sps:$4 sm:$0xff]   ;;  %v915_v20 = vld [vmem:[%s2319_s2 + $0x1a0] sm:$0xff] }
  0x4d   :  { %787 = vmatprep.subr.bf16.mxu1 %v1632_v19  ;;  %v1725_v19 = vld [vmem:[%s2319_s2 + $0xc] ss:$16 sps:$4 sm:$0xff]  }
  0x4f   :  { %819 = vmatpush1.bf16.msra.mxu0 %v1633_v22  ;;  %v1720_v22 = vld [vmem:[%s2319_s2] ss:$16 sps:$4 sm:$0xff]  }
  0x50   :  { %788 = vmatpush2.bf16.msra.mxu1 %v1630_v21  ;;  %820 = vmatprep.subr.bf16.mxu0 %v1641_v24  ;;  %v916_v21 = vld [vmem:[%s2319_s2 + $0x1a8] sm:$0xff]  ;;  %v1499_v24 = vcombine.high %v915_v20, %v915_v20 }
  0x51   :  { %789 = vmatprep.subr.bf16.mxu1 %v1638_v23  ;;  %v1723_v23 = vld [vmem:[%s2319_s2 + $0x8] ss:$16 sps:$4 sm:$0xff]  }
  0x53   :  { %821 = vmatpush1.bf16.msra.mxu0 %v1639_v26  ;;  %v1498_v26 = vcombine.low %v915_v20, %v915_v20 }
  0x54   :  { %790 = vmatpush2.bf16.msra.mxu1 %v1636_v25  ;;  %822 = vmatprep.subr.bf16.mxu0 %v1647_v28  ;;  %v1501_v25 = vcombine.high %v916_v21, %v916_v21 }
  0x55   :  { %791 = vmatprep.subr.bf16.mxu1 %v1644_v27  ;;  %v1500_v27 = vcombine.low %v916_v21, %v916_v21  ;;  %v1199_v28 = vsel %vm1197_vm2, %v1498_v26, 0 }
  0x57   :  { %823 = vmatpush1.bf16.msra.mxu0 %v1645_v30  ;;  %v1732_v30 = vld [vmem:[%s2319_s2 + $0x184] ss:$16 sps:$4 sm:$0xff]  }
  0x58   :  { %792 = vmatpush2.bf16.msra.mxu1 %v1642_v29  ;;  %824 = vmatprep.subr.bf16.mxu0 %v1653_v32  ;;  %v1205_v29 = vsel %vm1197_vm2, %v1500_v27, 0  ;;  %v1730_v32 = vld [vmem:[%s2319_s2 + $0x180] ss:$16 sps:$4 sm:$0xff]  }
  0x59   :  { %793 = vmatprep.subr.bf16.mxu1 %v1650_v31  ;;  %v1735_v31 = vld [vmem:[%s2319_s2 + $0x18c] ss:$16 sps:$4 sm:$0xff]  }
  0x5b   :  { %825 = vmatpush1.bf16.msra.mxu0 %v1651_v34  ;;  %v1738_v34 = vld [vmem:[%s2319_s2 + $0x164] ss:$16 sps:$4 sm:$0xff]  }
  0x5c   :  { %794 = vmatpush2.bf16.msra.mxu1 %v1648_v33  ;;  %826 = vmatprep.subr.bf16.mxu0 %v1659_v36  ;;  %v1733_v33 = vld [vmem:[%s2319_s2 + $0x188] ss:$16 sps:$4 sm:$0xff]   ;;  %v1736_v36 = vld [vmem:[%s2319_s2 + $0x160] ss:$16 sps:$4 sm:$0xff]  }
  0x5d   :  { %795 = vmatprep.subr.bf16.mxu1 %v1656_v35  ;;  %v1741_v35 = vld [vmem:[%s2319_s2 + $0x16c] ss:$16 sps:$4 sm:$0xff]  }
  0x5f   :  { %827 = vmatpush1.bf16.msra.mxu0 %v1657_v39  ;;  %v1747_v39 = vld [vmem:[%s2319_s2 + $0x14c] ss:$16 sps:$4 sm:$0xff]  }
  0x60   :  { %796 = vmatpush2.bf16.msra.mxu1 %v1654_v37  ;;  %838 = vmatprep.subr.bf16.mxu0 %v1665_v41  ;;  %v1739_v37 = vld [vmem:[%s2319_s2 + $0x168] ss:$16 sps:$4 sm:$0xff]  }
  0x61   :  { %797 = vmatprep.subr.bf16.mxu1 %v1662_v40  ;;  %v1742_v40 = vld [vmem:[%s2319_s2 + $0x140] ss:$16 sps:$4 sm:$0xff]   ;;  %v1745_v41 = vld [vmem:[%s2319_s2 + $0x148] ss:$16 sps:$4 sm:$0xff]  }
  0x63   :  { %839 = vmatpush2.bf16.msra.mxu0 %v1663_v43  ;;  %v1753_v43 = vld [vmem:[%s2319_s2 + $0x12c] ss:$16 sps:$4 sm:$0xff]  }
  0x64   :  { %798 = vmatpush2.bf16.msra.mxu1 %v1660_v42  ;;  %840 = vmatprep.subr.bf16.mxu0 %v1671_v45  ;;  %v1750_v42 = vld [vmem:[%s2319_s2 + $0x124] ss:$16 sps:$4 sm:$0xff]   ;;  %v1751_v45 = vld [vmem:[%s2319_s2 + $0x128] ss:$16 sps:$4 sm:$0xff]  }
  0x65   :  { %799 = vmatprep.subr.bf16.mxu1 %v1668_v44  ;;  %v1748_v44 = vld [vmem:[%s2319_s2 + $0x120] ss:$16 sps:$4 sm:$0xff]  }
  0x67   :  { %841 = vmatpush2.bf16.msra.mxu0 %v1669_v47  ;;  %v1759_v47 = vld [vmem:[%s2319_s2 + $0x10c] ss:$16 sps:$4 sm:$0xff]  }
  0x68   :  { %800 = vmatpush2.bf16.msra.mxu1 %v1666_v46  ;;  %842 = vmatprep.subr.bf16.mxu0 %v1677_v50  ;;  %v1756_v46 = vld [vmem:[%s2319_s2 + $0x104] ss:$16 sps:$4 sm:$0xff]   ;;  %v1757_v50 = vld [vmem:[%s2319_s2 + $0x108] ss:$16 sps:$4 sm:$0xff]  }
  0x69   :  { %801 = vmatprep.subr.bf16.mxu1 %v1674_v48  ;;  %v1754_v48 = vld [vmem:[%s2319_s2 + $0x100] ss:$16 sps:$4 sm:$0xff]  }
  0x6b   :  { %843 = vmatpush2.bf16.msra.mxu0 %v1675_v52 }
  0x6c   :  { %802 = vmatpush2.bf16.msra.mxu1 %v1672_v51  ;;  %1210 = vmatprep.subr.bf16.mxu0 %v1680_v53  ;;  %v1444_v51 = vcombine.low %v2153_v57, %v2153_v57 }
  0x6d   :  { %1251 = vmatprep.subr.bf16.mxu1 %v1683_v54 }
  0x6e   :  { %845 = vmatmul.mubr.bf16.vlgmr.msra.gmra.mxu0 %v1938_v49  ;;  %v1695_v49 = vld [vmem:[%s2319_s2 + $0xac] ss:$16 sps:$4 sm:$0xff]  }
  0x6f   :  { %804 = vmatmul.mubr.bf16.vlgmr.msra.gmra.mxu1 %v2004_v8  ;;  %1211 = vmatpush1.bf16.msra.mxu0 %v1678_v55  ;;  %v1702_v8 = vld [vmem:[%s2319_s2 + $0x60] ss:$16 sps:$4 sm:$0xff]  }
  0x70   :  { %1252 = vmatpush1.bf16.msra.mxu1 %v1681_v56  ;;  %1212 = vmatprep.subr.bf16.mxu0 %v1686_v58 }
  0x71   :  { %1253 = vmatprep.subr.bf16.mxu1 %v1689_v59  ;;  %1503 = vmatprep.mubr.msk.bf16.mxu0 %vm1193_vm1, %v1445_v60 }
  0x72   :  { %1505 = vmatprep.mubr.msk.bf16.mxu1 %vm1193_vm1, %v1445_v60 }
  0x73   :  { %1213 = vmatpush1.bf16.msra.mxu0 %v1684_v61 }
  0x74   :  { %1254 = vmatpush1.bf16.msra.mxu1 %v1687_v62  ;;  %1214 = vmatprep.subr.bf16.mxu0 %v1692_v63 }
  0x75   :  { %1255 = vmatprep.subr.bf16.mxu1 %v1695_v49 }
  0x77   :  { %1215 = vmatpush1.bf16.msra.mxu0 %v1690_v0 }
  0x78   :  { %1256 = vmatpush1.bf16.msra.mxu1 %v1693_v1  ;;  %1216 = vmatprep.subr.bf16.mxu0 %v1698_v2 }
  0x79   :  { %1257 = vmatprep.subr.bf16.mxu1 %v1701_v3 }
  0x7b   :  { %1217 = vmatpush1.bf16.msra.mxu0 %v1696_v4 }
  0x7c   :  { %1258 = vmatpush1.bf16.msra.mxu1 %v1699_v5  ;;  %1218 = vmatprep.subr.bf16.mxu0 %v1704_v6 }
  0x7d   :  { %1259 = vmatprep.subr.bf16.mxu1 %v1707_v7 }
  0x7f   :  { %1219 = vmatpush1.bf16.msra.mxu0 %v1702_v8 }
  0x80   :  { %1260 = vmatpush1.bf16.msra.mxu1 %v1705_v9  ;;  %1220 = vmatprep.subr.bf16.mxu0 %v1710_v10 }
  0x81   :  { %1261 = vmatprep.subr.bf16.mxu1 %v1713_v11 }
  0x83   :  { %1221 = vmatpush1.bf16.msra.mxu0 %v1708_v12 }
  0x84   :  { %1262 = vmatpush1.bf16.msra.mxu1 %v1711_v13  ;;  %1222 = vmatprep.subr.bf16.mxu0 %v1716_v14 }
  0x85   :  { %1263 = vmatprep.subr.bf16.mxu1 %v1719_v15 }
  0x87   :  { %1223 = vmatpush1.bf16.msra.mxu0 %v1714_v16 }
  0x88   :  { %1264 = vmatpush1.bf16.msra.mxu1 %v1717_v17  ;;  %1224 = vmatprep.subr.bf16.mxu0 %v1722_v18 }
  0x89   :  { %1265 = vmatprep.subr.bf16.mxu1 %v1725_v19 }
  0x8b   :  { %1225 = vmatpush1.bf16.msra.mxu0 %v1720_v22 }
  0x8c   :  { %1266 = vmatpush1.bf16.msra.mxu1 %v1723_v23  ;;  %1502 = vmatprep.subr.msk.bf16.mxu0 %vm1197_vm2, %v1499_v24 }
  0x8d   :  { %1504 = vmatprep.subr.msk.bf16.mxu1 %vm1197_vm2, %v1501_v25 }
  0x8f   :  { %1231 = vmatpush2.bf16.msra.mxu0 %v1199_v28 }
  0x90   :  { %1272 = vmatpush2.bf16.msra.mxu1 %v1205_v29  ;;  %1232 = vmatprep.subr.bf16.mxu0 %v1732_v30 }
  0x91   :  { %1273 = vmatprep.subr.bf16.mxu1 %v1735_v31 }
  0x93   :  { %1233 = vmatpush2.bf16.msra.mxu0 %v1730_v32 }
  0x94   :  { %1274 = vmatpush2.bf16.msra.mxu1 %v1733_v33  ;;  %1234 = vmatprep.subr.bf16.mxu0 %v1738_v34 }
  0x95   :  { %1275 = vmatprep.subr.bf16.mxu1 %v1741_v35 }
  0x97   :  { %1235 = vmatpush2.bf16.msra.mxu0 %v1736_v36 }
  0x98   :  { %1276 = vmatpush2.bf16.msra.mxu1 %v1739_v37  ;;  %1236 = vmatprep.subr.bf16.mxu0 %v1744_v38 }
  0x99   :  { %1277 = vmatprep.subr.bf16.mxu1 %v1747_v39 }
  0x9b   :  { %1237 = vmatpush2.bf16.msra.mxu0 %v1742_v40 }
  0x9c   :  { %1278 = vmatpush2.bf16.msra.mxu1 %v1745_v41  ;;  %1238 = vmatprep.subr.bf16.mxu0 %v1750_v42 }
  0x9d   :  { %1279 = vmatprep.subr.bf16.mxu1 %v1753_v43 }
  0x9f   :  { %1239 = vmatpush2.bf16.msra.mxu0 %v1748_v44 }
  0xa0   :  { %1280 = vmatpush2.bf16.msra.mxu1 %v1751_v45  ;;  %1240 = vmatprep.subr.bf16.mxu0 %v1756_v46  ;;  %v856_v6 = vpop.permute.xlu0 %855 }
  0xa1   :  { %1281 = vmatprep.subr.bf16.mxu1 %v1759_v47 }
  0xa3   :  { %1241 = vmatpush2.bf16.msra.mxu0 %v1754_v48 }
  0xa4   :  { %1282 = vmatpush2.bf16.msra.mxu1 %v1757_v50 }
  0xa6   :  { %1243 = vmatmul.mubr.bf16.vlgmr.msra.gmra.mxu0 %v1444_v51 }
  0xa7   :  { %1284 = vmatmul.mubr.bf16.vlgmr.msra.gmra.mxu1 %v1444_v51 }
  0xef   :  { %v764_v52 = vpop.f32.mrf.mxu1 }
  0xf1   :  { %v766_v53 = vpop.f32.mrf.mxu1 }
  0xf3   :  { %v768_v54 = vpop.f32.mrf.mxu1 }
  0xf5   :  { %v769_v55 = vpop.f32.mrf.mxu1 }
 0x102   :  { %v723_v56 = vpop.f32.mrf.mxu0 }
 0x103   :  { %v765_v58 = vadd.f32 %v764_v52, %v723_v56 }
 0x104   :  { %v725_v59 = vpop.f32.mrf.mxu0 }
 0x105   :  { %v767_v60 = vadd.f32 %v766_v53, %v725_v59  ;;  %v858_v8 = vadd.f32 %v856_v6, %v765_v58 }
 0x106   :  { %v727_v61 = vpop.f32.mrf.mxu0 }
 0x107   :  { %v859_v14 = vadd.f32 %v856_v6, %v767_v60 }
 0x108   :  { %v728_v62 = vpop.f32.mrf.mxu0 }
 0x12e   :  { %v846_v49 = vpop.f32.mrf.mxu0 }
 0x12f   :  { %v805_v63 = vpop.f32.mrf.mxu1 }
 0x130   :  { %v848_v1 = vpop.f32.mrf.mxu0  ;;  %v847_v5 = vadd.f32 %v846_v49, %v805_v63 }
 0x131   :  { %v807_v0 = vpop.f32.mrf.mxu1 }
 0x132   :  { %v850_v57 = vpop.f32.mrf.mxu0  ;;  %v849_v7 = vadd.f32 %v848_v1, %v807_v0  ;;  %v860_v9 = vadd.f32 %v856_v6, %v847_v5 }
 0x133   :  { %v809_v2 = vpop.f32.mrf.mxu1 }
 0x134   :  { %v851_v4 = vpop.f32.mrf.mxu0  ;;  %v861_v16 = vadd.f32 %v856_v6, %v849_v7 }
 0x135   :  { %v810_v3 = vpop.f32.mrf.mxu1 }
 0x166   :  { %v1244_v10 = vpop.f32.mrf.mxu0 }
 0x167   :  { %v1285_v11 = vpop.f32.mrf.mxu1  ;;  %v1292_v12 = vadd.f32 %v1244_v10, %v858_v8 }
 0x168   :  { %v1294_v13 = vadd.f32 %v1285_v11, %v860_v9  ;;  %v1246_v15 = vpop.f32.mrf.mxu0 }
 0x169   :  { %v1287_v17 = vpop.f32.mrf.mxu1  ;;  %v1300_v18 = vmul.f32 0.2, %v1292_v12  ;;  %v1293_v20 = vadd.f32 %v1246_v15, %v859_v14  ;;  %vm1296_vm3 = vcmp.ge.f32.partialorder %v1292_v12, 0.0 }
 0x16a   :  { %v1302_v19 = vmul.f32 0.2, %v1294_v13  ;;  %v1295_v21 = vadd.f32 %v1287_v17, %v861_v16  ;;  %v1248_v22 = vpop.f32.mrf.mxu0  ;;  %vm1298_vm4 = vcmp.ge.f32.partialorder %v1294_v13, 0.0 }
 0x16b   :  { %v1289_v23 = vpop.f32.mrf.mxu1  ;;  %vm1297_vm5 = vcmp.ge.f32.partialorder %v1293_v20, 0.0  ;;  %v1301_v24 = vmul.f32 0.2, %v1293_v20  ;;  %v1304_v28 = vsel %vm1296_vm3, %v1292_v12, %v1300_v18 }
 0x16c   :  { %vm1299_vm6 = vcmp.ge.f32.partialorder %v1295_v21, 0.0  ;;  %v1303_v25 = vmul.f32 0.2, %v1295_v21  ;;  %v1249_v26 = vpop.f32.mrf.mxu0  ;;  %v1306_v29 = vsel %vm1298_vm4, %v1294_v13, %v1302_v19 }
 0x16d   :  { %v1290_v27 = vpop.f32.mrf.mxu1  ;;  %v1305_v30 = vsel %vm1297_vm5, %v1293_v20, %v1301_v24 }
 0x16e   :  { %v1307_v31 = vsel %vm1299_vm6, %v1295_v21, %v1303_v25  ;;  %v1508_v32 = vpack.c.bf16 %v1305_v30, %v1304_v28 }
 0x16f   :  { %v1509_v33 = vpack.c.bf16 %v1307_v31, %v1306_v29 }
 0x170   :  { %1324 = vst [vmem:[%s2322_s5] sm:$0xff] %v1508_v32 }
 0x171   :  { %1325 = vst [vmem:[%s2322_s5 + $0x8] sm:$0xff] %v1509_v33 }

// kernel: _lambda_.18
= control target key start
LH: loop header
LB: loop body
LE: loop exit
PB: predicated region body
PF: predicated region fallthrough
CT: control target
= control target key end

     0   :  { %s1694_s18 = smov 0   ;;  %s1696_s19 = smov 0   ;;  %s2058_s0 = inlined_call_operand.vmem [shape: bf16[1,216,4096], index: 0, kind: input, shape index: {}]   ;;  %s2059_s1 = inlined_call_operand.vmem [shape: bf16[4,216], index: 1, kind: input, shape index: {}]   ;;  %s2060_s2 = inlined_call_operand.vmem [shape: bf16[1,108,4096], index: 2, kind: input, shape index: {}]   ;;  %s2061_s3 = inlined_call_operand.vmem [shape: bf16[4,108], index: 3, kind: input, shape index: {}]   ;;  %s2062_s4 = inlined_call_operand.vmem [shape: f32[4,1], index: 4, kind: input, shape index: {}]   ;;  %s2063_s5 = inlined_call_operand.vmem [shape: bf16[1,4,4096], index: 5, kind: output, shape index: {}]  }
   0x1   :  { %s1698_s20 = smov 0   ;;  %s1700_s21 = smov 0  }
   0x2   :  { %s1702_s22 = smov 0  }
   0x3 LB: > { %s24_s23 = sadd.s32 1, %s1656_s21  ;;  %p43_p1 = scmp.ne.s32.totalorder %s1648_s19, %s1644_s18  ;;  %s1660_s22 = sphi %s1702_s22, %s15_s22   ;;  %s1656_s21 = sphi %s1700_s21, %s2069_s21   ;;  %s1652_s20 = sphi %s1698_s20, %s2068_s20   ;;  %s1648_s19 = sphi %s1696_s19, %s2067_s19   ;;  %s1644_s18 = sphi %s1694_s18, %s2066_s18  }
   0x4   : > { %p25_p0 = scmp.ge.s32.totalorder %s24_s23, 8  ;;  %p44_p2 = scmp.eq.s32.totalorder %s1660_s22, 0 }
   0x5   : > { %s36_s26 = sadd.s32 1, %s1648_s19  ;;  %p1344_p5 = scmp.ge.s32.totalorder %s1660_s22, 8 }
   0x6   : > { %s2071_s23 = smov (%p25_p0, %s24_s23), 0  ;;  %p1725_p3 = por %p44_p2, %p43_p1 }
   0x7   : > { %s32_s25 = ssub.s32 %s1656_s21, %s2071_s23  ;;  %197 = sbr.rel (%p1344_p5) target bundleno = 61 (0x3d), region = 28 }
   0x8   : > { %p34_p4 = scmp.eq.s32.totalorder %s32_s25, 0 }
   0xa   : > { %s1733_s27 = scalar_select %p34_p4, %s1648_s19, %s36_s26  }
   0xc   : > { %200 = sbr.rel (!%p1725_p3) target bundleno = 43 (0x2b), region = 32  ;;  %s202_s28 = sand.u32 (%p1725_p3), 1, %s1648_s19  }
   0xd   : > { %s1449_s29 = sshll.u32 (%p1725_p3), %s1656_s21, 4  ;;  %s1451_s30 = smul.u32 (%p1725_p3), 432, %s202_s28 }
   0xe   : > { %s1743_s8 = scalar_lea.vmem (%p1725_p3), %s2058_s0, %s1449_s29 }
   0xf   : > { %v222_v0 = vld [vmem:[%s1743_s8] sm:$0xff] (%p1725_p3)  ;;  %v224_v1 = vld [vmem:[%s1743_s8 + $0x8] sm:$0xff] (%p1725_p3)  ;;  %s1751_s9 = scalar_lea.vmem (%p1725_p3), [#allocation2], %s1451_s30 }
  0x10   : > { %v226_v2 = vld [vmem:[%s1743_s8 + $0x80] sm:$0xff] (%p1725_p3)  ;;  %v228_v3 = vld [vmem:[%s1743_s8 + $0x88] sm:$0xff] (%p1725_p3)  ;;  %223 = vst [vmem:[%s1751_s9] sm:$0xff] (%p1725_p3), %v222_v0  ;;  %225 = vst [vmem:[%s1751_s9 + $0x8] sm:$0xff] (%p1725_p3), %v224_v1 }
  0x11   : > { %v230_v4 = vld [vmem:[%s1743_s8 + $0x100] sm:$0xff]  ;;  %v232_v5 = vld [vmem:[%s1743_s8 + $0x108] sm:$0xff]  ;;  %227 = vst [vmem:[%s1751_s9 + $0x10] sm:$0xff] %v226_v2  ;;  %229 = vst [vmem:[%s1751_s9 + $0x18] sm:$0xff] %v228_v3 }
  0x12   : > { %231 = vst [vmem:[%s1751_s9 + $0x20] sm:$0xff] %v230_v4  ;;  %233 = vst [vmem:[%s1751_s9 + $0x28] sm:$0xff] %v232_v5  ;;  %v234_v6 = vld [vmem:[%s1743_s8 + $0x180] sm:$0xff]  ;;  %v236_v7 = vld [vmem:[%s1743_s8 + $0x188] sm:$0xff] }
  0x13   : > { %v238_v8 = vld [vmem:[%s1743_s8 + $0x200] sm:$0xff]  ;;  %235 = vst [vmem:[%s1751_s9 + $0x30] sm:$0xff] %v234_v6  ;;  %237 = vst [vmem:[%s1751_s9 + $0x38] sm:$0xff] %v236_v7  ;;  %v240_v9 = vld [vmem:[%s1743_s8 + $0x208] sm:$0xff] }
  0x14   : > { %239 = vst [vmem:[%s1751_s9 + $0x40] sm:$0xff] %v238_v8  ;;  %v242_v10 = vld [vmem:[%s1743_s8 + $0x280] sm:$0xff]  ;;  %v244_v11 = vld [vmem:[%s1743_s8 + $0x288] sm:$0xff]  ;;  %241 = vst [vmem:[%s1751_s9 + $0x48] sm:$0xff] %v240_v9 }
  0x15   : > { %243 = vst [vmem:[%s1751_s9 + $0x50] sm:$0xff] %v242_v10  ;;  %245 = vst [vmem:[%s1751_s9 + $0x58] sm:$0xff] %v244_v11  ;;  %v246_v12 = vld [vmem:[%s1743_s8 + $0x300] sm:$0xff]  ;;  %v248_v13 = vld [vmem:[%s1743_s8 + $0x308] sm:$0xff] }
  0x16   : > { %v250_v14 = vld [vmem:[%s1743_s8 + $0x380] sm:$0xff]  ;;  %247 = vst [vmem:[%s1751_s9 + $0x60] sm:$0xff] %v246_v12  ;;  %249 = vst [vmem:[%s1751_s9 + $0x68] sm:$0xff] %v248_v13  ;;  %v252_v15 = vld [vmem:[%s1743_s8 + $0x388] sm:$0xff] }
  0x17   : > { %251 = vst [vmem:[%s1751_s9 + $0x70] sm:$0xff] %v250_v14  ;;  %v254_v16 = vld [vmem:[%s1743_s8 + $0x400] sm:$0xff]  ;;  %v256_v17 = vld [vmem:[%s1743_s8 + $0x408] sm:$0xff]  ;;  %253 = vst [vmem:[%s1751_s9 + $0x78] sm:$0xff] %v252_v15 }
  0x18   : > { %255 = vst [vmem:[%s1751_s9 + $0x80] sm:$0xff] %v254_v16  ;;  %257 = vst [vmem:[%s1751_s9 + $0x88] sm:$0xff] %v256_v17  ;;  %v258_v18 = vld [vmem:[%s1743_s8 + $0x480] sm:$0xff]  ;;  %v260_v19 = vld [vmem:[%s1743_s8 + $0x488] sm:$0xff] }
  0x19   : > { %v262_v20 = vld [vmem:[%s1743_s8 + $0x500] sm:$0xff]  ;;  %259 = vst [vmem:[%s1751_s9 + $0x90] sm:$0xff] %v258_v18  ;;  %261 = vst [vmem:[%s1751_s9 + $0x98] sm:$0xff] %v260_v19  ;;  %v264_v21 = vld [vmem:[%s1743_s8 + $0x508] sm:$0xff] }
  0x1a   : > { %263 = vst [vmem:[%s1751_s9 + $0xa0] sm:$0xff] %v262_v20  ;;  %v266_v22 = vld [vmem:[%s1743_s8 + $0x580] sm:$0xff]  ;;  %v268_v23 = vld [vmem:[%s1743_s8 + $0x588] sm:$0xff]  ;;  %265 = vst [vmem:[%s1751_s9 + $0xa8] sm:$0xff] %v264_v21 }
  0x1b   : > { %267 = vst [vmem:[%s1751_s9 + $0xb0] sm:$0xff] %v266_v22  ;;  %269 = vst [vmem:[%s1751_s9 + $0xb8] sm:$0xff] %v268_v23  ;;  %v270_v24 = vld [vmem:[%s1743_s8 + $0x600] sm:$0xff]  ;;  %v272_v25 = vld [vmem:[%s1743_s8 + $0x608] sm:$0xff] }
  0x1c   : > { %v274_v26 = vld [vmem:[%s1743_s8 + $0x680] sm:$0xff]  ;;  %271 = vst [vmem:[%s1751_s9 + $0xc0] sm:$0xff] %v270_v24  ;;  %273 = vst [vmem:[%s1751_s9 + $0xc8] sm:$0xff] %v272_v25  ;;  %v276_v27 = vld [vmem:[%s1743_s8 + $0x688] sm:$0xff] }
  0x1d   : > { %275 = vst [vmem:[%s1751_s9 + $0xd0] sm:$0xff] %v274_v26  ;;  %v278_v28 = vld [vmem:[%s1743_s8 + $0x700] sm:$0xff]  ;;  %v280_v29 = vld [vmem:[%s1743_s8 + $0x708] sm:$0xff]  ;;  %277 = vst [vmem:[%s1751_s9 + $0xd8] sm:$0xff] %v276_v27 }
  0x1e   : > { %279 = vst [vmem:[%s1751_s9 + $0xe0] sm:$0xff] %v278_v28  ;;  %281 = vst [vmem:[%s1751_s9 + $0xe8] sm:$0xff] %v280_v29  ;;  %v282_v30 = vld [vmem:[%s1743_s8 + $0x780] sm:$0xff]  ;;  %v284_v31 = vld [vmem:[%s1743_s8 + $0x788] sm:$0xff] }
  0x1f   : > { %v286_v32 = vld [vmem:[%s1743_s8 + $0x800] sm:$0xff]  ;;  %283 = vst [vmem:[%s1751_s9 + $0xf0] sm:$0xff] %v282_v30  ;;  %285 = vst [vmem:[%s1751_s9 + $0xf8] sm:$0xff] %v284_v31  ;;  %v288_v33 = vld [vmem:[%s1743_s8 + $0x808] sm:$0xff] }
  0x20   : > { %287 = vst [vmem:[%s1751_s9 + $0x100] sm:$0xff] %v286_v32  ;;  %v290_v34 = vld [vmem:[%s1743_s8 + $0x880] sm:$0xff]  ;;  %v292_v35 = vld [vmem:[%s1743_s8 + $0x888] sm:$0xff]  ;;  %289 = vst [vmem:[%s1751_s9 + $0x108] sm:$0xff] %v288_v33 }
  0x21   : > { %291 = vst [vmem:[%s1751_s9 + $0x110] sm:$0xff] %v290_v34  ;;  %293 = vst [vmem:[%s1751_s9 + $0x118] sm:$0xff] %v292_v35  ;;  %v294_v36 = vld [vmem:[%s1743_s8 + $0x900] sm:$0xff]  ;;  %v296_v37 = vld [vmem:[%s1743_s8 + $0x908] sm:$0xff] }
  0x22   : > { %v298_v38 = vld [vmem:[%s1743_s8 + $0x980] sm:$0xff]  ;;  %295 = vst [vmem:[%s1751_s9 + $0x120] sm:$0xff] %v294_v36  ;;  %297 = vst [vmem:[%s1751_s9 + $0x128] sm:$0xff] %v296_v37  ;;  %v300_v39 = vld [vmem:[%s1743_s8 + $0x988] sm:$0xff] }
  0x23   : > { %299 = vst [vmem:[%s1751_s9 + $0x130] sm:$0xff] %v298_v38  ;;  %v302_v40 = vld [vmem:[%s1743_s8 + $0xa00] sm:$0xff]  ;;  %v304_v41 = vld [vmem:[%s1743_s8 + $0xa08] sm:$0xff]  ;;  %301 = vst [vmem:[%s1751_s9 + $0x138] sm:$0xff] %v300_v39 }
  0x24   : > { %303 = vst [vmem:[%s1751_s9 + $0x140] sm:$0xff] %v302_v40  ;;  %305 = vst [vmem:[%s1751_s9 + $0x148] sm:$0xff] %v304_v41  ;;  %v306_v42 = vld [vmem:[%s1743_s8 + $0xa80] sm:$0xff]  ;;  %v308_v43 = vld [vmem:[%s1743_s8 + $0xa88] sm:$0xff] }
  0x25   : > { %v310_v44 = vld [vmem:[%s1743_s8 + $0xb00] sm:$0xff]  ;;  %307 = vst [vmem:[%s1751_s9 + $0x150] sm:$0xff] %v306_v42  ;;  %309 = vst [vmem:[%s1751_s9 + $0x158] sm:$0xff] %v308_v43  ;;  %v312_v45 = vld [vmem:[%s1743_s8 + $0xb08] sm:$0xff] }
  0x26   : > { %311 = vst [vmem:[%s1751_s9 + $0x160] sm:$0xff] %v310_v44  ;;  %v314_v46 = vld [vmem:[%s1743_s8 + $0xb80] sm:$0xff]  ;;  %v316_v47 = vld [vmem:[%s1743_s8 + $0xb88] sm:$0xff]  ;;  %313 = vst [vmem:[%s1751_s9 + $0x168] sm:$0xff] %v312_v45 }
  0x27   : > { %315 = vst [vmem:[%s1751_s9 + $0x170] sm:$0xff] %v314_v46  ;;  %317 = vst [vmem:[%s1751_s9 + $0x178] sm:$0xff] %v316_v47  ;;  %v318_v48 = vld [vmem:[%s1743_s8 + $0xc00] sm:$0xff]  ;;  %v320_v49 = vld [vmem:[%s1743_s8 + $0xc08] sm:$0xff] }
  0x28   : > { %v322_v50 = vld [vmem:[%s1743_s8 + $0xc80] sm:$0xff]  ;;  %319 = vst [vmem:[%s1751_s9 + $0x180] sm:$0xff] %v318_v48  ;;  %321 = vst [vmem:[%s1751_s9 + $0x188] sm:$0xff] %v320_v49  ;;  %v324_v51 = vld [vmem:[%s1743_s8 + $0xc88] sm:$0xff] }
  0x29   : > { %323 = vst [vmem:[%s1751_s9 + $0x190] sm:$0xff] %v322_v50  ;;  %v326_v52 = vld [vmem:[%s1743_s8 + $0xd00] sm:$0xff]  ;;  %v328_v53 = vld [vmem:[%s1743_s8 + $0xd08] sm:$0xff]  ;;  %325 = vst [vmem:[%s1751_s9 + $0x198] sm:$0xff] %v324_v51 }
  0x2a   : > { %327 = vst [vmem:[%s1751_s9 + $0x1a0] sm:$0xff] %v326_v52  ;;  %329 = vst [vmem:[%s1751_s9 + $0x1a8] sm:$0xff] %v328_v53 }
  0x2b PF: > { %335 = sbr.rel (!%p1725_p3) target bundleno = 61 (0x3d), region = 55  ;;  %s337_s10 = sand.u32 (%p1725_p3), 1, %s1648_s19  }
  0x2c   : > { %s1450_s11 = sshll.u32 (%p1725_p3), %s1656_s21, 4  ;;  %s1452_s12 = smul.u32 (%p1725_p3), 224, %s337_s10 }
  0x2d   : > { %s1862_s15 = scalar_lea.vmem (%p1725_p3), %s2060_s2, %s1450_s11 }
  0x2e   : > { %v357_v54 = vld [vmem:[%s1862_s15] sm:$0xff] (%p1725_p3)  ;;  %v359_v55 = vld [vmem:[%s1862_s15 + $0x8] sm:$0xff] (%p1725_p3)  ;;  %s1870_s16 = scalar_lea.vmem (%p1725_p3), [#allocation3], %s1452_s12 }
  0x2f   : > { %v361_v56 = vld [vmem:[%s1862_s15 + $0x80] sm:$0xff] (%p1725_p3)  ;;  %v363_v57 = vld [vmem:[%s1862_s15 + $0x88] sm:$0xff] (%p1725_p3)  ;;  %358 = vst [vmem:[%s1870_s16] sm:$0xff] (%p1725_p3), %v357_v54  ;;  %360 = vst [vmem:[%s1870_s16 + $0x8] sm:$0xff] (%p1725_p3), %v359_v55 }
  0x30   : > { %v365_v58 = vld [vmem:[%s1862_s15 + $0x100] sm:$0xff]  ;;  %v367_v59 = vld [vmem:[%s1862_s15 + $0x108] sm:$0xff]  ;;  %362 = vst [vmem:[%s1870_s16 + $0x10] sm:$0xff] %v361_v56  ;;  %364 = vst [vmem:[%s1870_s16 + $0x18] sm:$0xff] %v363_v57 }
  0x31   : > { %366 = vst [vmem:[%s1870_s16 + $0x20] sm:$0xff] %v365_v58  ;;  %368 = vst [vmem:[%s1870_s16 + $0x28] sm:$0xff] %v367_v59  ;;  %v369_v60 = vld [vmem:[%s1862_s15 + $0x180] sm:$0xff]  ;;  %v371_v61 = vld [vmem:[%s1862_s15 + $0x188] sm:$0xff] }
  0x32   : > { %v373_v62 = vld [vmem:[%s1862_s15 + $0x200] sm:$0xff]  ;;  %370 = vst [vmem:[%s1870_s16 + $0x30] sm:$0xff] %v369_v60  ;;  %372 = vst [vmem:[%s1870_s16 + $0x38] sm:$0xff] %v371_v61  ;;  %v375_v63 = vld [vmem:[%s1862_s15 + $0x208] sm:$0xff] }
  0x33   : > { %374 = vst [vmem:[%s1870_s16 + $0x40] sm:$0xff] %v373_v62  ;;  %v377_v0 = vld [vmem:[%s1862_s15 + $0x280] sm:$0xff]  ;;  %v379_v1 = vld [vmem:[%s1862_s15 + $0x288] sm:$0xff]  ;;  %376 = vst [vmem:[%s1870_s16 + $0x48] sm:$0xff] %v375_v63 }
  0x34   : > { %378 = vst [vmem:[%s1870_s16 + $0x50] sm:$0xff] %v377_v0  ;;  %380 = vst [vmem:[%s1870_s16 + $0x58] sm:$0xff] %v379_v1  ;;  %v381_v2 = vld [vmem:[%s1862_s15 + $0x300] sm:$0xff]  ;;  %v383_v3 = vld [vmem:[%s1862_s15 + $0x308] sm:$0xff] }
  0x35   : > { %v385_v4 = vld [vmem:[%s1862_s15 + $0x380] sm:$0xff]  ;;  %382 = vst [vmem:[%s1870_s16 + $0x60] sm:$0xff] %v381_v2  ;;  %384 = vst [vmem:[%s1870_s16 + $0x68] sm:$0xff] %v383_v3  ;;  %v387_v5 = vld [vmem:[%s1862_s15 + $0x388] sm:$0xff] }
  0x36   : > { %386 = vst [vmem:[%s1870_s16 + $0x70] sm:$0xff] %v385_v4  ;;  %v389_v6 = vld [vmem:[%s1862_s15 + $0x400] sm:$0xff]  ;;  %v391_v7 = vld [vmem:[%s1862_s15 + $0x408] sm:$0xff]  ;;  %388 = vst [vmem:[%s1870_s16 + $0x78] sm:$0xff] %v387_v5 }
  0x37   : > { %390 = vst [vmem:[%s1870_s16 + $0x80] sm:$0xff] %v389_v6  ;;  %392 = vst [vmem:[%s1870_s16 + $0x88] sm:$0xff] %v391_v7  ;;  %v393_v8 = vld [vmem:[%s1862_s15 + $0x480] sm:$0xff]  ;;  %v395_v9 = vld [vmem:[%s1862_s15 + $0x488] sm:$0xff] }
  0x38   : > { %v397_v10 = vld [vmem:[%s1862_s15 + $0x500] sm:$0xff]  ;;  %394 = vst [vmem:[%s1870_s16 + $0x90] sm:$0xff] %v393_v8  ;;  %396 = vst [vmem:[%s1870_s16 + $0x98] sm:$0xff] %v395_v9  ;;  %v399_v11 = vld [vmem:[%s1862_s15 + $0x508] sm:$0xff] }
  0x39   : > { %398 = vst [vmem:[%s1870_s16 + $0xa0] sm:$0xff] %v397_v10  ;;  %v401_v12 = vld [vmem:[%s1862_s15 + $0x580] sm:$0xff]  ;;  %v403_v13 = vld [vmem:[%s1862_s15 + $0x588] sm:$0xff]  ;;  %400 = vst [vmem:[%s1870_s16 + $0xa8] sm:$0xff] %v399_v11 }
  0x3a   : > { %402 = vst [vmem:[%s1870_s16 + $0xb0] sm:$0xff] %v401_v12  ;;  %404 = vst [vmem:[%s1870_s16 + $0xb8] sm:$0xff] %v403_v13  ;;  %v405_v14 = vld [vmem:[%s1862_s15 + $0x600] sm:$0xff]  ;;  %v407_v15 = vld [vmem:[%s1862_s15 + $0x608] sm:$0xff] }
  0x3b   : > { %v409_v16 = vld [vmem:[%s1862_s15 + $0x680] sm:$0xff]  ;;  %406 = vst [vmem:[%s1870_s16 + $0xc0] sm:$0xff] %v405_v14  ;;  %408 = vst [vmem:[%s1870_s16 + $0xc8] sm:$0xff] %v407_v15  ;;  %v411_v17 = vld [vmem:[%s1862_s15 + $0x688] sm:$0xff] }
  0x3c   : > { %410 = vst [vmem:[%s1870_s16 + $0xd0] sm:$0xff] %v409_v16  ;;  %412 = vst [vmem:[%s1870_s16 + $0xd8] sm:$0xff] %v411_v17 }
  0x3d PF: > { %p1349_p6 = scmp.ge.s32.totalorder %s1660_s22, 1  ;;  %p417_p7 = scmp.lt.s32.totalorder %s1660_s22, 9 }
  0x3f   : > { %p418_p8 = pnand %p1349_p6, %p417_p7 }
  0x40   : > { %s424_s17 = sand.u32 (!%p418_p8), 1, %s1644_s18   ;;  %s1350_s9 = sshll.u32 (!%p418_p8), %s1652_s20, 2 }
  0x41   : > { %421 = sbr.rel (%p418_p8) target bundleno = 365 (0x16d), region = 78  ;;  %p2034_p9 = scmp.lt.s32.totalorder (!%p418_p8), %s1350_s9, 31 }
  0x42   : > { %s1453_s26 = smul.u32 (!%p418_p8), 432, %s424_s17 }
  0x43   : > { %s1454_s6 = smul.u32 (!%p418_p8), 224, %s424_s17 }
  0x44   : > { %s1938_s30 = scalar_lea.vmem (!%p418_p8), [#allocation2], %s1453_s26 }
  0x45   : > { %s1980_s7 = scalar_lea.vmem (!%p418_p8), [#allocation3], %s1454_s6 }
  0x46   : > { %v1928_v18 = vld.sshfl [vmem:[%s2059_s1] sm:$0x33 pattern:$0x76325410]  ;;  %vm815_vm0 = vcmask 719872   ;;  %v1662_v20 = vmov 0  }
  0x47   : > { %v543_v19 = vcombine.high %v1928_v18, %v1928_v18  ;;  %1497 = vset.pattern.permute.xlu0 %v1662_v20  ;;  %v479_v21 = vld [vmem:[%s2062_s4] sm:$0xf]  ;;  %v1498_v22 = vld [vmem:[%s1938_s30 + $0xe4] ss:$16 sps:$4 sm:$0xff]   ;;  %v1500_v23 = vld [vmem:[%s1938_s30 + $0xec] ss:$16 sps:$4 sm:$0xff]  }
  0x48   : > { %916 = vperm.xlu0 %1497, %v479_v21   ;;  %832 = vmatprep.subr.bf16.mxu0 %v1498_v22  ;;  %v1502_v24 = vld [vmem:[%s1938_s30 + $0xe0] ss:$16 sps:$4 sm:$0xff]   ;;  %v1503_v25 = vld [vmem:[%s1938_s30 + $0xe8] ss:$16 sps:$4 sm:$0xff]   ;;  %v1504_v26 = vld [vmem:[%s1938_s30 + $0xc4] ss:$16 sps:$4 sm:$0xff]  }
  0x49   : > { %1410 = vmatprep.mubr.msk.bf16.mxu0 %vm815_vm0, %v543_v19  ;;  %1412 = vmatprep.mubr.msk.bf16.mxu1 %vm815_vm0, %v543_v19  ;;  %v1506_v27 = vld [vmem:[%s1938_s30 + $0xcc] ss:$16 sps:$4 sm:$0xff]   ;;  %v1508_v28 = vld [vmem:[%s1938_s30 + $0xc0] ss:$16 sps:$4 sm:$0xff]   ;;  %v1509_v29 = vld [vmem:[%s1938_s30 + $0xc8] ss:$16 sps:$4 sm:$0xff]  }
  0x4a   : > { %873 = vmatprep.subr.bf16.mxu1 %v1500_v23  ;;  %833 = vmatpush1.bf16.msra.mxu0 %v1502_v24  ;;  %v1510_v30 = vld [vmem:[%s1938_s30 + $0xa4] ss:$16 sps:$4 sm:$0xff]   ;;  %v1512_v31 = vld [vmem:[%s1938_s30 + $0xac] ss:$16 sps:$4 sm:$0xff]   ;;  %v1514_v32 = vld [vmem:[%s1938_s30 + $0xa0] ss:$16 sps:$4 sm:$0xff]  }
  0x4b   : > { %874 = vmatpush1.bf16.msra.mxu1 %v1503_v25  ;;  %834 = vmatprep.subr.bf16.mxu0 %v1504_v26  ;;  %v1515_v33 = vld [vmem:[%s1938_s30 + $0xa8] ss:$16 sps:$4 sm:$0xff]   ;;  %v1516_v34 = vld [vmem:[%s1938_s30 + $0x84] ss:$16 sps:$4 sm:$0xff]   ;;  %v1518_v35 = vld [vmem:[%s1938_s30 + $0x8c] ss:$16 sps:$4 sm:$0xff]  }
  0x4c   : > { %875 = vmatprep.subr.bf16.mxu1 %v1506_v27  ;;  %v1520_v36 = vld [vmem:[%s1938_s30 + $0x80] ss:$16 sps:$4 sm:$0xff]   ;;  %v1521_v37 = vld [vmem:[%s1938_s30 + $0x88] ss:$16 sps:$4 sm:$0xff]   ;;  %v1522_v38 = vld [vmem:[%s1938_s30 + $0x64] ss:$16 sps:$4 sm:$0xff]  }
  0x4d   : > { %v1524_v39 = vld [vmem:[%s1938_s30 + $0x6c] ss:$16 sps:$4 sm:$0xff]   ;;  %v1526_v40 = vld [vmem:[%s1938_s30 + $0x60] ss:$16 sps:$4 sm:$0xff]   ;;  %v1527_v41 = vld [vmem:[%s1938_s30 + $0x68] ss:$16 sps:$4 sm:$0xff]  }
  0x4e   : > { %835 = vmatpush1.bf16.msra.mxu0 %v1508_v28  ;;  %v1528_v42 = vld [vmem:[%s1938_s30 + $0x44] ss:$16 sps:$4 sm:$0xff]   ;;  %v1530_v43 = vld [vmem:[%s1938_s30 + $0x4c] ss:$16 sps:$4 sm:$0xff]   ;;  %v1532_v44 = vld [vmem:[%s1938_s30 + $0x40] ss:$16 sps:$4 sm:$0xff]  }
  0x4f   : > { %876 = vmatpush1.bf16.msra.mxu1 %v1509_v29  ;;  %836 = vmatprep.subr.bf16.mxu0 %v1510_v30  ;;  %v1533_v45 = vld [vmem:[%s1938_s30 + $0x48] ss:$16 sps:$4 sm:$0xff]   ;;  %v1534_v46 = vld [vmem:[%s1938_s30 + $0x24] ss:$16 sps:$4 sm:$0xff]   ;;  %v1536_v47 = vld [vmem:[%s1938_s30 + $0x2c] ss:$16 sps:$4 sm:$0xff]  }
  0x50   : > { %877 = vmatprep.subr.bf16.mxu1 %v1512_v31  ;;  %v1538_v48 = vld [vmem:[%s1938_s30 + $0x20] ss:$16 sps:$4 sm:$0xff]   ;;  %v1539_v49 = vld [vmem:[%s1938_s30 + $0x28] ss:$16 sps:$4 sm:$0xff]   ;;  %v1540_v50 = vld [vmem:[%s1938_s30 + $0x4] ss:$16 sps:$4 sm:$0xff]  }
  0x51   : > { %v1542_v51 = vld [vmem:[%s1938_s30 + $0xc] ss:$16 sps:$4 sm:$0xff]   ;;  %v533_v52 = vld [vmem:[%s1938_s30 + $0x1a0] sm:$0xff]  ;;  %v1545_v55 = vld [vmem:[%s1938_s30 + $0x8] ss:$16 sps:$4 sm:$0xff]   ;;  %vm819_vm1 = vcmask 1043456  }
  0x52   : > { %837 = vmatpush1.bf16.msra.mxu0 %v1514_v32  ;;  %v534_v53 = vld [vmem:[%s1938_s30 + $0x1a8] sm:$0xff]  ;;  %v1544_v54 = vld [vmem:[%s1938_s30] ss:$16 sps:$4 sm:$0xff]   ;;  %v1406_v56 = vcombine.high %v533_v52, %v533_v52  ;;  %v1405_v58 = vcombine.low %v533_v52, %v533_v52  ;;  %v1550_v60 = vld [vmem:[%s1938_s30 + $0x184] ss:$16 sps:$4 sm:$0xff]   ;;  %vm1092_vm2 = vcmask 1045504  }
  0x53   : > { %878 = vmatpush1.bf16.msra.mxu1 %v1515_v33  ;;  %838 = vmatprep.subr.bf16.mxu0 %v1516_v34  ;;  %v1408_v57 = vcombine.high %v534_v53, %v534_v53  ;;  %v1407_v59 = vcombine.low %v534_v53, %v534_v53  ;;  %v1552_v63 = vld [vmem:[%s1938_s30 + $0x18c] ss:$16 sps:$4 sm:$0xff]   ;;  %v1554_v0 = vld [vmem:[%s1938_s30 + $0x180] ss:$16 sps:$4 sm:$0xff]   ;;  %v1555_v1 = vld [vmem:[%s1938_s30 + $0x188] ss:$16 sps:$4 sm:$0xff]  }
  0x54   : > { %879 = vmatprep.subr.bf16.mxu1 %v1518_v35  ;;  %v821_v61 = vsel %vm819_vm1, %v1405_v58, 0  ;;  %v1556_v2 = vld [vmem:[%s1938_s30 + $0x164] ss:$16 sps:$4 sm:$0xff]   ;;  %v1558_v3 = vld [vmem:[%s1938_s30 + $0x16c] ss:$16 sps:$4 sm:$0xff]   ;;  %vm1088_vm3 = vcmask 883712  }
  0x55   : > { %v827_v62 = vsel %vm819_vm1, %v1407_v59, 0  ;;  %v1560_v4 = vld [vmem:[%s1938_s30 + $0x160] ss:$16 sps:$4 sm:$0xff]   ;;  %v1561_v5 = vld [vmem:[%s1938_s30 + $0x168] ss:$16 sps:$4 sm:$0xff]   ;;  %s2073_s9 = smov (!%p2034_p9, %s1350_s9), 31 }
  0x56   : > { %839 = vmatpush1.bf16.msra.mxu0 %v1520_v36  ;;  %v1562_v6 = vld [vmem:[%s1938_s30 + $0x144] ss:$16 sps:$4 sm:$0xff]   ;;  %v1564_v7 = vld [vmem:[%s1938_s30 + $0x14c] ss:$16 sps:$4 sm:$0xff]   ;;  %v1566_v8 = vld [vmem:[%s1938_s30 + $0x140] ss:$16 sps:$4 sm:$0xff]  }
  0x57   : > { %880 = vmatpush1.bf16.msra.mxu1 %v1521_v37  ;;  %840 = vmatprep.subr.bf16.mxu0 %v1522_v38  ;;  %v1567_v9 = vld [vmem:[%s1938_s30 + $0x148] ss:$16 sps:$4 sm:$0xff]   ;;  %v1568_v10 = vld [vmem:[%s1938_s30 + $0x124] ss:$16 sps:$4 sm:$0xff]   ;;  %v1570_v11 = vld [vmem:[%s1938_s30 + $0x12c] ss:$16 sps:$4 sm:$0xff]  }
  0x58   : > { %881 = vmatprep.subr.bf16.mxu1 %v1524_v39  ;;  %v1572_v12 = vld [vmem:[%s1938_s30 + $0x120] ss:$16 sps:$4 sm:$0xff]   ;;  %v1573_v13 = vld [vmem:[%s1938_s30 + $0x128] ss:$16 sps:$4 sm:$0xff]   ;;  %v1574_v14 = vld [vmem:[%s1938_s30 + $0x104] ss:$16 sps:$4 sm:$0xff]  }
  0x59   : > { %v1576_v15 = vld [vmem:[%s1938_s30 + $0x10c] ss:$16 sps:$4 sm:$0xff]   ;;  %v1578_v16 = vld [vmem:[%s1938_s30 + $0x100] ss:$16 sps:$4 sm:$0xff]   ;;  %v1579_v17 = vld [vmem:[%s1938_s30 + $0x108] ss:$16 sps:$4 sm:$0xff]  }
  0x5a   : > { %841 = vmatpush1.bf16.msra.mxu0 %v1526_v40  ;;  %v1580_v19 = vld [vmem:[%s1980_s7 + $0xc4] ss:$16 sps:$4 sm:$0x3f]   ;;  %v1582_v21 = vld [vmem:[%s1980_s7 + $0xcc] ss:$16 sps:$4 sm:$0x3f]  }
  0x5b   : > { %882 = vmatpush1.bf16.msra.mxu1 %v1527_v41  ;;  %842 = vmatprep.subr.bf16.mxu0 %v1528_v42  ;;  %v1584_v22 = vld [vmem:[%s1980_s7 + $0xc0] ss:$16 sps:$4 sm:$0x3f]   ;;  %v1585_v23 = vld [vmem:[%s1980_s7 + $0xc8] ss:$16 sps:$4 sm:$0x3f]  }
  0x5c   : > { %883 = vmatprep.subr.bf16.mxu1 %v1530_v43  ;;  %v1094_v24 = vsel %vm1092_vm2, %v1584_v22, 0  ;;  %v1100_v25 = vsel %vm1092_vm2, %v1585_v23, 0  ;;  %v1588_v26 = vld [vmem:[%s1980_s7 + $0xa4] ss:$16 sps:$4 sm:$0xff]   ;;  %v1591_v27 = vld [vmem:[%s1980_s7 + $0xac] ss:$16 sps:$4 sm:$0xff]  }
  0x5d   : > { %v1586_v28 = vld [vmem:[%s1980_s7 + $0xa0] ss:$16 sps:$4 sm:$0xff]   ;;  %v1589_v29 = vld [vmem:[%s1980_s7 + $0xa8] ss:$16 sps:$4 sm:$0xff]   ;;  %v1594_v30 = vld [vmem:[%s1980_s7 + $0x84] ss:$16 sps:$4 sm:$0xff]  }
  0x5e   : > { %843 = vmatpush1.bf16.msra.mxu0 %v1532_v44  ;;  %v1597_v31 = vld [vmem:[%s1980_s7 + $0x8c] ss:$16 sps:$4 sm:$0xff]   ;;  %v1595_v32 = vld [vmem:[%s1980_s7 + $0x88] ss:$16 sps:$4 sm:$0xff]   ;;  %v1600_v33 = vld [vmem:[%s1980_s7 + $0x64] ss:$16 sps:$4 sm:$0xff]  }
  0x5f   : > { %884 = vmatpush1.bf16.msra.mxu1 %v1533_v45  ;;  %844 = vmatprep.subr.bf16.mxu0 %v1534_v46  ;;  %v1603_v34 = vld [vmem:[%s1980_s7 + $0x6c] ss:$16 sps:$4 sm:$0xff]   ;;  %v1598_v35 = vld [vmem:[%s1980_s7 + $0x60] ss:$16 sps:$4 sm:$0xff]   ;;  %v1601_v36 = vld [vmem:[%s1980_s7 + $0x68] ss:$16 sps:$4 sm:$0xff]  }
  0x60   : > { %885 = vmatprep.subr.bf16.mxu1 %v1536_v47  ;;  %v1609_v37 = vld [vmem:[%s1980_s7 + $0x4c] ss:$16 sps:$4 sm:$0xff]   ;;  %v1604_v38 = vld [vmem:[%s1980_s7 + $0x40] ss:$16 sps:$4 sm:$0xff]   ;;  %v1607_v39 = vld [vmem:[%s1980_s7 + $0x48] ss:$16 sps:$4 sm:$0xff]  }
  0x61   : > { %v1612_v40 = vld [vmem:[%s1980_s7 + $0x24] ss:$16 sps:$4 sm:$0xff]   ;;  %v1615_v41 = vld [vmem:[%s1980_s7 + $0x2c] ss:$16 sps:$4 sm:$0xff]   ;;  %v1610_v42 = vld [vmem:[%s1980_s7 + $0x20] ss:$16 sps:$4 sm:$0xff]  }
  0x62   : > { %845 = vmatpush1.bf16.msra.mxu0 %v1538_v48  ;;  %v1613_v43 = vld [vmem:[%s1980_s7 + $0x28] ss:$16 sps:$4 sm:$0xff]   ;;  %v1618_v44 = vld [vmem:[%s1980_s7 + $0x4] ss:$16 sps:$4 sm:$0xff]   ;;  %v1621_v45 = vld [vmem:[%s1980_s7 + $0xc] ss:$16 sps:$4 sm:$0xff]  }
  0x63   : > { %886 = vmatpush1.bf16.msra.mxu1 %v1539_v49  ;;  %846 = vmatprep.subr.bf16.mxu0 %v1540_v50  ;;  %v1616_v46 = vld [vmem:[%s1980_s7] ss:$16 sps:$4 sm:$0xff]   ;;  %v1619_v47 = vld [vmem:[%s1980_s7 + $0x8] ss:$16 sps:$4 sm:$0xff]   ;;  %s1351_s20 = sshll.u32 %s2073_s9, 1 }
  0x64   : > { %887 = vmatprep.subr.bf16.mxu1 %v1542_v51  ;;  %v923_v48 = vld [vmem:[%s2061_s3] sm:$0x3]  ;;  %s476_s13 = scalar_lea.vmem %s2063_s5, %s1351_s20 }
  0x66   : > { %847 = vmatpush1.bf16.msra.mxu0 %v1544_v54 }
  0x67   : > { %888 = vmatpush1.bf16.msra.mxu1 %v1545_v55  ;;  %1409 = vmatprep.subr.msk.bf16.mxu0 %vm819_vm1, %v1406_v56 }
  0x68   : > { %1411 = vmatprep.subr.msk.bf16.mxu1 %vm819_vm1, %v1408_v57 }
  0x6a   : > { %853 = vmatpush2.bf16.msra.mxu0 %v821_v61 }
  0x6b   : > { %894 = vmatpush2.bf16.msra.mxu1 %v827_v62  ;;  %854 = vmatprep.subr.bf16.mxu0 %v1550_v60  ;;  %v1663_v60 = vmov 1983009808   ;;  %v1216_v62 = vlaneseq }
  0x6c   : > { %895 = vmatprep.subr.bf16.mxu1 %v1552_v63  ;;  %v1214_v61 = vunpack.c.l.s4 %v1663_v60 }
  0x6e   : > { %855 = vmatpush2.bf16.msra.mxu0 %v1554_v0 }
  0x6f   : > { %896 = vmatpush2.bf16.msra.mxu1 %v1555_v1  ;;  %856 = vmatprep.subr.bf16.mxu0 %v1556_v2 }
  0x70   : > { %897 = vmatprep.subr.bf16.mxu1 %v1558_v3 }
  0x72   : > { %857 = vmatpush2.bf16.msra.mxu0 %v1560_v4 }
  0x73   : > { %898 = vmatpush2.bf16.msra.mxu1 %v1561_v5  ;;  %858 = vmatprep.subr.bf16.mxu0 %v1562_v6 }
  0x74   : > { %899 = vmatprep.subr.bf16.mxu1 %v1564_v7  ;;  %v1215_v7 = vunpack.c.0.s8 %v1214_v61 }
  0x76   : > { %859 = vmatpush2.bf16.msra.mxu0 %v1566_v8  ;;  %v1217_v8 = vshrl.u32 %v1216_v62, 7 }
  0x77   : > { %900 = vmatpush2.bf16.msra.mxu1 %v1567_v9  ;;  %860 = vmatprep.subr.bf16.mxu0 %v1568_v10 }
  0x78   : > { %901 = vmatprep.subr.bf16.mxu1 %v1570_v11 }
  0x7a   : > { %861 = vmatpush2.bf16.msra.mxu0 %v1572_v12 }
  0x7b   : > { %902 = vmatpush2.bf16.msra.mxu1 %v1573_v13  ;;  %862 = vmatprep.subr.bf16.mxu0 %v1574_v14 }
  0x7c   : > { %903 = vmatprep.subr.bf16.mxu1 %v1576_v15 }
  0x7e   : > { %863 = vmatpush2.bf16.msra.mxu0 %v1578_v16 }
  0x7f   : > { %904 = vmatpush2.bf16.msra.mxu1 %v1579_v17  ;;  %1441 = vmatprep.subr.msk.bf16.mxu0 %vm1092_vm2, %v1580_v19 }
  0x80   : > { %1443 = vmatprep.subr.msk.bf16.mxu1 %vm1092_vm2, %v1582_v21  ;;  %v1218_v21 = vsub.s32 %v1215_v7, %v1217_v8 }
  0x81   : > { %865 = vmatmul.mubr.bf16.vlgmr.msra.gmra.mxu0 %v1928_v18 }
  0x82   : > { %906 = vmatmul.mubr.bf16.vlgmr.msra.gmra.mxu1 %v1928_v18  ;;  %1108 = vmatpush1.bf16.msra.mxu0 %v1094_v24  ;;  %v1592_v18 = vld [vmem:[%s1980_s7 + $0x80] ss:$16 sps:$4 sm:$0xff]  }
  0x83   : > { %1149 = vmatpush1.bf16.msra.mxu1 %v1100_v25  ;;  %1109 = vmatprep.subr.bf16.mxu0 %v1588_v26 }
  0x84   : > { %1150 = vmatprep.subr.bf16.mxu1 %v1591_v27  ;;  %1137 = vmatprep.mubr.bf16.mxu0 %v1662_v20 }
  0x85   : > { %1178 = vmatprep.mubr.bf16.mxu1 %v1662_v20  ;;  %v1606_v20 = vld [vmem:[%s1980_s7 + $0x44] ss:$16 sps:$4 sm:$0xff]  }
  0x86   : > { %1110 = vmatpush1.bf16.msra.mxu0 %v1586_v28 }
  0x87   : > { %1151 = vmatpush1.bf16.msra.mxu1 %v1589_v29  ;;  %1111 = vmatprep.subr.bf16.mxu0 %v1594_v30 }
  0x88   : > { %1152 = vmatprep.subr.bf16.mxu1 %v1597_v31 }
  0x8a   : > { %1112 = vmatpush1.bf16.msra.mxu0 %v1592_v18 }
  0x8b   : > { %1153 = vmatpush1.bf16.msra.mxu1 %v1595_v32  ;;  %1113 = vmatprep.subr.bf16.mxu0 %v1600_v33 }
  0x8c   : > { %1154 = vmatprep.subr.bf16.mxu1 %v1603_v34 }
  0x8e   : > { %1114 = vmatpush1.bf16.msra.mxu0 %v1598_v35 }
  0x8f   : > { %1155 = vmatpush1.bf16.msra.mxu1 %v1601_v36  ;;  %1115 = vmatprep.subr.bf16.mxu0 %v1606_v20 }
  0x90   : > { %1156 = vmatprep.subr.bf16.mxu1 %v1609_v37 }
  0x92   : > { %1116 = vmatpush1.bf16.msra.mxu0 %v1604_v38 }
  0x93   : > { %1157 = vmatpush1.bf16.msra.mxu1 %v1607_v39  ;;  %1117 = vmatprep.subr.bf16.mxu0 %v1612_v40 }
  0x94   : > { %1158 = vmatprep.subr.bf16.mxu1 %v1615_v41 }
  0x96   : > { %1118 = vmatpush1.bf16.msra.mxu0 %v1610_v42 }
  0x97   : > { %1159 = vmatpush1.bf16.msra.mxu1 %v1613_v43  ;;  %1119 = vmatprep.subr.bf16.mxu0 %v1618_v44 }
  0x98   : > { %1160 = vmatprep.subr.bf16.mxu1 %v1621_v45 }
  0x9a   : > { %1120 = vmatpush1.bf16.msra.mxu0 %v1616_v46 }
  0x9b   : > { %1161 = vmatpush1.bf16.msra.mxu1 %v1619_v47 }
  0x9d   : > { %1442 = vmatmul.mubr.msk.bf16.vlgmr.msra.gmra.mxu0 %vm1088_vm3, %v923_v48 }
  0x9e   : > { %1444 = vmatmul.mubr.msk.bf16.vlgmr.msra.gmra.mxu1 %vm1088_vm3, %v923_v48 }
  0xc3   : > { %v917_v57 = vpop.permute.xlu0 %916 }
 0x141   : > { %v866_v49 = vpop.f32.mrf.mxu0 }
 0x142   : > { %v907_v50 = vpop.f32.mrf.mxu1  ;;  %v919_v58 = vadd.f32 %v917_v57, %v866_v49 }
 0x143   : > { %v868_v51 = vpop.f32.mrf.mxu0  ;;  %v921_v59 = vadd.f32 %v917_v57, %v907_v50 }
 0x144   : > { %v909_v52 = vpop.f32.mrf.mxu1  ;;  %v920_v3 = vadd.f32 %v917_v57, %v868_v51 }
 0x145   : > { %v870_v53 = vpop.f32.mrf.mxu0  ;;  %v922_v4 = vadd.f32 %v917_v57, %v909_v52 }
 0x146   : > { %v911_v54 = vpop.f32.mrf.mxu1 }
 0x147   : > { %v871_v55 = vpop.f32.mrf.mxu0 }
 0x148   : > { %v912_v56 = vpop.f32.mrf.mxu1 }
 0x15d   : > { %v1139_v63 = vpop.f32.mrf.mxu0 }
 0x15e   : > { %v1180_v0 = vpop.f32.mrf.mxu1  ;;  %v1187_v1 = vadd.f32 %v1139_v63, %v919_v58 }
 0x15f   : > { %v1189_v2 = vadd.f32 %v1180_v0, %v921_v59  ;;  %v1141_v5 = vpop.f32.mrf.mxu0 }
 0x160   : > { %v1182_v6 = vpop.f32.mrf.mxu1  ;;  %v1195_v9 = vmul.f32 0.2, %v1187_v1  ;;  %v1188_v11 = vadd.f32 %v1141_v5, %v920_v3  ;;  %vm1191_vm4 = vcmp.ge.f32.partialorder %v1187_v1, 0.0 }
 0x161   : > { %v1197_v10 = vmul.f32 0.2, %v1189_v2  ;;  %v1190_v12 = vadd.f32 %v1182_v6, %v922_v4  ;;  %v1143_v13 = vpop.f32.mrf.mxu0  ;;  %vm1193_vm5 = vcmp.ge.f32.partialorder %v1189_v2, 0.0 }
 0x162   : > { %v1184_v14 = vpop.f32.mrf.mxu1  ;;  %vm1192_vm6 = vcmp.ge.f32.partialorder %v1188_v11, 0.0  ;;  %v1196_v15 = vmul.f32 0.2, %v1188_v11  ;;  %v1199_v22 = vsel %vm1191_vm4, %v1187_v1, %v1195_v9 }
 0x163   : > { %vm1194_vm7 = vcmp.ge.f32.partialorder %v1190_v12, 0.0  ;;  %v1198_v16 = vmul.f32 0.2, %v1190_v12  ;;  %v1144_v17 = vpop.f32.mrf.mxu0  ;;  %v1201_v23 = vsel %vm1193_vm5, %v1189_v2, %v1197_v10 }
 0x164   : > { %v1185_v19 = vpop.f32.mrf.mxu1  ;;  %v1200_v24 = vsel %vm1192_vm6, %v1188_v11, %v1196_v15 }
 0x165   : > { %v1202_v25 = vsel %vm1194_vm7, %v1190_v12, %v1198_v16  ;;  %v1445_v26 = vpack.c.bf16 %v1200_v24, %v1199_v22 }
 0x166   : > { %v1446_v27 = vpack.c.bf16 %v1202_v25, %v1201_v23 }
 0x167   : > { %v1219_v28 = vrot.slane %v1445_v26, %v1218_v21 }
 0x168   : > { %v1226_v29 = vrot.slane %v1446_v27, %v1218_v21 }
 0x16a   : > { %v1227_v30 = vcombine.low %v1219_v28, %v1226_v29 }
 0x16c   : > { %1229 = vst [vmem:[%s476_s13] sm:$0xff] %v1227_v30 }
 0x16d PF: > { %s15_s22 = sadd.s32 1, %s1660_s22   ;;  %s2066_s18 = smov %s1648_s19 }
 0x16e   : > { %p12_p10 = scmp.ge.s32.totalorder %s15_s22, 10   ;;  %s2067_s19 = smov %s1733_s27 }
 0x16f   : > { %s2068_s20 = smov %s1656_s21  ;;  %s2069_s21 = smov %s2071_s23 }
 0x170   :  { %14 = sbr.rel (!%p12_p10) target bundleno = 3 (0x3), region = 129 }

// kernel: _lambda_.19
= control target key start
LH: loop header
LB: loop body
LE: loop exit
PB: predicated region body
PF: predicated region fallthrough
CT: control target
= control target key end

     0   :  { %s520_s12 = smov 0   ;;  %s522_s13 = smov 0   ;;  %s559_s0 = inlined_call_operand.vmem [shape: bf16[1,4,4096], index: 0, kind: input, shape index: {}]   ;;  %s560_s1 = inlined_call_operand.vmem [shape: bf16[5,4], index: 1, kind: input, shape index: {}]   ;;  %s561_s2 = inlined_call_operand.vmem [shape: f32[5,1], index: 2, kind: input, shape index: {}]   ;;  %s562_s3 = inlined_call_operand.vmem [shape: f32[1,5,4096], index: 3, kind: output, shape index: {}]  }
   0x1   :  { %s524_s14 = smov 0  }
   0x2 LB: > { %s22_s15 = sadd.s32 1, %s492_s13  ;;  %p435_p0 = scmp.ge.s32.totalorder %s496_s14, 1  ;;  %s496_s14 = sphi %s524_s14, %s13_s14   ;;  %s492_s13 = sphi %s522_s13, %s564_s13   ;;  %s488_s12 = sphi %s520_s12, %s563_s12  }
   0x3   : > { %p23_p1 = scmp.ge.s32.totalorder %s22_s15, 8  ;;  %p158_p2 = scmp.lt.s32.totalorder %s496_s14, 9 }
   0x5   : > { %s566_s15 = smov (%p23_p1, %s22_s15), 0  ;;  %p159_p3 = pnand %p435_p0, %p158_p2 }
   0x6   : > { %s436_s16 = sshll.u32 (!%p159_p3), %s488_s12, 2 }
   0x7   : > { %162 = sbr.rel (%p159_p3) target bundleno = 226 (0xe2), region = 32  ;;  %p193_p4 = scmp.lt.s32.totalorder (!%p159_p3), %s436_s16, 31 }
   0xc   : > { %v219_v0 = vlaneseq  ;;  %v498_v1 = vmov 1983009808   ;;  %v499_v3 = vmov 0   ;;  %v211_v4 = vld [vmem:[%s561_s2] sm:$0x1f]  ;;  %s568_s16 = smov (!%p193_p4, %s436_s16), 31 }
   0xd   : > { %v217_v2 = vunpack.c.l.s4 %v498_v1  ;;  %281 = vmatprep.mubr.bf16.mxu0 %v499_v3  ;;  %322 = vmatprep.mubr.bf16.mxu1 %v499_v3  ;;  %s437_s19 = sshll.u32 %s568_s16, 1  ;;  %vm236_vm0 = vcmask 1041408   ;;  %v212_v16 = vld [vmem:[%s560_s1] sm:$0x7]  ;;  %vm232_vm1 = vcmask 31744   ;;  %s439_s25 = sshll.u32 %s568_s16, 3 }
   0xe   : > { %v220_v5 = vshrl.u32 %v219_v0, 7  ;;  %472 = vset.pattern.permute.xlu0 %v499_v3  ;;  %s198_s22 = scalar_lea.vmem %s559_s0, %s437_s19  ;;  %s208_s28 = scalar_lea.vmem %s562_s3, %s439_s25 }
   0xf   : > { %v218_v6 = vunpack.c.0.s8 %v217_v2  ;;  %333 = vperm.xlu0 %472, %v211_v4   ;;  %v213_v8 = vld [vmem:[%s198_s22] sm:$0xff] }
  0x10   : > { %v215_v10 = vcombine.high %v213_v8, %v213_v8 }
  0x11   : > { %v221_v7 = vsub.s32 %v218_v6, %v220_v5 }
  0x13   : > { %v222_v9 = vrot.slane %v213_v8, %v221_v7  ;;  %v229_v13 = vrot.slane %v215_v10, %v221_v7 }
  0x15   : > { %v230_v11 = vcombine.high %v222_v9, %v222_v9  ;;  %v238_v12 = vsel %vm236_vm0, %v222_v9, 0  ;;  %v231_v14 = vcombine.high %v229_v13, %v229_v13  ;;  %v244_v15 = vsel %vm236_vm0, %v229_v13, 0 }
  0x17   : > { %440 = vmatprep.subr.msk.bf16.mxu0 %vm236_vm0, %v230_v11  ;;  %442 = vmatprep.subr.msk.bf16.mxu1 %vm236_vm0, %v231_v14 }
  0x18   : > { %264 = vmatpush1.bf16.msra.mxu0 %v238_v12  ;;  %305 = vmatpush1.bf16.msra.mxu1 %v244_v15 }
  0x1b   : > { %441 = vmatmul.mubr.msk.bf16.vlgmr.msra.gmra.mxu0 %vm232_vm1, %v212_v16  ;;  %443 = vmatmul.mubr.msk.bf16.vlgmr.msra.gmra.mxu1 %vm232_vm1, %v212_v16 }
  0x8a   : > { %v334_v17 = vpop.permute.xlu0 %333 }
  0xdb   : > { %v283_v18 = vpop.f32.mrf.mxu0  ;;  %v324_v21 = vpop.f32.mrf.mxu1 }
  0xdc   : > { %v336_v19 = vadd.f32 %v334_v17, %v283_v18  ;;  %v338_v23 = vadd.f32 %v334_v17, %v324_v21 }
  0xdd   : > { %v285_v20 = vpop.f32.mrf.mxu0  ;;  %v326_v25 = vpop.f32.mrf.mxu1 }
  0xde   : > { %340 = vst [vmem:[%s208_s28] sm:$0x1f] %v336_v19  ;;  %v337_v22 = vadd.f32 %v334_v17, %v285_v20  ;;  %342 = vst [vmem:[%s208_s28 + $0x10] sm:$0x1f] %v338_v23  ;;  %v339_v26 = vadd.f32 %v334_v17, %v326_v25 }
  0xdf   : > { %v287_v24 = vpop.f32.mrf.mxu0  ;;  %v328_v28 = vpop.f32.mrf.mxu1 }
  0xe0   : > { %341 = vst [vmem:[%s208_s28 + $0x8] sm:$0x1f] %v337_v22  ;;  %343 = vst [vmem:[%s208_s28 + $0x18] sm:$0x1f] %v339_v26 }
  0xe1   : > { %v288_v27 = vpop.f32.mrf.mxu0  ;;  %v329_v29 = vpop.f32.mrf.mxu1 }
  0xe2 PF: > { %s13_s14 = sadd.s32 1, %s496_s14   ;;  %s563_s12 = smov %s492_s13 }
  0xe3   : > { %p10_p5 = scmp.ge.s32.totalorder %s13_s14, 10   ;;  %s564_s13 = smov %s566_s15 }
  0xe5   :  { %12 = sbr.rel (!%p10_p5) target bundleno = 2 (0x2), region = 62 }

// kernel: _lambda_.17
= control target key start
LH: loop header
LB: loop body
LE: loop exit
PB: predicated region body
PF: predicated region fallthrough
CT: control target
= control target key end

     0   :  { %vm33_vm0 = vcmask 1043456   ;;  %v159_v2 = vmov 0   ;;  %vm29_vm1 = vcmask 64512   ;;  %s208_s0 = inlined_call_operand.vmem [shape: bf16[1,8,512], index: 0, kind: input, shape index: {}]   ;;  %s209_s2 = inlined_call_operand.vmem [shape: f32[5,1], index: 2, kind: input, shape index: {}]   ;;  %s210_s1 = inlined_call_operand.vmem [shape: bf16[5,8], index: 1, kind: input, shape index: {}]   ;;  %s211_s3 = inlined_call_operand.vmem [shape: f32[1,5,512], index: 3, kind: output, shape index: {}]  }
   0x1   :  { %v17_v0 = vld [vmem:[%s208_s0] sm:$0xff]  ;;  %v18_v1 = vld [vmem:[%s208_s0 + $0x8] sm:$0xff]  ;;  %78 = vmatprep.mubr.bf16.mxu0 %v159_v2  ;;  %119 = vmatprep.mubr.bf16.mxu1 %v159_v2 }
   0x2   :  { %v146_v3 = vcombine.high %v17_v0, %v17_v0  ;;  %v148_v4 = vcombine.high %v18_v1, %v18_v1  ;;  %v145_v5 = vcombine.low %v17_v0, %v17_v0  ;;  %v147_v6 = vcombine.low %v18_v1, %v18_v1  ;;  %154 = vset.pattern.permute.xlu0 %v159_v2  ;;  %v15_v7 = vld [vmem:[%s209_s2] sm:$0x1f] }
   0x3   :  { %130 = vperm.xlu0 %154, %v15_v7   ;;  %v16_v10 = vld [vmem:[%s210_s1] sm:$0x7] }
   0x4   :  { %149 = vmatprep.subr.msk.bf16.mxu0 %vm33_vm0, %v146_v3  ;;  %151 = vmatprep.subr.msk.bf16.mxu1 %vm33_vm0, %v148_v4  ;;  %v35_v8 = vsel %vm33_vm0, %v145_v5, 0  ;;  %v41_v9 = vsel %vm33_vm0, %v147_v6, 0 }
   0x5   :  { %61 = vmatpush1.bf16.msra.mxu0 %v35_v8  ;;  %102 = vmatpush1.bf16.msra.mxu1 %v41_v9 }
   0x8   :  { %150 = vmatmul.mubr.msk.bf16.vlgmr.msra.gmra.mxu0 %vm29_vm1, %v16_v10  ;;  %152 = vmatmul.mubr.msk.bf16.vlgmr.msra.gmra.mxu1 %vm29_vm1, %v16_v10 }
  0x7e   :  { %v131_v11 = vpop.permute.xlu0 %130 }
  0xc8   :  { %v80_v12 = vpop.f32.mrf.mxu0  ;;  %v121_v13 = vpop.f32.mrf.mxu1 }
  0xc9   :  { %v133_v14 = vadd.f32 %v131_v11, %v80_v12  ;;  %v135_v15 = vadd.f32 %v131_v11, %v121_v13 }
  0xca   :  { %v82_v16 = vpop.f32.mrf.mxu0  ;;  %v123_v17 = vpop.f32.mrf.mxu1 }
  0xcb   :  { %137 = vst [vmem:[%s211_s3] sm:$0x1f] %v133_v14  ;;  %139 = vst [vmem:[%s211_s3 + $0x10] sm:$0x1f] %v135_v15  ;;  %v134_v18 = vadd.f32 %v131_v11, %v82_v16  ;;  %v136_v19 = vadd.f32 %v131_v11, %v123_v17 }
  0xcc   :  { %v84_v20 = vpop.f32.mrf.mxu0  ;;  %v125_v21 = vpop.f32.mrf.mxu1 }
  0xcd   :  { %138 = vst [vmem:[%s211_s3 + $0x8] sm:$0x1f] %v134_v18  ;;  %140 = vst [vmem:[%s211_s3 + $0x18] sm:$0x1f] %v136_v19 }
  0xce   :  { %v85_v22 = vpop.f32.mrf.mxu0  ;;  %v126_v23 = vpop.f32.mrf.mxu1 }

// kernel: _lambda_.15
= control target key start
LH: loop header
LB: loop body
LE: loop exit
PB: predicated region body
PF: predicated region fallthrough
CT: control target
= control target key end

     0   :  { %v95_v0 = vmov 0.0   ;;  %vm96_vm0 = vmmov 0   ;;  %v97_v2 = vmov 0   ;;  %vm25_vm1 = vcmask 130048   ;;  %s130_s0 = inlined_call_operand.vmem [shape: bf16[1,16,128], index: 0, kind: input, shape index: {}]   ;;  %s131_s1 = inlined_call_operand.vmem [shape: bf16[5,16], index: 1, kind: input, shape index: {}]   ;;  %s132_s2 = inlined_call_operand.vmem [shape: f32[5,1], index: 2, kind: input, shape index: {}]   ;;  %s133_s3 = inlined_call_operand.vmem [shape: f32[1,5,128], index: 3, kind: output, shape index: {}]  }
   0x1   :  { %84 = vmatprep.subr.bf16.mxu0 %v95_v0  ;;  %v94_v1 = vld [vmem:[%s130_s0] sm:$0xff]   ;;  %86 = vmatprep.mubr.msk.bf16.mxu0 %vm96_vm0, %v95_v0 }
   0x2   :  { %93 = vset.pattern.permute.xlu0 %v97_v2  ;;  %v15_v3 = vld [vmem:[%s132_s2] sm:$0x1f]  ;;  %85 = vmatpush3.bf16.msra.mxu0 %v94_v1 }
   0x3   :  { %v16_v4 = vld [vmem:[%s131_s1] sm:$0x7]  ;;  %71 = vperm.xlu0 %93, %v15_v3  }
   0x5   :  { %87 = vmatmul.mubr.msk.bf16.vlgmr.msra.gmra.mxu0 %vm25_vm1, %v16_v4 }
  0x7e   :  { %v72_v5 = vpop.permute.xlu0 %71 }
  0xc5   :  { %v63_v6 = vpop.f32.mrf.mxu0 }
  0xc6   :  { %v74_v7 = vadd.f32 %v72_v5, %v63_v6 }
  0xc7   :  { %v88_v8 = vpop.f32.mrf.mxu0 }
  0xc8   :  { %75 = vst [vmem:[%s133_s3] sm:$0x1f] %v74_v7 }
  0xc9   :  { %v66_v9 = vpop.f32.mrf.mxu0 }
  0xcb   :  { %v89_v10 = vpop.f32.mrf.mxu0 }

</bundles_post_ra>
